<compile_context>
chip_gen: v6e
topology: v6e:2x2x1
jax: 0.10.0
libtpu: 0.0.40
codegen_flags: <defaults>
</compile_context>

<pallas_src>
import jax
import jax.numpy as jnp
from jax import lax
from jax.experimental import pallas as pl
from jax.experimental.pallas import tpu as pltpu

# ---------------- small Qwen2-style config ----------------
VOCAB = 256
HIDDEN = 128
N_LAYERS = 2
N_HEADS = 4
N_KV_HEADS = 2
HEAD_DIM = HIDDEN // N_HEADS          # 32
KV_REP = N_HEADS // N_KV_HEADS        # 2
Q_DIM = N_HEADS * HEAD_DIM            # 128 (lane-dense)
KV_DIM = N_KV_HEADS * HEAD_DIM        # 64
QKV_DIM = Q_DIM + 2 * KV_DIM          # 256 (fused QKV matmul width)
INTERMEDIATE = 256
RMS_EPS = 1e-6
ROPE_THETA = 10000.0
NEG_INF = -1e9

PARAM_DTYPE = jnp.bfloat16            # bf16 storage, fp32 accumulation
ACT_DTYPE = jnp.bfloat16


def _row_tiling(m):
    """Tile the token (row) axis; weights stay resident across row tiles."""
    for bm in (256, 128, 64, 32, 16, 8):
        if m % bm == 0:
            return bm, m // bm
    return m, 1


def _rms_normalize(x_f32, gamma_f32):
    var = jnp.mean(x_f32 * x_f32, axis=-1, keepdims=True)
    return x_f32 * lax.rsqrt(var + RMS_EPS) * gamma_f32


# ---------------- kernel 1: RMSNorm + fused QKV + RoPE ----------------
def _norm_qkv_rope_kernel(x_ref, g_ref, w_ref, b_ref, cos_ref, sin_ref,
                          q_ref, kv_ref):
    x = x_ref[...].astype(jnp.float32)
    gamma = g_ref[...].astype(jnp.float32)
    xn = _rms_normalize(x, gamma).astype(w_ref.dtype)
    qkv = jnp.dot(xn, w_ref[...], preferred_element_type=jnp.float32)
    qkv = qkv + b_ref[...].astype(jnp.float32)

    cos = cos_ref[...]                       # (bm, HEAD_DIM) fp32
    sin = sin_ref[...]

    def rope(xh):                            # rotate-half RoPE per head
        half = HEAD_DIM // 2
        rot = jnp.concatenate([-xh[:, half:], xh[:, :half]], axis=-1)
        return xh * cos + rot * sin

    q_heads = [rope(qkv[:, h * HEAD_DIM:(h + 1) * HEAD_DIM])
               for h in range(N_HEADS)]
    k_heads = [rope(qkv[:, Q_DIM + h * HEAD_DIM:Q_DIM + (h + 1) * HEAD_DIM])
               for h in range(N_KV_HEADS)]
    v_all = qkv[:, Q_DIM + KV_DIM:]          # (bm, KV_DIM)

    q_ref[...] = jnp.concatenate(q_heads, axis=-1).astype(q_ref.dtype)
    kv_ref[...] = jnp.concatenate(k_heads + [v_all],
                                  axis=-1).astype(kv_ref.dtype)


def fused_norm_qkv_rope(x, gamma, w_qkv, b_qkv, cos_bs, sin_bs):
    """x: (M, H) bf16 -> (q (M, Q_DIM), kv (M, 2*KV_DIM)) bf16, RoPE applied."""
    m, h = x.shape
    bm, nb = _row_tiling(m)
    row = lambda i: (i, 0)
    fixed = lambda i: (0, 0)
    return pl.pallas_call(
        _norm_qkv_rope_kernel,
        out_shape=(jax.ShapeDtypeStruct((m, Q_DIM), ACT_DTYPE),
                   jax.ShapeDtypeStruct((m, 2 * KV_DIM), ACT_DTYPE)),
        grid=(nb,),
        in_specs=[pl.BlockSpec((bm, h), row),
                  pl.BlockSpec((1, h), fixed),
                  pl.BlockSpec((h, QKV_DIM), fixed),
                  pl.BlockSpec((1, QKV_DIM), fixed),
                  pl.BlockSpec((bm, HEAD_DIM), row),
                  pl.BlockSpec((bm, HEAD_DIM), row)],
        out_specs=(pl.BlockSpec((bm, Q_DIM), row),
                   pl.BlockSpec((bm, 2 * KV_DIM), row)),
        compiler_params=pltpu.CompilerParams(
            dimension_semantics=("parallel",)),
    )(x, gamma.reshape(1, h), w_qkv, b_qkv.reshape(1, QKV_DIM), cos_bs, sin_bs)


# ---------------- kernel 2: GQA attention (all heads per batch) ----------------
def _attention_kernel(q_ref, kv_ref, kbias_ref, o_ref):
    s_len = q_ref.shape[1]
    q = q_ref[0].astype(jnp.float32)         # (S, Q_DIM)
    kv = kv_ref[0].astype(jnp.float32)       # (S, 2*KV_DIM)
    k = kv[:, :KV_DIM]
    v = kv[:, KV_DIM:]
    kbias = kbias_ref[0]                     # (1, S) additive fp32

    # causal + padding mask built in-kernel (no (B,1,S,S) HBM tensor).
    rows = lax.broadcasted_iota(jnp.int32, (s_len, s_len), 0)
    cols = lax.broadcasted_iota(jnp.int32, (s_len, s_len), 1)
    bias = jnp.where(rows >= cols, 0.0, NEG_INF).astype(jnp.float32) + kbias

    scale = 1.0 / (HEAD_DIM ** 0.5)
    outs = []
    for hd in range(N_HEADS):                # static unroll; GQA via slicing
        g = hd // KV_REP
        q_h = q[:, hd * HEAD_DIM:(hd + 1) * HEAD_DIM]
        k_h = k[:, g * HEAD_DIM:(g + 1) * HEAD_DIM]
        v_h = v[:, g * HEAD_DIM:(g + 1) * HEAD_DIM]
        s = jnp.einsum('qd,kd->qk', q_h, k_h,
                       preferred_element_type=jnp.float32) * scale + bias
        mx = jnp.max(s, axis=-1, keepdims=True)
        p = jnp.exp(s - mx)
        p = p * pl.reciprocal(jnp.sum(p, axis=-1, keepdims=True), approx=True)
        outs.append(jnp.dot(p, v_h, preferred_element_type=jnp.float32))
    # single lane-dense (S, 128) store
    o_ref[0] = jnp.concatenate(outs, axis=-1).astype(o_ref.dtype)
    # TODO(synk): for long sequences replace the full SxS tile with a KV-blocked
    # flash-style online-softmax grid axis.


def pallas_attention(q, kv, key_bias):
    """q: (B,S,Q_DIM), kv: (B,S,2*KV_DIM), key_bias: (B,1,S) -> (B,S,Q_DIM)."""
    b, s_len, _ = q.shape
    return pl.pallas_call(
        _attention_kernel,
        out_shape=jax.ShapeDtypeStruct((b, s_len, Q_DIM), ACT_DTYPE),
        grid=(b,),
        in_specs=[pl.BlockSpec((1, s_len, Q_DIM), lambda i: (i, 0, 0)),
                  pl.BlockSpec((1, s_len, 2 * KV_DIM), lambda i: (i, 0, 0)),
                  pl.BlockSpec((1, 1, s_len), lambda i: (i, 0, 0))],
        out_specs=pl.BlockSpec((1, s_len, Q_DIM), lambda i: (i, 0, 0)),
        compiler_params=pltpu.CompilerParams(
            dimension_semantics=("parallel",)),
    )(q, kv, key_bias)


# ---------------- kernel 3: o_proj + residual + RMSNorm + SwiGLU MLP + residual ----------------
def _oproj_mlp_kernel(attn_ref, wo_ref, h_ref, g_ref, wg_ref, wu_ref, wd_ref,
                      o_ref):
    h = h_ref[...].astype(jnp.float32)
    h1 = h + jnp.dot(attn_ref[...], wo_ref[...],
                     preferred_element_type=jnp.float32)
    gamma = g_ref[...].astype(jnp.float32)
    xn = _rms_normalize(h1, gamma).astype(wg_ref.dtype)
    gate = jnp.dot(xn, wg_ref[...], preferred_element_type=jnp.float32)
    up = jnp.dot(xn, wu_ref[...], preferred_element_type=jnp.float32)
    act = (gate * jax.nn.sigmoid(gate)) * up          # SwiGLU in fp32
    h2 = h1 + jnp.dot(act.astype(wd_ref.dtype), wd_ref[...],
                      preferred_element_type=jnp.float32)
    o_ref[...] = h2.astype(o_ref.dtype)


def fused_oproj_mlp(attn, h, wo, gamma, wg, wu, wd):
    m, hid = h.shape
    bm, nb = _row_tiling(m)
    row = lambda i: (i, 0)
    fixed = lambda i: (0, 0)
    return pl.pallas_call(
        _oproj_mlp_kernel,
        out_shape=jax.ShapeDtypeStruct((m, hid), ACT_DTYPE),
        grid=(nb,),
        in_specs=[pl.BlockSpec((bm, Q_DIM), row),
                  pl.BlockSpec((Q_DIM, hid), fixed),
                  pl.BlockSpec((bm, hid), row),
                  pl.BlockSpec((1, hid), fixed),
                  pl.BlockSpec((hid, INTERMEDIATE), fixed),
                  pl.BlockSpec((hid, INTERMEDIATE), fixed),
                  pl.BlockSpec((INTERMEDIATE, hid), fixed)],
        out_specs=pl.BlockSpec((bm, hid), row),
        compiler_params=pltpu.CompilerParams(
            dimension_semantics=("parallel",)),
    )(attn, wo, h, gamma.reshape(1, hid), wg, wu, wd)


# ---------------- kernel 4: final RMSNorm + lm_head ----------------
def _norm_head_kernel(x_ref, g_ref, w_ref, o_ref):
    x = x_ref[...].astype(jnp.float32)
    gamma = g_ref[...].astype(jnp.float32)
    xn = _rms_normalize(x, gamma).astype(w_ref.dtype)
    o_ref[...] = jnp.dot(xn, w_ref[...],
                         preferred_element_type=jnp.float32).astype(o_ref.dtype)


def fused_norm_lm_head(x, gamma, w_head):
    m, hid = x.shape
    vocab = w_head.shape[1]
    bm, nb = _row_tiling(m)
    return pl.pallas_call(
        _norm_head_kernel,
        out_shape=jax.ShapeDtypeStruct((m, vocab), jnp.float32),
        grid=(nb,),
        in_specs=[pl.BlockSpec((bm, hid), lambda i: (i, 0)),
                  pl.BlockSpec((1, hid), lambda i: (0, 0)),
                  pl.BlockSpec((hid, vocab), lambda i: (0, 0))],
        out_specs=pl.BlockSpec((bm, vocab), lambda i: (i, 0)),
        compiler_params=pltpu.CompilerParams(
            dimension_semantics=("parallel",)),
    )(x, gamma.reshape(1, hid), w_head)
    # TODO(synk): for real Qwen sizes (H x 152k vocab) this weight must be
    # streamed with a tiled (M,N,K) grid + fp32 scratch accumulator instead of
    # a single resident block.


# ---------------- parameter init (deterministic, synthetic) ----------------
def init_params(key):
    keys = iter(jax.random.split(key, 4 + 8 * N_LAYERS))

    def nrm(shape, scale=0.02):
        return (scale * jax.random.normal(next(keys), shape,
                                          jnp.float32)).astype(PARAM_DTYPE)

    params = {
        'embed': nrm((VOCAB, HIDDEN)),
        'final_norm': jnp.ones((HIDDEN,), PARAM_DTYPE),
        'lm_head': nrm((HIDDEN, VOCAB)),
        'layers': [],
    }
    for _ in range(N_LAYERS):
        params['layers'].append({
            'input_norm': jnp.ones((HIDDEN,), PARAM_DTYPE),
            'post_attn_norm': jnp.ones((HIDDEN,), PARAM_DTYPE),
            'w_qkv': nrm((HIDDEN, QKV_DIM)),   # fused [Wq | Wk | Wv]
            'b_qkv': nrm((QKV_DIM,)),          # fused [bq | bk | bv]
            'wo': nrm((Q_DIM, HIDDEN)),
            'wg': nrm((HIDDEN, INTERMEDIATE)),
            'wu': nrm((HIDDEN, INTERMEDIATE)),
            'wd': nrm((INTERMEDIATE, HIDDEN)),
        })
    return params


def rope_tables(seq_len, dim):
    inv_freq = 1.0 / (ROPE_THETA ** (jnp.arange(0, dim, 2,
                                                dtype=jnp.float32) / dim))
    pos = jnp.arange(seq_len, dtype=jnp.float32)
    freqs = pos[:, None] * inv_freq[None, :]          # (S, D/2)
    emb = jnp.concatenate([freqs, freqs], axis=-1)    # (S, D)
    return jnp.cos(emb), jnp.sin(emb)


# ---------------- full forward (== QwenForCausalLMWrapper.forward) ----------------
def qwen_forward(params, input_ids, attention_mask):
    B, S = input_ids.shape
    M = B * S
    h = jnp.take(params['embed'], input_ids, axis=0).astype(ACT_DTYPE)  # (B,S,H)

    cos, sin = rope_tables(S, HEAD_DIM)                # (S, D) fp32
    cos_bs = jnp.tile(cos, (B, 1))                     # row m -> position m % S
    sin_bs = jnp.tile(sin, (B, 1))

    # O(B*S) additive padding bias; causal part is built inside the kernel.
    key_bias = jnp.where(attention_mask.astype(bool), 0.0,
                         NEG_INF).astype(jnp.float32).reshape(B, 1, S)

    h = h.reshape(M, HIDDEN)
    for layer in params['layers']:
        q, kv = fused_norm_qkv_rope(h, layer['input_norm'], layer['w_qkv'],
                                    layer['b_qkv'], cos_bs, sin_bs)
        attn = pallas_attention(q.reshape(B, S, Q_DIM),
                                kv.reshape(B, S, 2 * KV_DIM),
                                key_bias)              # (B, S, Q_DIM)
        h = fused_oproj_mlp(attn.reshape(M, Q_DIM), h, layer['wo'],
                            layer['post_attn_norm'],
                            layer['wg'], layer['wu'], layer['wd'])

    logits = fused_norm_lm_head(h, params['final_norm'], params['lm_head'])
    return logits.reshape(B, S, VOCAB)
    # TODO(synk): `use_cache=True` KV-cache (past_key_values) is not returned by
    # the wrapper (it only returns logits), so no cache is materialized here.


if __name__ == "__main__":
    key = jax.random.PRNGKey(0)
    pkey, ikey = jax.random.split(key)
    params = init_params(pkey)

    B, S = 2, 8
    input_ids = jax.random.randint(ikey, (B, S), 0, VOCAB, dtype=jnp.int32)
    attention_mask = jnp.ones((B, S), jnp.int32).at[1, 0].set(0)   # one padded token

    logits = jax.jit(qwen_forward)(params, input_ids, attention_mask)
    jax.block_until_ready(logits)

    assert logits.shape == (B, S, VOCAB)
    assert logits.dtype == jnp.float32
    assert bool(jnp.all(jnp.isfinite(logits)))
    print("KERNEL_OK")
</pallas_src>

<mosaic_0001>
module attributes {stable_mosaic.version = 11 : i64} {
  func.func @_oproj_mlp_kernel(%arg0: i32, %arg1: memref<16x128xbf16, #tpu.memory_space<vmem>>, %arg2: memref<128x128xbf16, #tpu.memory_space<vmem>>, %arg3: memref<16x128xbf16, #tpu.memory_space<vmem>>, %arg4: memref<1x128xbf16, #tpu.memory_space<vmem>>, %arg5: memref<128x256xbf16, #tpu.memory_space<vmem>>, %arg6: memref<128x256xbf16, #tpu.memory_space<vmem>>, %arg7: memref<256x128xbf16, #tpu.memory_space<vmem>>, %arg8: memref<16x128xbf16, #tpu.memory_space<vmem>>) attributes {dimension_semantics = [#tpu.dimension_semantics<parallel>], iteration_bounds = array<i64: 1>, scalar_prefetch = 0 : i64, scratch_operands = 0 : i64, tpu.core_type = #tpu.core_type<tc>, window_params = [{transform_indices = @transform_0, window_bounds = array<i64: 16, 128>}, {pipeline_mode = #tpu.pipeline_mode<synchronous>, transform_indices = @transform_1, window_bounds = array<i64: 128, 128>}, {transform_indices = @transform_2, window_bounds = array<i64: 16, 128>}, {pipeline_mode = #tpu.pipeline_mode<synchronous>, transform_indices = @transform_3, window_bounds = array<i64: 1, 128>}, {pipeline_mode = #tpu.pipeline_mode<synchronous>, transform_indices = @transform_4, window_bounds = array<i64: 128, 256>}, {pipeline_mode = #tpu.pipeline_mode<synchronous>, transform_indices = @transform_5, window_bounds = array<i64: 128, 256>}, {pipeline_mode = #tpu.pipeline_mode<synchronous>, transform_indices = @transform_6, window_bounds = array<i64: 256, 128>}, {transform_indices = @transform_7, window_bounds = array<i64: 16, 128>}]} {
    %c0 = arith.constant 0 : index
    %c0_0 = arith.constant 0 : index
    %0 = vector.load %arg3[%c0, %c0_0] : memref<16x128xbf16, #tpu.memory_space<vmem>>, vector<16x128xbf16>
    %1 = arith.extf %0 : vector<16x128xbf16> to vector<16x128xf32>
    %c0_1 = arith.constant 0 : index
    %c0_2 = arith.constant 0 : index
    %2 = vector.load %arg1[%c0_1, %c0_2] : memref<16x128xbf16, #tpu.memory_space<vmem>>, vector<16x128xbf16>
    %c0_3 = arith.constant 0 : index
    %c0_4 = arith.constant 0 : index
    %3 = vector.load %arg2[%c0_3, %c0_4] : memref<128x128xbf16, #tpu.memory_space<vmem>>, vector<128x128xbf16>
    %cst = arith.constant dense<0.000000e+00> : vector<16x128xf32>
    %4 = tpu.matmul %2, %3, %cst {dimension_numbers = #tpu.dot_dimension_numbers<[1], [0], [0], [1], [0, 0, 1, 1], [], []>} : vector<16x128xbf16>, vector<128x128xbf16>, vector<16x128xf32> -> vector<16x128xf32>
    %5 = arith.addf %1, %4 : vector<16x128xf32>
    %c0_5 = arith.constant 0 : index
    %c0_6 = arith.constant 0 : index
    %6 = vector.load %arg4[%c0_5, %c0_6] : memref<1x128xbf16, #tpu.memory_space<vmem>>, vector<1x128xbf16>
    %7 = arith.extf %6 : vector<1x128xbf16> to vector<1x128xf32>
    %8 = arith.mulf %5, %5 : vector<16x128xf32>
    %cst_7 = arith.constant dense<0.000000e+00> : vector<16xf32>
    %9 = vector.multi_reduction <add>, %8, %cst_7 [1] : vector<16x128xf32> to vector<16xf32>
    %10 = vector.shape_cast %9 : vector<16xf32> to vector<16x1xf32>
    %cst_8 = arith.constant 1.280000e+02 : f32
    %11 = vector.broadcast %cst_8 : f32 to vector<16x1xf32>
    %12 = arith.divf %10, %11 : vector<16x1xf32>
    %cst_9 = arith.constant 9.99999997E-7 : f32
    %13 = vector.broadcast %cst_9 : f32 to vector<16x1xf32>
    %14 = arith.addf %12, %13 : vector<16x1xf32>
    %15 = math.rsqrt %14 : vector<16x1xf32>
    %16 = vector.broadcast %15 : vector<16x1xf32> to vector<16x128xf32>
    %17 = arith.mulf %5, %16 : vector<16x128xf32>
    %18 = vector.broadcast %7 : vector<1x128xf32> to vector<16x128xf32>
    %19 = arith.mulf %17, %18 : vector<16x128xf32>
    %20 = arith.truncf %19 : vector<16x128xf32> to vector<16x128xbf16>
    %c0_10 = arith.constant 0 : index
    %c0_11 = arith.constant 0 : index
    %21 = vector.load %arg5[%c0_10, %c0_11] : memref<128x256xbf16, #tpu.memory_space<vmem>>, vector<128x256xbf16>
    %cst_12 = arith.constant dense<0.000000e+00> : vector<16x256xf32>
    %22 = tpu.matmul %20, %21, %cst_12 {dimension_numbers = #tpu.dot_dimension_numbers<[1], [0], [0], [1], [0, 0, 1, 1], [], []>} : vector<16x128xbf16>, vector<128x256xbf16>, vector<16x256xf32> -> vector<16x256xf32>
    %c0_13 = arith.constant 0 : index
    %c0_14 = arith.constant 0 : index
    %23 = vector.load %arg6[%c0_13, %c0_14] : memref<128x256xbf16, #tpu.memory_space<vmem>>, vector<128x256xbf16>
    %cst_15 = arith.constant dense<0.000000e+00> : vector<16x256xf32>
    %24 = tpu.matmul %20, %23, %cst_15 {dimension_numbers = #tpu.dot_dimension_numbers<[1], [0], [0], [1], [0, 0, 1, 1], [], []>} : vector<16x128xbf16>, vector<128x256xbf16>, vector<16x256xf32> -> vector<16x256xf32>
    %25 = arith.negf %22 : vector<16x256xf32>
    %26 = math.exp %25 : vector<16x256xf32>
    %cst_16 = arith.constant 1.000000e+00 : f32
    %27 = vector.broadcast %cst_16 : f32 to vector<16x256xf32>
    %28 = arith.addf %27, %26 : vector<16x256xf32>
    %29 = arith.divf %27, %28 : vector<16x256xf32>
    %30 = arith.mulf %22, %29 : vector<16x256xf32>
    %31 = arith.mulf %30, %24 : vector<16x256xf32>
    %32 = arith.truncf %31 : vector<16x256xf32> to vector<16x256xbf16>
    %c0_17 = arith.constant 0 : index
    %c0_18 = arith.constant 0 : index
    %33 = vector.load %arg7[%c0_17, %c0_18] : memref<256x128xbf16, #tpu.memory_space<vmem>>, vector<256x128xbf16>
    %cst_19 = arith.constant dense<0.000000e+00> : vector<16x128xf32>
    %34 = tpu.matmul %32, %33, %cst_19 {dimension_numbers = #tpu.dot_dimension_numbers<[1], [0], [0], [1], [0, 0, 1, 1], [], []>} : vector<16x256xbf16>, vector<256x128xbf16>, vector<16x128xf32> -> vector<16x128xf32>
    %35 = arith.addf %5, %34 : vector<16x128xf32>
    %36 = arith.truncf %35 : vector<16x128xf32> to vector<16x128xbf16>
    %c0_20 = arith.constant 0 : index
    %c0_21 = arith.constant 0 : index
    %37 = vector.load %arg8[%c0_20, %c0_21] : memref<16x128xbf16, #tpu.memory_space<vmem>>, vector<16x128xbf16>
    tpu.vector_store %arg8[%c0_20, %c0_21], %36 {strides = array<i32>} : memref<16x128xbf16, #tpu.memory_space<vmem>>, vector<16x128xbf16>,
    return
  }
  func.func @transform_0(%arg0: i32) -> (i32, i32) {
    %c0_i32 = arith.constant 0 : i32
    %c0_i32_0 = arith.constant 0 : i32
    return %arg0, %c0_i32 : i32, i32
  }
  func.func @transform_1(%arg0: i32) -> (i32, i32) {
    %c0_i32 = arith.constant 0 : i32
    %c0_i32_0 = arith.constant 0 : i32
    %c0_i32_1 = arith.constant 0 : i32
    return %c0_i32, %c0_i32_0 : i32, i32
  }
  func.func @transform_2(%arg0: i32) -> (i32, i32) {
    %c0_i32 = arith.constant 0 : i32
    %c0_i32_0 = arith.constant 0 : i32
    return %arg0, %c0_i32 : i32, i32
  }
  func.func @transform_3(%arg0: i32) -> (i32, i32) {
    %c0_i32 = arith.constant 0 : i32
    %c0_i32_0 = arith.constant 0 : i32
    %c0_i32_1 = arith.constant 0 : i32
    return %c0_i32, %c0_i32_0 : i32, i32
  }
  func.func @transform_4(%arg0: i32) -> (i32, i32) {
    %c0_i32 = arith.constant 0 : i32
    %c0_i32_0 = arith.constant 0 : i32
    %c0_i32_1 = arith.constant 0 : i32
    return %c0_i32, %c0_i32_0 : i32, i32
  }
  func.func @transform_5(%arg0: i32) -> (i32, i32) {
    %c0_i32 = arith.constant 0 : i32
    %c0_i32_0 = arith.constant 0 : i32
    %c0_i32_1 = arith.constant 0 : i32
    return %c0_i32, %c0_i32_0 : i32, i32
  }
  func.func @transform_6(%arg0: i32) -> (i32, i32) {
    %c0_i32 = arith.constant 0 : i32
    %c0_i32_0 = arith.constant 0 : i32
    %c0_i32_1 = arith.constant 0 : i32
    return %c0_i32, %c0_i32_0 : i32, i32
  }
  func.func @transform_7(%arg0: i32) -> (i32, i32) {
    %c0_i32 = arith.constant 0 : i32
    %c0_i32_0 = arith.constant 0 : i32
    return %arg0, %c0_i32 : i32, i32
  }
}

module attributes {stable_mosaic.version = 11 : i64} {
  func.func @_norm_qkv_rope_kernel(%arg0: i32, %arg1: memref<16x128xbf16, #tpu.memory_space<vmem>>, %arg2: memref<1x128xbf16, #tpu.memory_space<vmem>>, %arg3: memref<128x256xbf16, #tpu.memory_space<vmem>>, %arg4: memref<1x256xbf16, #tpu.memory_space<vmem>>, %arg5: memref<16x32xf32, #tpu.memory_space<vmem>>, %arg6: memref<16x32xf32, #tpu.memory_space<vmem>>, %arg7: memref<16x128xbf16, #tpu.memory_space<vmem>>, %arg8: memref<16x128xbf16, #tpu.memory_space<vmem>>) attributes {dimension_semantics = [#tpu.dimension_semantics<parallel>], iteration_bounds = array<i64: 1>, scalar_prefetch = 0 : i64, scratch_operands = 0 : i64, tpu.core_type = #tpu.core_type<tc>, window_params = [{transform_indices = @transform_0, window_bounds = array<i64: 16, 128>}, {pipeline_mode = #tpu.pipeline_mode<synchronous>, transform_indices = @transform_1, window_bounds = array<i64: 1, 128>}, {pipeline_mode = #tpu.pipeline_mode<synchronous>, transform_indices = @transform_2, window_bounds = array<i64: 128, 256>}, {pipeline_mode = #tpu.pipeline_mode<synchronous>, transform_indices = @transform_3, window_bounds = array<i64: 1, 256>}, {transform_indices = @transform_4, window_bounds = array<i64: 16, 32>}, {transform_indices = @transform_5, window_bounds = array<i64: 16, 32>}, {transform_indices = @transform_6, window_bounds = array<i64: 16, 128>}, {transform_indices = @transform_7, window_bounds = array<i64: 16, 128>}]} {
    %c0 = arith.constant 0 : index
    %c0_0 = arith.constant 0 : index
    %0 = vector.load %arg1[%c0, %c0_0] : memref<16x128xbf16, #tpu.memory_space<vmem>>, vector<16x128xbf16>
    %1 = arith.extf %0 : vector<16x128xbf16> to vector<16x128xf32>
    %c0_1 = arith.constant 0 : index
    %c0_2 = arith.constant 0 : index
    %2 = vector.load %arg2[%c0_1, %c0_2] : memref<1x128xbf16, #tpu.memory_space<vmem>>, vector<1x128xbf16>
    %3 = arith.extf %2 : vector<1x128xbf16> to vector<1x128xf32>
    %4 = arith.mulf %1, %1 : vector<16x128xf32>
    %cst = arith.constant dense<0.000000e+00> : vector<16xf32>
    %5 = vector.multi_reduction <add>, %4, %cst [1] : vector<16x128xf32> to vector<16xf32>
    %6 = vector.shape_cast %5 : vector<16xf32> to vector<16x1xf32>
    %cst_3 = arith.constant 1.280000e+02 : f32
    %7 = vector.broadcast %cst_3 : f32 to vector<16x1xf32>
    %8 = arith.divf %6, %7 : vector<16x1xf32>
    %cst_4 = arith.constant 9.99999997E-7 : f32
    %9 = vector.broadcast %cst_4 : f32 to vector<16x1xf32>
    %10 = arith.addf %8, %9 : vector<16x1xf32>
    %11 = math.rsqrt %10 : vector<16x1xf32>
    %12 = vector.broadcast %11 : vector<16x1xf32> to vector<16x128xf32>
    %13 = arith.mulf %1, %12 : vector<16x128xf32>
    %14 = vector.broadcast %3 : vector<1x128xf32> to vector<16x128xf32>
    %15 = arith.mulf %13, %14 : vector<16x128xf32>
    %16 = arith.truncf %15 : vector<16x128xf32> to vector<16x128xbf16>
    %c0_5 = arith.constant 0 : index
    %c0_6 = arith.constant 0 : index
    %17 = vector.load %arg3[%c0_5, %c0_6] : memref<128x256xbf16, #tpu.memory_space<vmem>>, vector<128x256xbf16>
    %cst_7 = arith.constant dense<0.000000e+00> : vector<16x256xf32>
    %18 = tpu.matmul %16, %17, %cst_7 {dimension_numbers = #tpu.dot_dimension_numbers<[1], [0], [0], [1], [0, 0, 1, 1], [], []>} : vector<16x128xbf16>, vector<128x256xbf16>, vector<16x256xf32> -> vector<16x256xf32>
    %c0_8 = arith.constant 0 : index
    %c0_9 = arith.constant 0 : index
    %19 = vector.load %arg4[%c0_8, %c0_9] : memref<1x256xbf16, #tpu.memory_space<vmem>>, vector<1x256xbf16>
    %20 = arith.extf %19 : vector<1x256xbf16> to vector<1x256xf32>
    %21 = vector.broadcast %20 : vector<1x256xf32> to vector<16x256xf32>
    %22 = arith.addf %18, %21 : vector<16x256xf32>
    %c0_10 = arith.constant 0 : index
    %c0_11 = arith.constant 0 : index
    %23 = vector.load %arg5[%c0_10, %c0_11] : memref<16x32xf32, #tpu.memory_space<vmem>>, vector<16x32xf32>
    %c0_12 = arith.constant 0 : index
    %c0_13 = arith.constant 0 : index
    %24 = vector.load %arg6[%c0_12, %c0_13] : memref<16x32xf32, #tpu.memory_space<vmem>>, vector<16x32xf32>
    %25 = vector.extract_strided_slice %22 {offsets = [0, 0], sizes = [16, 32], strides = [1, 1]} : vector<16x256xf32> to vector<16x32xf32>
    %26 = vector.extract_strided_slice %25 {offsets = [0, 16], sizes = [16, 16], strides = [1, 1]} : vector<16x32xf32> to vector<16x16xf32>
    %cst_14 = arith.constant 0.000000e+00 : f32
    %27 = vector.broadcast %cst_14 : f32 to vector<16x16xf32>
    %28 = arith.subf %27, %26 : vector<16x16xf32>
    %29 = vector.extract_strided_slice %25 {offsets = [0, 0], sizes = [16, 16], strides = [1, 1]} : vector<16x32xf32> to vector<16x16xf32>
    %30 = tpu.concatenate %28, %29 in 1 : vector<16x16xf32>, vector<16x16xf32> -> vector<16x32xf32>
    %31 = arith.mulf %25, %23 : vector<16x32xf32>
    %32 = arith.mulf %30, %24 : vector<16x32xf32>
    %33 = arith.addf %31, %32 : vector<16x32xf32>
    %34 = vector.extract_strided_slice %22 {offsets = [0, 32], sizes = [16, 32], strides = [1, 1]} : vector<16x256xf32> to vector<16x32xf32>
    %35 = vector.extract_strided_slice %34 {offsets = [0, 16], sizes = [16, 16], strides = [1, 1]} : vector<16x32xf32> to vector<16x16xf32>
    %cst_15 = arith.constant 0.000000e+00 : f32
    %36 = vector.broadcast %cst_15 : f32 to vector<16x16xf32>
    %37 = arith.subf %36, %35 : vector<16x16xf32>
    %38 = vector.extract_strided_slice %34 {offsets = [0, 0], sizes = [16, 16], strides = [1, 1]} : vector<16x32xf32> to vector<16x16xf32>
    %39 = tpu.concatenate %37, %38 in 1 : vector<16x16xf32>, vector<16x16xf32> -> vector<16x32xf32>
    %40 = arith.mulf %34, %23 : vector<16x32xf32>
    %41 = arith.mulf %39, %24 : vector<16x32xf32>
    %42 = arith.addf %40, %41 : vector<16x32xf32>
    %43 = vector.extract_strided_slice %22 {offsets = [0, 64], sizes = [16, 32], strides = [1, 1]} : vector<16x256xf32> to vector<16x32xf32>
    %44 = vector.extract_strided_slice %43 {offsets = [0, 16], sizes = [16, 16], strides = [1, 1]} : vector<16x32xf32> to vector<16x16xf32>
    %cst_16 = arith.constant 0.000000e+00 : f32
    %45 = vector.broadcast %cst_16 : f32 to vector<16x16xf32>
    %46 = arith.subf %45, %44 : vector<16x16xf32>
    %47 = vector.extract_strided_slice %43 {offsets = [0, 0], sizes = [16, 16], strides = [1, 1]} : vector<16x32xf32> to vector<16x16xf32>
    %48 = tpu.concatenate %46, %47 in 1 : vector<16x16xf32>, vector<16x16xf32> -> vector<16x32xf32>
    %49 = arith.mulf %43, %23 : vector<16x32xf32>
    %50 = arith.mulf %48, %24 : vector<16x32xf32>
    %51 = arith.addf %49, %50 : vector<16x32xf32>
    %52 = vector.extract_strided_slice %22 {offsets = [0, 96], sizes = [16, 32], strides = [1, 1]} : vector<16x256xf32> to vector<16x32xf32>
    %53 = vector.extract_strided_slice %52 {offsets = [0, 16], sizes = [16, 16], strides = [1, 1]} : vector<16x32xf32> to vector<16x16xf32>
    %cst_17 = arith.constant 0.000000e+00 : f32
    %54 = vector.broadcast %cst_17 : f32 to vector<16x16xf32>
    %55 = arith.subf %54, %53 : vector<16x16xf32>
    %56 = vector.extract_strided_slice %52 {offsets = [0, 0], sizes = [16, 16], strides = [1, 1]} : vector<16x32xf32> to vector<16x16xf32>
    %57 = tpu.concatenate %55, %56 in 1 : vector<16x16xf32>, vector<16x16xf32> -> vector<16x32xf32>
    %58 = arith.mulf %52, %23 : vector<16x32xf32>
    %59 = arith.mulf %57, %24 : vector<16x32xf32>
    %60 = arith.addf %58, %59 : vector<16x32xf32>
    %61 = vector.extract_strided_slice %22 {offsets = [0, 128], sizes = [16, 32], strides = [1, 1]} : vector<16x256xf32> to vector<16x32xf32>
    %62 = vector.extract_strided_slice %61 {offsets = [0, 16], sizes = [16, 16], strides = [1, 1]} : vector<16x32xf32> to vector<16x16xf32>
    %cst_18 = arith.constant 0.000000e+00 : f32
    %63 = vector.broadcast %cst_18 : f32 to vector<16x16xf32>
    %64 = arith.subf %63, %62 : vector<16x16xf32>
    %65 = vector.extract_strided_slice %61 {offsets = [0, 0], sizes = [16, 16], strides = [1, 1]} : vector<16x32xf32> to vector<16x16xf32>
    %66 = tpu.concatenate %64, %65 in 1 : vector<16x16xf32>, vector<16x16xf32> -> vector<16x32xf32>
    %67 = arith.mulf %61, %23 : vector<16x32xf32>
    %68 = arith.mulf %66, %24 : vector<16x32xf32>
    %69 = arith.addf %67, %68 : vector<16x32xf32>
    %70 = vector.extract_strided_slice %22 {offsets = [0, 160], sizes = [16, 32], strides = [1, 1]} : vector<16x256xf32> to vector<16x32xf32>
    %71 = vector.extract_strided_slice %70 {offsets = [0, 16], sizes = [16, 16], strides = [1, 1]} : vector<16x32xf32> to vector<16x16xf32>
    %cst_19 = arith.constant 0.000000e+00 : f32
    %72 = vector.broadcast %cst_19 : f32 to vector<16x16xf32>
    %73 = arith.subf %72, %71 : vector<16x16xf32>
    %74 = vector.extract_strided_slice %70 {offsets = [0, 0], sizes = [16, 16], strides = [1, 1]} : vector<16x32xf32> to vector<16x16xf32>
    %75 = tpu.concatenate %73, %74 in 1 : vector<16x16xf32>, vector<16x16xf32> -> vector<16x32xf32>
    %76 = arith.mulf %70, %23 : vector<16x32xf32>
    %77 = arith.mulf %75, %24 : vector<16x32xf32>
    %78 = arith.addf %76, %77 : vector<16x32xf32>
    %79 = vector.extract_strided_slice %22 {offsets = [0, 192], sizes = [16, 64], strides = [1, 1]} : vector<16x256xf32> to vector<16x64xf32>
    %80 = tpu.concatenate %33, %42, %51, %60 in 1 : vector<16x32xf32>, vector<16x32xf32>, vector<16x32xf32>, vector<16x32xf32> -> vector<16x128xf32>
    %81 = arith.truncf %80 : vector<16x128xf32> to vector<16x128xbf16>
    %c0_20 = arith.constant 0 : index
    %c0_21 = arith.constant 0 : index
    %82 = vector.load %arg7[%c0_20, %c0_21] : memref<16x128xbf16, #tpu.memory_space<vmem>>, vector<16x128xbf16>
    tpu.vector_store %arg7[%c0_20, %c0_21], %81 {strides = array<i32>} : memref<16x128xbf16, #tpu.memory_space<vmem>>, vector<16x128xbf16>,
    %83 = tpu.concatenate %69, %78, %79 in 1 : vector<16x32xf32>, vector<16x32xf32>, vector<16x64xf32> -> vector<16x128xf32>
    %84 = arith.truncf %83 : vector<16x128xf32> to vector<16x128xbf16>
    %c0_22 = arith.constant 0 : index
    %c0_23 = arith.constant 0 : index
    %85 = vector.load %arg8[%c0_22, %c0_23] : memref<16x128xbf16, #tpu.memory_space<vmem>>, vector<16x128xbf16>
    tpu.vector_store %arg8[%c0_22, %c0_23], %84 {strides = array<i32>} : memref<16x128xbf16, #tpu.memory_space<vmem>>, vector<16x128xbf16>,
    return
  }
  func.func @transform_0(%arg0: i32) -> (i32, i32) {
    %c0_i32 = arith.constant 0 : i32
    %c0_i32_0 = arith.constant 0 : i32
    return %arg0, %c0_i32 : i32, i32
  }
  func.func @transform_1(%arg0: i32) -> (i32, i32) {
    %c0_i32 = arith.constant 0 : i32
    %c0_i32_0 = arith.constant 0 : i32
    %c0_i32_1 = arith.constant 0 : i32
    return %c0_i32, %c0_i32_0 : i32, i32
  }
  func.func @transform_2(%arg0: i32) -> (i32, i32) {
    %c0_i32 = arith.constant 0 : i32
    %c0_i32_0 = arith.constant 0 : i32
    %c0_i32_1 = arith.constant 0 : i32
    return %c0_i32, %c0_i32_0 : i32, i32
  }
  func.func @transform_3(%arg0: i32) -> (i32, i32) {
    %c0_i32 = arith.constant 0 : i32
    %c0_i32_0 = arith.constant 0 : i32
    %c0_i32_1 = arith.constant 0 : i32
    return %c0_i32, %c0_i32_0 : i32, i32
  }
  func.func @transform_4(%arg0: i32) -> (i32, i32) {
    %c0_i32 = arith.constant 0 : i32
    %c0_i32_0 = arith.constant 0 : i32
    return %arg0, %c0_i32 : i32, i32
  }
  func.func @transform_5(%arg0: i32) -> (i32, i32) {
    %c0_i32 = arith.constant 0 : i32
    %c0_i32_0 = arith.constant 0 : i32
    return %arg0, %c0_i32 : i32, i32
  }
  func.func @transform_6(%arg0: i32) -> (i32, i32) {
    %c0_i32 = arith.constant 0 : i32
    %c0_i32_0 = arith.constant 0 : i32
    return %arg0, %c0_i32 : i32, i32
  }
  func.func @transform_7(%arg0: i32) -> (i32, i32) {
    %c0_i32 = arith.constant 0 : i32
    %c0_i32_0 = arith.constant 0 : i32
    return %arg0, %c0_i32 : i32, i32
  }
}

module attributes {stable_mosaic.version = 11 : i64} {
  func.func @_attention_kernel(%arg0: i32, %arg1: memref<1x8x128xbf16, #tpu.memory_space<vmem>>, %arg2: memref<1x8x128xbf16, #tpu.memory_space<vmem>>, %arg3: memref<1x1x8xf32, #tpu.memory_space<vmem>>, %arg4: memref<1x8x128xbf16, #tpu.memory_space<vmem>>) attributes {dimension_semantics = [#tpu.dimension_semantics<parallel>], iteration_bounds = array<i64: 2>, scalar_prefetch = 0 : i64, scratch_operands = 0 : i64, tpu.core_type = #tpu.core_type<tc>, window_params = [{transform_indices = @transform_0, window_bounds = array<i64: 1, 8, 128>}, {transform_indices = @transform_1, window_bounds = array<i64: 1, 8, 128>}, {transform_indices = @transform_2, window_bounds = array<i64: 1, 1, 8>}, {transform_indices = @transform_3, window_bounds = array<i64: 1, 8, 128>}]} {
    %c0 = arith.constant 0 : index
    %c0_0 = arith.constant 0 : index
    %c0_1 = arith.constant 0 : index
    %0 = vector.load %arg1[%c0, %c0_0, %c0_1] : memref<1x8x128xbf16, #tpu.memory_space<vmem>>, vector<1x8x128xbf16>
    %1 = vector.shape_cast %0 : vector<1x8x128xbf16> to vector<8x128xbf16>
    %2 = arith.extf %1 : vector<8x128xbf16> to vector<8x128xf32>
    %c0_2 = arith.constant 0 : index
    %c0_3 = arith.constant 0 : index
    %c0_4 = arith.constant 0 : index
    %3 = vector.load %arg2[%c0_2, %c0_3, %c0_4] : memref<1x8x128xbf16, #tpu.memory_space<vmem>>, vector<1x8x128xbf16>
    %4 = vector.shape_cast %3 : vector<1x8x128xbf16> to vector<8x128xbf16>
    %5 = arith.extf %4 : vector<8x128xbf16> to vector<8x128xf32>
    %6 = vector.extract_strided_slice %5 {offsets = [0, 0], sizes = [8, 64], strides = [1, 1]} : vector<8x128xf32> to vector<8x64xf32>
    %7 = vector.extract_strided_slice %5 {offsets = [0, 64], sizes = [8, 64], strides = [1, 1]} : vector<8x128xf32> to vector<8x64xf32>
    %c0_5 = arith.constant 0 : index
    %c0_6 = arith.constant 0 : index
    %c0_7 = arith.constant 0 : index
    %8 = vector.load %arg3[%c0_5, %c0_6, %c0_7] : memref<1x1x8xf32, #tpu.memory_space<vmem>>, vector<1x1x8xf32>
    %9 = vector.shape_cast %8 : vector<1x1x8xf32> to vector<1x8xf32>
    %10 = tpu.iota {dimensions = array<i32: 0>} : vector<8x8xi32>
    %11 = tpu.iota {dimensions = array<i32: 1>} : vector<8x8xi32>
    %12 = arith.cmpi sge, %10, %11 : vector<8x8xi32>
    %cst = arith.constant 0.000000e+00 : f32
    %cst_8 = arith.constant -1.000000e+09 : f32
    %13 = vector.broadcast %cst : f32 to vector<8x8xf32>
    %14 = vector.broadcast %cst_8 : f32 to vector<8x8xf32>
    %15 = arith.select %12, %13, %14 : vector<8x8xi1>, vector<8x8xf32>
    %16 = vector.broadcast %9 : vector<1x8xf32> to vector<8x8xf32>
    %17 = arith.addf %15, %16 : vector<8x8xf32>
    %18 = vector.extract_strided_slice %2 {offsets = [0, 0], sizes = [8, 32], strides = [1, 1]} : vector<8x128xf32> to vector<8x32xf32>
    %19 = vector.extract_strided_slice %6 {offsets = [0, 0], sizes = [8, 32], strides = [1, 1]} : vector<8x64xf32> to vector<8x32xf32>
    %20 = vector.extract_strided_slice %7 {offsets = [0, 0], sizes = [8, 32], strides = [1, 1]} : vector<8x64xf32> to vector<8x32xf32>
    "tpu.trace_start"() <{level = 10 : i32, message = "qd,kd->qk"}> : () -> ()
    %cst_9 = arith.constant dense<0.000000e+00> : vector<8x8xf32>
    %21 = tpu.matmul %18, %19, %cst_9 {dimension_numbers = #tpu.dot_dimension_numbers<[1], [1], [0], [0], [0, 0, 1, 0], [], []>} : vector<8x32xf32>, vector<8x32xf32>, vector<8x8xf32> -> vector<8x8xf32>
    "tpu.trace_stop"() : () -> ()
    %cst_10 = arith.constant 0.176776692 : f32
    %22 = vector.broadcast %cst_10 : f32 to vector<8x8xf32>
    %23 = arith.mulf %21, %22 : vector<8x8xf32>
    %24 = arith.addf %23, %17 : vector<8x8xf32>
    %cst_11 = arith.constant dense<0xFF800000> : vector<8xf32>
    %25 = vector.multi_reduction <maximumf>, %24, %cst_11 [1] : vector<8x8xf32> to vector<8xf32>
    %26 = vector.shape_cast %25 : vector<8xf32> to vector<8x1xf32>
    %27 = vector.broadcast %26 : vector<8x1xf32> to vector<8x8xf32>
    %28 = arith.subf %24, %27 : vector<8x8xf32>
    %29 = math.exp %28 : vector<8x8xf32>
    %cst_12 = arith.constant dense<0.000000e+00> : vector<8xf32>
    %30 = vector.multi_reduction <add>, %29, %cst_12 [1] : vector<8x8xf32> to vector<8xf32>
    %31 = vector.shape_cast %30 : vector<8xf32> to vector<8x1xf32>
    %32 = tpu.reciprocal %31 {approx = true} : vector<8x1xf32> -> vector<8x1xf32>
    %33 = vector.broadcast %32 : vector<8x1xf32> to vector<8x8xf32>
    %34 = arith.mulf %29, %33 : vector<8x8xf32>
    %cst_13 = arith.constant dense<0.000000e+00> : vector<8x32xf32>
    %35 = tpu.matmul %34, %20, %cst_13 {dimension_numbers = #tpu.dot_dimension_numbers<[1], [0], [0], [1], [0, 0, 1, 1], [], []>} : vector<8x8xf32>, vector<8x32xf32>, vector<8x32xf32> -> vector<8x32xf32>
    %36 = vector.extract_strided_slice %2 {offsets = [0, 32], sizes = [8, 32], strides = [1, 1]} : vector<8x128xf32> to vector<8x32xf32>
    %37 = vector.extract_strided_slice %6 {offsets = [0, 0], sizes = [8, 32], strides = [1, 1]} : vector<8x64xf32> to vector<8x32xf32>
    %38 = vector.extract_strided_slice %7 {offsets = [0, 0], sizes = [8, 32], strides = [1, 1]} : vector<8x64xf32> to vector<8x32xf32>
    "tpu.trace_start"() <{level = 10 : i32, message = "qd,kd->qk"}> : () -> ()
    %cst_14 = arith.constant dense<0.000000e+00> : vector<8x8xf32>
    %39 = tpu.matmul %36, %37, %cst_14 {dimension_numbers = #tpu.dot_dimension_numbers<[1], [1], [0], [0], [0, 0, 1, 0], [], []>} : vector<8x32xf32>, vector<8x32xf32>, vector<8x8xf32> -> vector<8x8xf32>
    "tpu.trace_stop"() : () -> ()
    %cst_15 = arith.constant 0.176776692 : f32
    %40 = vector.broadcast %cst_15 : f32 to vector<8x8xf32>
    %41 = arith.mulf %39, %40 : vector<8x8xf32>
    %42 = arith.addf %41, %17 : vector<8x8xf32>
    %cst_16 = arith.constant dense<0xFF800000> : vector<8xf32>
    %43 = vector.multi_reduction <maximumf>, %42, %cst_16 [1] : vector<8x8xf32> to vector<8xf32>
    %44 = vector.shape_cast %43 : vector<8xf32> to vector<8x1xf32>
    %45 = vector.broadcast %44 : vector<8x1xf32> to vector<8x8xf32>
    %46 = arith.subf %42, %45 : vector<8x8xf32>
    %47 = math.exp %46 : vector<8x8xf32>
    %cst_17 = arith.constant dense<0.000000e+00> : vector<8xf32>
    %48 = vector.multi_reduction <add>, %47, %cst_17 [1] : vector<8x8xf32> to vector<8xf32>
    %49 = vector.shape_cast %48 : vector<8xf32> to vector<8x1xf32>
    %50 = tpu.reciprocal %49 {approx = true} : vector<8x1xf32> -> vector<8x1xf32>
    %51 = vector.broadcast %50 : vector<8x1xf32> to vector<8x8xf32>
    %52 = arith.mulf %47, %51 : vector<8x8xf32>
    %cst_18 = arith.constant dense<0.000000e+00> : vector<8x32xf32>
    %53 = tpu.matmul %52, %38, %cst_18 {dimension_numbers = #tpu.dot_dimension_numbers<[1], [0], [0], [1], [0, 0, 1, 1], [], []>} : vector<8x8xf32>, vector<8x32xf32>, vector<8x32xf32> -> vector<8x32xf32>
    %54 = vector.extract_strided_slice %2 {offsets = [0, 64], sizes = [8, 32], strides = [1, 1]} : vector<8x128xf32> to vector<8x32xf32>
    %55 = vector.extract_strided_slice %6 {offsets = [0, 32], sizes = [8, 32], strides = [1, 1]} : vector<8x64xf32> to vector<8x32xf32>
    %56 = vector.extract_strided_slice %7 {offsets = [0, 32], sizes = [8, 32], strides = [1, 1]} : vector<8x64xf32> to vector<8x32xf32>
    "tpu.trace_start"() <{level = 10 : i32, message = "qd,kd->qk"}> : () -> ()
    %cst_19 = arith.constant dense<0.000000e+00> : vector<8x8xf32>
    %57 = tpu.matmul %54, %55, %cst_19 {dimension_numbers = #tpu.dot_dimension_numbers<[1], [1], [0], [0], [0, 0, 1, 0], [], []>} : vector<8x32xf32>, vector<8x32xf32>, vector<8x8xf32> -> vector<8x8xf32>
    "tpu.trace_stop"() : () -> ()
    %cst_20 = arith.constant 0.176776692 : f32
    %58 = vector.broadcast %cst_20 : f32 to vector<8x8xf32>
    %59 = arith.mulf %57, %58 : vector<8x8xf32>
    %60 = arith.addf %59, %17 : vector<8x8xf32>
    %cst_21 = arith.constant dense<0xFF800000> : vector<8xf32>
    %61 = vector.multi_reduction <maximumf>, %60, %cst_21 [1] : vector<8x8xf32> to vector<8xf32>
    %62 = vector.shape_cast %61 : vector<8xf32> to vector<8x1xf32>
    %63 = vector.broadcast %62 : vector<8x1xf32> to vector<8x8xf32>
    %64 = arith.subf %60, %63 : vector<8x8xf32>
    %65 = math.exp %64 : vector<8x8xf32>
    %cst_22 = arith.constant dense<0.000000e+00> : vector<8xf32>
    %66 = vector.multi_reduction <add>, %65, %cst_22 [1] : vector<8x8xf32> to vector<8xf32>
    %67 = vector.shape_cast %66 : vector<8xf32> to vector<8x1xf32>
    %68 = tpu.reciprocal %67 {approx = true} : vector<8x1xf32> -> vector<8x1xf32>
    %69 = vector.broadcast %68 : vector<8x1xf32> to vector<8x8xf32>
    %70 = arith.mulf %65, %69 : vector<8x8xf32>
    %cst_23 = arith.constant dense<0.000000e+00> : vector<8x32xf32>
    %71 = tpu.matmul %70, %56, %cst_23 {dimension_numbers = #tpu.dot_dimension_numbers<[1], [0], [0], [1], [0, 0, 1, 1], [], []>} : vector<8x8xf32>, vector<8x32xf32>, vector<8x32xf32> -> vector<8x32xf32>
    %72 = vector.extract_strided_slice %2 {offsets = [0, 96], sizes = [8, 32], strides = [1, 1]} : vector<8x128xf32> to vector<8x32xf32>
    %73 = vector.extract_strided_slice %6 {offsets = [0, 32], sizes = [8, 32], strides = [1, 1]} : vector<8x64xf32> to vector<8x32xf32>
    %74 = vector.extract_strided_slice %7 {offsets = [0, 32], sizes = [8, 32], strides = [1, 1]} : vector<8x64xf32> to vector<8x32xf32>
    "tpu.trace_start"() <{level = 10 : i32, message = "qd,kd->qk"}> : () -> ()
    %cst_24 = arith.constant dense<0.000000e+00> : vector<8x8xf32>
    %75 = tpu.matmul %72, %73, %cst_24 {dimension_numbers = #tpu.dot_dimension_numbers<[1], [1], [0], [0], [0, 0, 1, 0], [], []>} : vector<8x32xf32>, vector<8x32xf32>, vector<8x8xf32> -> vector<8x8xf32>
    "tpu.trace_stop"() : () -> ()
    %cst_25 = arith.constant 0.176776692 : f32
    %76 = vector.broadcast %cst_25 : f32 to vector<8x8xf32>
    %77 = arith.mulf %75, %76 : vector<8x8xf32>
    %78 = arith.addf %77, %17 : vector<8x8xf32>
    %cst_26 = arith.constant dense<0xFF800000> : vector<8xf32>
    %79 = vector.multi_reduction <maximumf>, %78, %cst_26 [1] : vector<8x8xf32> to vector<8xf32>
    %80 = vector.shape_cast %79 : vector<8xf32> to vector<8x1xf32>
    %81 = vector.broadcast %80 : vector<8x1xf32> to vector<8x8xf32>
    %82 = arith.subf %78, %81 : vector<8x8xf32>
    %83 = math.exp %82 : vector<8x8xf32>
    %cst_27 = arith.constant dense<0.000000e+00> : vector<8xf32>
    %84 = vector.multi_reduction <add>, %83, %cst_27 [1] : vector<8x8xf32> to vector<8xf32>
    %85 = vector.shape_cast %84 : vector<8xf32> to vector<8x1xf32>
    %86 = tpu.reciprocal %85 {approx = true} : vector<8x1xf32> -> vector<8x1xf32>
    %87 = vector.broadcast %86 : vector<8x1xf32> to vector<8x8xf32>
    %88 = arith.mulf %83, %87 : vector<8x8xf32>
    %cst_28 = arith.constant dense<0.000000e+00> : vector<8x32xf32>
    %89 = tpu.matmul %88, %74, %cst_28 {dimension_numbers = #tpu.dot_dimension_numbers<[1], [0], [0], [1], [0, 0, 1, 1], [], []>} : vector<8x8xf32>, vector<8x32xf32>, vector<8x32xf32> -> vector<8x32xf32>
    %90 = tpu.concatenate %35, %53, %71, %89 in 1 : vector<8x32xf32>, vector<8x32xf32>, vector<8x32xf32>, vector<8x32xf32> -> vector<8x128xf32>
    %91 = arith.truncf %90 : vector<8x128xf32> to vector<8x128xbf16>
    %c0_29 = arith.constant 0 : index
    %c0_30 = arith.constant 0 : index
    %c0_31 = arith.constant 0 : index
    %92 = vector.load %arg4[%c0_29, %c0_30, %c0_31] : memref<1x8x128xbf16, #tpu.memory_space<vmem>>, vector<1x8x128xbf16>
    %93 = vector.shape_cast %92 : vector<1x8x128xbf16> to vector<8x128xbf16>
    %94 = vector.shape_cast %91 : vector<8x128xbf16> to vector<1x8x128xbf16>
    tpu.vector_store %arg4[%c0_29, %c0_30, %c0_31], %94 {strides = array<i32>} : memref<1x8x128xbf16, #tpu.memory_space<vmem>>, vector<1x8x128xbf16>,
    return
  }
  func.func @transform_0(%arg0: i32) -> (i32, i32, i32) {
    %c0_i32 = arith.constant 0 : i32
    %c0_i32_0 = arith.constant 0 : i32
    %c0_i32_1 = arith.constant 0 : i32
    return %arg0, %c0_i32, %c0_i32_0 : i32, i32, i32
  }
  func.func @transform_1(%arg0: i32) -> (i32, i32, i32) {
    %c0_i32 = arith.constant 0 : i32
    %c0_i32_0 = arith.constant 0 : i32
    %c0_i32_1 = arith.constant 0 : i32
    return %arg0, %c0_i32, %c0_i32_0 : i32, i32, i32
  }
  func.func @transform_2(%arg0: i32) -> (i32, i32, i32) {
    %c0_i32 = arith.constant 0 : i32
    %c0_i32_0 = arith.constant 0 : i32
    %c0_i32_1 = arith.constant 0 : i32
    return %arg0, %c0_i32, %c0_i32_0 : i32, i32, i32
  }
  func.func @transform_3(%arg0: i32) -> (i32, i32, i32) {
    %c0_i32 = arith.constant 0 : i32
    %c0_i32_0 = arith.constant 0 : i32
    %c0_i32_1 = arith.constant 0 : i32
    return %arg0, %c0_i32, %c0_i32_0 : i32, i32, i32
  }
}

module attributes {stable_mosaic.version = 11 : i64} {
  func.func @_norm_qkv_rope_kernel(%arg0: i32, %arg1: memref<16x128xbf16, #tpu.memory_space<vmem>>, %arg2: memref<1x128xbf16, #tpu.memory_space<vmem>>, %arg3: memref<128x256xbf16, #tpu.memory_space<vmem>>, %arg4: memref<1x256xbf16, #tpu.memory_space<vmem>>, %arg5: memref<16x32xf32, #tpu.memory_space<vmem>>, %arg6: memref<16x32xf32, #tpu.memory_space<vmem>>, %arg7: memref<16x128xbf16, #tpu.memory_space<vmem>>, %arg8: memref<16x128xbf16, #tpu.memory_space<vmem>>) attributes {dimension_semantics = [#tpu.dimension_semantics<parallel>], iteration_bounds = array<i64: 1>, scalar_prefetch = 0 : i64, scratch_operands = 0 : i64, tpu.core_type = #tpu.core_type<tc>, window_params = [{transform_indices = @transform_0, window_bounds = array<i64: 16, 128>}, {pipeline_mode = #tpu.pipeline_mode<synchronous>, transform_indices = @transform_1, window_bounds = array<i64: 1, 128>}, {pipeline_mode = #tpu.pipeline_mode<synchronous>, transform_indices = @transform_2, window_bounds = array<i64: 128, 256>}, {pipeline_mode = #tpu.pipeline_mode<synchronous>, transform_indices = @transform_3, window_bounds = array<i64: 1, 256>}, {transform_indices = @transform_4, window_bounds = array<i64: 16, 32>}, {transform_indices = @transform_5, window_bounds = array<i64: 16, 32>}, {transform_indices = @transform_6, window_bounds = array<i64: 16, 128>}, {transform_indices = @transform_7, window_bounds = array<i64: 16, 128>}]} {
    %c0 = arith.constant 0 : index
    %c0_0 = arith.constant 0 : index
    %0 = vector.load %arg1[%c0, %c0_0] : memref<16x128xbf16, #tpu.memory_space<vmem>>, vector<16x128xbf16>
    %1 = arith.extf %0 : vector<16x128xbf16> to vector<16x128xf32>
    %c0_1 = arith.constant 0 : index
    %c0_2 = arith.constant 0 : index
    %2 = vector.load %arg2[%c0_1, %c0_2] : memref<1x128xbf16, #tpu.memory_space<vmem>>, vector<1x128xbf16>
    %3 = arith.extf %2 : vector<1x128xbf16> to vector<1x128xf32>
    %4 = arith.mulf %1, %1 : vector<16x128xf32>
    %cst = arith.constant dense<0.000000e+00> : vector<16xf32>
    %5 = vector.multi_reduction <add>, %4, %cst [1] : vector<16x128xf32> to vector<16xf32>
    %6 = vector.shape_cast %5 : vector<16xf32> to vector<16x1xf32>
    %cst_3 = arith.constant 1.280000e+02 : f32
    %7 = vector.broadcast %cst_3 : f32 to vector<16x1xf32>
    %8 = arith.divf %6, %7 : vector<16x1xf32>
    %cst_4 = arith.constant 9.99999997E-7 : f32
    %9 = vector.broadcast %cst_4 : f32 to vector<16x1xf32>
    %10 = arith.addf %8, %9 : vector<16x1xf32>
    %11 = math.rsqrt %10 : vector<16x1xf32>
    %12 = vector.broadcast %11 : vector<16x1xf32> to vector<16x128xf32>
    %13 = arith.mulf %1, %12 : vector<16x128xf32>
    %14 = vector.broadcast %3 : vector<1x128xf32> to vector<16x128xf32>
    %15 = arith.mulf %13, %14 : vector<16x128xf32>
    %16 = arith.truncf %15 : vector<16x128xf32> to vector<16x128xbf16>
    %c0_5 = arith.constant 0 : index
    %c0_6 = arith.constant 0 : index
    %17 = vector.load %arg3[%c0_5, %c0_6] : memref<128x256xbf16, #tpu.memory_space<vmem>>, vector<128x256xbf16>
    %cst_7 = arith.constant dense<0.000000e+00> : vector<16x256xf32>
    %18 = tpu.matmul %16, %17, %cst_7 {dimension_numbers = #tpu.dot_dimension_numbers<[1], [0], [0], [1], [0, 0, 1, 1], [], []>} : vector<16x128xbf16>, vector<128x256xbf16>, vector<16x256xf32> -> vector<16x256xf32>
    %c0_8 = arith.constant 0 : index
    %c0_9 = arith.constant 0 : index
    %19 = vector.load %arg4[%c0_8, %c0_9] : memref<1x256xbf16, #tpu.memory_space<vmem>>, vector<1x256xbf16>
    %20 = arith.extf %19 : vector<1x256xbf16> to vector<1x256xf32>
    %21 = vector.broadcast %20 : vector<1x256xf32> to vector<16x256xf32>
    %22 = arith.addf %18, %21 : vector<16x256xf32>
    %c0_10 = arith.constant 0 : index
    %c0_11 = arith.constant 0 : index
    %23 = vector.load %arg5[%c0_10, %c0_11] : memref<16x32xf32, #tpu.memory_space<vmem>>, vector<16x32xf32>
    %c0_12 = arith.constant 0 : index
    %c0_13 = arith.constant 0 : index
    %24 = vector.load %arg6[%c0_12, %c0_13] : memref<16x32xf32, #tpu.memory_space<vmem>>, vector<16x32xf32>
    %25 = vector.extract_strided_slice %22 {offsets = [0, 0], sizes = [16, 32], strides = [1, 1]} : vector<16x256xf32> to vector<16x32xf32>
    %26 = vector.extract_strided_slice %25 {offsets = [0, 16], sizes = [16, 16], strides = [1, 1]} : vector<16x32xf32> to vector<16x16xf32>
    %cst_14 = arith.constant 0.000000e+00 : f32
    %27 = vector.broadcast %cst_14 : f32 to vector<16x16xf32>
    %28 = arith.subf %27, %26 : vector<16x16xf32>
    %29 = vector.extract_strided_slice %25 {offsets = [0, 0], sizes = [16, 16], strides = [1, 1]} : vector<16x32xf32> to vector<16x16xf32>
    %30 = tpu.concatenate %28, %29 in 1 : vector<16x16xf32>, vector<16x16xf32> -> vector<16x32xf32>
    %31 = arith.mulf %25, %23 : vector<16x32xf32>
    %32 = arith.mulf %30, %24 : vector<16x32xf32>
    %33 = arith.addf %31, %32 : vector<16x32xf32>
    %34 = vector.extract_strided_slice %22 {offsets = [0, 32], sizes = [16, 32], strides = [1, 1]} : vector<16x256xf32> to vector<16x32xf32>
    %35 = vector.extract_strided_slice %34 {offsets = [0, 16], sizes = [16, 16], strides = [1, 1]} : vector<16x32xf32> to vector<16x16xf32>
    %cst_15 = arith.constant 0.000000e+00 : f32
    %36 = vector.broadcast %cst_15 : f32 to vector<16x16xf32>
    %37 = arith.subf %36, %35 : vector<16x16xf32>
    %38 = vector.extract_strided_slice %34 {offsets = [0, 0], sizes = [16, 16], strides = [1, 1]} : vector<16x32xf32> to vector<16x16xf32>
    %39 = tpu.concatenate %37, %38 in 1 : vector<16x16xf32>, vector<16x16xf32> -> vector<16x32xf32>
    %40 = arith.mulf %34, %23 : vector<16x32xf32>
    %41 = arith.mulf %39, %24 : vector<16x32xf32>
    %42 = arith.addf %40, %41 : vector<16x32xf32>
    %43 = vector.extract_strided_slice %22 {offsets = [0, 64], sizes = [16, 32], strides = [1, 1]} : vector<16x256xf32> to vector<16x32xf32>
    %44 = vector.extract_strided_slice %43 {offsets = [0, 16], sizes = [16, 16], strides = [1, 1]} : vector<16x32xf32> to vector<16x16xf32>
    %cst_16 = arith.constant 0.000000e+00 : f32
    %45 = vector.broadcast %cst_16 : f32 to vector<16x16xf32>
    %46 = arith.subf %45, %44 : vector<16x16xf32>
    %47 = vector.extract_strided_slice %43 {offsets = [0, 0], sizes = [16, 16], strides = [1, 1]} : vector<16x32xf32> to vector<16x16xf32>
    %48 = tpu.concatenate %46, %47 in 1 : vector<16x16xf32>, vector<16x16xf32> -> vector<16x32xf32>
    %49 = arith.mulf %43, %23 : vector<16x32xf32>
    %50 = arith.mulf %48, %24 : vector<16x32xf32>
    %51 = arith.addf %49, %50 : vector<16x32xf32>
    %52 = vector.extract_strided_slice %22 {offsets = [0, 96], sizes = [16, 32], strides = [1, 1]} : vector<16x256xf32> to vector<16x32xf32>
    %53 = vector.extract_strided_slice %52 {offsets = [0, 16], sizes = [16, 16], strides = [1, 1]} : vector<16x32xf32> to vector<16x16xf32>
    %cst_17 = arith.constant 0.000000e+00 : f32
    %54 = vector.broadcast %cst_17 : f32 to vector<16x16xf32>
    %55 = arith.subf %54, %53 : vector<16x16xf32>
    %56 = vector.extract_strided_slice %52 {offsets = [0, 0], sizes = [16, 16], strides = [1, 1]} : vector<16x32xf32> to vector<16x16xf32>
    %57 = tpu.concatenate %55, %56 in 1 : vector<16x16xf32>, vector<16x16xf32> -> vector<16x32xf32>
    %58 = arith.mulf %52, %23 : vector<16x32xf32>
    %59 = arith.mulf %57, %24 : vector<16x32xf32>
    %60 = arith.addf %58, %59 : vector<16x32xf32>
    %61 = vector.extract_strided_slice %22 {offsets = [0, 128], sizes = [16, 32], strides = [1, 1]} : vector<16x256xf32> to vector<16x32xf32>
    %62 = vector.extract_strided_slice %61 {offsets = [0, 16], sizes = [16, 16], strides = [1, 1]} : vector<16x32xf32> to vector<16x16xf32>
    %cst_18 = arith.constant 0.000000e+00 : f32
    %63 = vector.broadcast %cst_18 : f32 to vector<16x16xf32>
    %64 = arith.subf %63, %62 : vector<16x16xf32>
    %65 = vector.extract_strided_slice %61 {offsets = [0, 0], sizes = [16, 16], strides = [1, 1]} : vector<16x32xf32> to vector<16x16xf32>
    %66 = tpu.concatenate %64, %65 in 1 : vector<16x16xf32>, vector<16x16xf32> -> vector<16x32xf32>
    %67 = arith.mulf %61, %23 : vector<16x32xf32>
    %68 = arith.mulf %66, %24 : vector<16x32xf32>
    %69 = arith.addf %67, %68 : vector<16x32xf32>
    %70 = vector.extract_strided_slice %22 {offsets = [0, 160], sizes = [16, 32], strides = [1, 1]} : vector<16x256xf32> to vector<16x32xf32>
    %71 = vector.extract_strided_slice %70 {offsets = [0, 16], sizes = [16, 16], strides = [1, 1]} : vector<16x32xf32> to vector<16x16xf32>
    %cst_19 = arith.constant 0.000000e+00 : f32
    %72 = vector.broadcast %cst_19 : f32 to vector<16x16xf32>
    %73 = arith.subf %72, %71 : vector<16x16xf32>
    %74 = vector.extract_strided_slice %70 {offsets = [0, 0], sizes = [16, 16], strides = [1, 1]} : vector<16x32xf32> to vector<16x16xf32>
    %75 = tpu.concatenate %73, %74 in 1 : vector<16x16xf32>, vector<16x16xf32> -> vector<16x32xf32>
    %76 = arith.mulf %70, %23 : vector<16x32xf32>
    %77 = arith.mulf %75, %24 : vector<16x32xf32>
    %78 = arith.addf %76, %77 : vector<16x32xf32>
    %79 = vector.extract_strided_slice %22 {offsets = [0, 192], sizes = [16, 64], strides = [1, 1]} : vector<16x256xf32> to vector<16x64xf32>
    %80 = tpu.concatenate %33, %42, %51, %60 in 1 : vector<16x32xf32>, vector<16x32xf32>, vector<16x32xf32>, vector<16x32xf32> -> vector<16x128xf32>
    %81 = arith.truncf %80 : vector<16x128xf32> to vector<16x128xbf16>
    %c0_20 = arith.constant 0 : index
    %c0_21 = arith.constant 0 : index
    %82 = vector.load %arg7[%c0_20, %c0_21] : memref<16x128xbf16, #tpu.memory_space<vmem>>, vector<16x128xbf16>
    tpu.vector_store %arg7[%c0_20, %c0_21], %81 {strides = array<i32>} : memref<16x128xbf16, #tpu.memory_space<vmem>>, vector<16x128xbf16>,
    %83 = tpu.concatenate %69, %78, %79 in 1 : vector<16x32xf32>, vector<16x32xf32>, vector<16x64xf32> -> vector<16x128xf32>
    %84 = arith.truncf %83 : vector<16x128xf32> to vector<16x128xbf16>
    %c0_22 = arith.constant 0 : index
    %c0_23 = arith.constant 0 : index
    %85 = vector.load %arg8[%c0_22, %c0_23] : memref<16x128xbf16, #tpu.memory_space<vmem>>, vector<16x128xbf16>
    tpu.vector_store %arg8[%c0_22, %c0_23], %84 {strides = array<i32>} : memref<16x128xbf16, #tpu.memory_space<vmem>>, vector<16x128xbf16>,
    return
  }
  func.func @transform_0(%arg0: i32) -> (i32, i32) {
    %c0_i32 = arith.constant 0 : i32
    %c0_i32_0 = arith.constant 0 : i32
    return %arg0, %c0_i32 : i32, i32
  }
  func.func @transform_1(%arg0: i32) -> (i32, i32) {
    %c0_i32 = arith.constant 0 : i32
    %c0_i32_0 = arith.constant 0 : i32
    %c0_i32_1 = arith.constant 0 : i32
    return %c0_i32, %c0_i32_0 : i32, i32
  }
  func.func @transform_2(%arg0: i32) -> (i32, i32) {
    %c0_i32 = arith.constant 0 : i32
    %c0_i32_0 = arith.constant 0 : i32
    %c0_i32_1 = arith.constant 0 : i32
    return %c0_i32, %c0_i32_0 : i32, i32
  }
  func.func @transform_3(%arg0: i32) -> (i32, i32) {
    %c0_i32 = arith.constant 0 : i32
    %c0_i32_0 = arith.constant 0 : i32
    %c0_i32_1 = arith.constant 0 : i32
    return %c0_i32, %c0_i32_0 : i32, i32
  }
  func.func @transform_4(%arg0: i32) -> (i32, i32) {
    %c0_i32 = arith.constant 0 : i32
    %c0_i32_0 = arith.constant 0 : i32
    return %arg0, %c0_i32 : i32, i32
  }
  func.func @transform_5(%arg0: i32) -> (i32, i32) {
    %c0_i32 = arith.constant 0 : i32
    %c0_i32_0 = arith.constant 0 : i32
    return %arg0, %c0_i32 : i32, i32
  }
  func.func @transform_6(%arg0: i32) -> (i32, i32) {
    %c0_i32 = arith.constant 0 : i32
    %c0_i32_0 = arith.constant 0 : i32
    return %arg0, %c0_i32 : i32, i32
  }
  func.func @transform_7(%arg0: i32) -> (i32, i32) {
    %c0_i32 = arith.constant 0 : i32
    %c0_i32_0 = arith.constant 0 : i32
    return %arg0, %c0_i32 : i32, i32
  }
}

module attributes {stable_mosaic.version = 11 : i64} {
  func.func @_oproj_mlp_kernel(%arg0: i32, %arg1: memref<16x128xbf16, #tpu.memory_space<vmem>>, %arg2: memref<128x128xbf16, #tpu.memory_space<vmem>>, %arg3: memref<16x128xbf16, #tpu.memory_space<vmem>>, %arg4: memref<1x128xbf16, #tpu.memory_space<vmem>>, %arg5: memref<128x256xbf16, #tpu.memory_space<vmem>>, %arg6: memref<128x256xbf16, #tpu.memory_space<vmem>>, %arg7: memref<256x128xbf16, #tpu.memory_space<vmem>>, %arg8: memref<16x128xbf16, #tpu.memory_space<vmem>>) attributes {dimension_semantics = [#tpu.dimension_semantics<parallel>], iteration_bounds = array<i64: 1>, scalar_prefetch = 0 : i64, scratch_operands = 0 : i64, tpu.core_type = #tpu.core_type<tc>, window_params = [{transform_indices = @transform_0, window_bounds = array<i64: 16, 128>}, {pipeline_mode = #tpu.pipeline_mode<synchronous>, transform_indices = @transform_1, window_bounds = array<i64: 128, 128>}, {transform_indices = @transform_2, window_bounds = array<i64: 16, 128>}, {pipeline_mode = #tpu.pipeline_mode<synchronous>, transform_indices = @transform_3, window_bounds = array<i64: 1, 128>}, {pipeline_mode = #tpu.pipeline_mode<synchronous>, transform_indices = @transform_4, window_bounds = array<i64: 128, 256>}, {pipeline_mode = #tpu.pipeline_mode<synchronous>, transform_indices = @transform_5, window_bounds = array<i64: 128, 256>}, {pipeline_mode = #tpu.pipeline_mode<synchronous>, transform_indices = @transform_6, window_bounds = array<i64: 256, 128>}, {transform_indices = @transform_7, window_bounds = array<i64: 16, 128>}]} {
    %c0 = arith.constant 0 : index
    %c0_0 = arith.constant 0 : index
    %0 = vector.load %arg3[%c0, %c0_0] : memref<16x128xbf16, #tpu.memory_space<vmem>>, vector<16x128xbf16>
    %1 = arith.extf %0 : vector<16x128xbf16> to vector<16x128xf32>
    %c0_1 = arith.constant 0 : index
    %c0_2 = arith.constant 0 : index
    %2 = vector.load %arg1[%c0_1, %c0_2] : memref<16x128xbf16, #tpu.memory_space<vmem>>, vector<16x128xbf16>
    %c0_3 = arith.constant 0 : index
    %c0_4 = arith.constant 0 : index
    %3 = vector.load %arg2[%c0_3, %c0_4] : memref<128x128xbf16, #tpu.memory_space<vmem>>, vector<128x128xbf16>
    %cst = arith.constant dense<0.000000e+00> : vector<16x128xf32>
    %4 = tpu.matmul %2, %3, %cst {dimension_numbers = #tpu.dot_dimension_numbers<[1], [0], [0], [1], [0, 0, 1, 1], [], []>} : vector<16x128xbf16>, vector<128x128xbf16>, vector<16x128xf32> -> vector<16x128xf32>
    %5 = arith.addf %1, %4 : vector<16x128xf32>
    %c0_5 = arith.constant 0 : index
    %c0_6 = arith.constant 0 : index
    %6 = vector.load %arg4[%c0_5, %c0_6] : memref<1x128xbf16, #tpu.memory_space<vmem>>, vector<1x128xbf16>
    %7 = arith.extf %6 : vector<1x128xbf16> to vector<1x128xf32>
    %8 = arith.mulf %5, %5 : vector<16x128xf32>
    %cst_7 = arith.constant dense<0.000000e+00> : vector<16xf32>
    %9 = vector.multi_reduction <add>, %8, %cst_7 [1] : vector<16x128xf32> to vector<16xf32>
    %10 = vector.shape_cast %9 : vector<16xf32> to vector<16x1xf32>
    %cst_8 = arith.constant 1.280000e+02 : f32
    %11 = vector.broadcast %cst_8 : f32 to vector<16x1xf32>
    %12 = arith.divf %10, %11 : vector<16x1xf32>
    %cst_9 = arith.constant 9.99999997E-7 : f32
    %13 = vector.broadcast %cst_9 : f32 to vector<16x1xf32>
    %14 = arith.addf %12, %13 : vector<16x1xf32>
    %15 = math.rsqrt %14 : vector<16x1xf32>
    %16 = vector.broadcast %15 : vector<16x1xf32> to vector<16x128xf32>
    %17 = arith.mulf %5, %16 : vector<16x128xf32>
    %18 = vector.broadcast %7 : vector<1x128xf32> to vector<16x128xf32>
    %19 = arith.mulf %17, %18 : vector<16x128xf32>
    %20 = arith.truncf %19 : vector<16x128xf32> to vector<16x128xbf16>
    %c0_10 = arith.constant 0 : index
    %c0_11 = arith.constant 0 : index
    %21 = vector.load %arg5[%c0_10, %c0_11] : memref<128x256xbf16, #tpu.memory_space<vmem>>, vector<128x256xbf16>
    %cst_12 = arith.constant dense<0.000000e+00> : vector<16x256xf32>
    %22 = tpu.matmul %20, %21, %cst_12 {dimension_numbers = #tpu.dot_dimension_numbers<[1], [0], [0], [1], [0, 0, 1, 1], [], []>} : vector<16x128xbf16>, vector<128x256xbf16>, vector<16x256xf32> -> vector<16x256xf32>
    %c0_13 = arith.constant 0 : index
    %c0_14 = arith.constant 0 : index
    %23 = vector.load %arg6[%c0_13, %c0_14] : memref<128x256xbf16, #tpu.memory_space<vmem>>, vector<128x256xbf16>
    %cst_15 = arith.constant dense<0.000000e+00> : vector<16x256xf32>
    %24 = tpu.matmul %20, %23, %cst_15 {dimension_numbers = #tpu.dot_dimension_numbers<[1], [0], [0], [1], [0, 0, 1, 1], [], []>} : vector<16x128xbf16>, vector<128x256xbf16>, vector<16x256xf32> -> vector<16x256xf32>
    %25 = arith.negf %22 : vector<16x256xf32>
    %26 = math.exp %25 : vector<16x256xf32>
    %cst_16 = arith.constant 1.000000e+00 : f32
    %27 = vector.broadcast %cst_16 : f32 to vector<16x256xf32>
    %28 = arith.addf %27, %26 : vector<16x256xf32>
    %29 = arith.divf %27, %28 : vector<16x256xf32>
    %30 = arith.mulf %22, %29 : vector<16x256xf32>
    %31 = arith.mulf %30, %24 : vector<16x256xf32>
    %32 = arith.truncf %31 : vector<16x256xf32> to vector<16x256xbf16>
    %c0_17 = arith.constant 0 : index
    %c0_18 = arith.constant 0 : index
    %33 = vector.load %arg7[%c0_17, %c0_18] : memref<256x128xbf16, #tpu.memory_space<vmem>>, vector<256x128xbf16>
    %cst_19 = arith.constant dense<0.000000e+00> : vector<16x128xf32>
    %34 = tpu.matmul %32, %33, %cst_19 {dimension_numbers = #tpu.dot_dimension_numbers<[1], [0], [0], [1], [0, 0, 1, 1], [], []>} : vector<16x256xbf16>, vector<256x128xbf16>, vector<16x128xf32> -> vector<16x128xf32>
    %35 = arith.addf %5, %34 : vector<16x128xf32>
    %36 = arith.truncf %35 : vector<16x128xf32> to vector<16x128xbf16>
    %c0_20 = arith.constant 0 : index
    %c0_21 = arith.constant 0 : index
    %37 = vector.load %arg8[%c0_20, %c0_21] : memref<16x128xbf16, #tpu.memory_space<vmem>>, vector<16x128xbf16>
    tpu.vector_store %arg8[%c0_20, %c0_21], %36 {strides = array<i32>} : memref<16x128xbf16, #tpu.memory_space<vmem>>, vector<16x128xbf16>,
    return
  }
  func.func @transform_0(%arg0: i32) -> (i32, i32) {
    %c0_i32 = arith.constant 0 : i32
    %c0_i32_0 = arith.constant 0 : i32
    return %arg0, %c0_i32 : i32, i32
  }
  func.func @transform_1(%arg0: i32) -> (i32, i32) {
    %c0_i32 = arith.constant 0 : i32
    %c0_i32_0 = arith.constant 0 : i32
    %c0_i32_1 = arith.constant 0 : i32
    return %c0_i32, %c0_i32_0 : i32, i32
  }
  func.func @transform_2(%arg0: i32) -> (i32, i32) {
    %c0_i32 = arith.constant 0 : i32
    %c0_i32_0 = arith.constant 0 : i32
    return %arg0, %c0_i32 : i32, i32
  }
  func.func @transform_3(%arg0: i32) -> (i32, i32) {
    %c0_i32 = arith.constant 0 : i32
    %c0_i32_0 = arith.constant 0 : i32
    %c0_i32_1 = arith.constant 0 : i32
    return %c0_i32, %c0_i32_0 : i32, i32
  }
  func.func @transform_4(%arg0: i32) -> (i32, i32) {
    %c0_i32 = arith.constant 0 : i32
    %c0_i32_0 = arith.constant 0 : i32
    %c0_i32_1 = arith.constant 0 : i32
    return %c0_i32, %c0_i32_0 : i32, i32
  }
  func.func @transform_5(%arg0: i32) -> (i32, i32) {
    %c0_i32 = arith.constant 0 : i32
    %c0_i32_0 = arith.constant 0 : i32
    %c0_i32_1 = arith.constant 0 : i32
    return %c0_i32, %c0_i32_0 : i32, i32
  }
  func.func @transform_6(%arg0: i32) -> (i32, i32) {
    %c0_i32 = arith.constant 0 : i32
    %c0_i32_0 = arith.constant 0 : i32
    %c0_i32_1 = arith.constant 0 : i32
    return %c0_i32, %c0_i32_0 : i32, i32
  }
  func.func @transform_7(%arg0: i32) -> (i32, i32) {
    %c0_i32 = arith.constant 0 : i32
    %c0_i32_0 = arith.constant 0 : i32
    return %arg0, %c0_i32 : i32, i32
  }
}

module attributes {stable_mosaic.version = 11 : i64} {
  func.func @_norm_head_kernel(%arg0: i32, %arg1: memref<16x128xbf16, #tpu.memory_space<vmem>>, %arg2: memref<1x128xbf16, #tpu.memory_space<vmem>>, %arg3: memref<128x256xbf16, #tpu.memory_space<vmem>>, %arg4: memref<16x256xf32, #tpu.memory_space<vmem>>) attributes {dimension_semantics = [#tpu.dimension_semantics<parallel>], iteration_bounds = array<i64: 1>, scalar_prefetch = 0 : i64, scratch_operands = 0 : i64, tpu.core_type = #tpu.core_type<tc>, window_params = [{transform_indices = @transform_0, window_bounds = array<i64: 16, 128>}, {pipeline_mode = #tpu.pipeline_mode<synchronous>, transform_indices = @transform_1, window_bounds = array<i64: 1, 128>}, {pipeline_mode = #tpu.pipeline_mode<synchronous>, transform_indices = @transform_2, window_bounds = array<i64: 128, 256>}, {transform_indices = @transform_3, window_bounds = array<i64: 16, 256>}]} {
    %c0 = arith.constant 0 : index
    %c0_0 = arith.constant 0 : index
    %0 = vector.load %arg1[%c0, %c0_0] : memref<16x128xbf16, #tpu.memory_space<vmem>>, vector<16x128xbf16>
    %1 = arith.extf %0 : vector<16x128xbf16> to vector<16x128xf32>
    %c0_1 = arith.constant 0 : index
    %c0_2 = arith.constant 0 : index
    %2 = vector.load %arg2[%c0_1, %c0_2] : memref<1x128xbf16, #tpu.memory_space<vmem>>, vector<1x128xbf16>
    %3 = arith.extf %2 : vector<1x128xbf16> to vector<1x128xf32>
    %4 = arith.mulf %1, %1 : vector<16x128xf32>
    %cst = arith.constant dense<0.000000e+00> : vector<16xf32>
    %5 = vector.multi_reduction <add>, %4, %cst [1] : vector<16x128xf32> to vector<16xf32>
    %6 = vector.shape_cast %5 : vector<16xf32> to vector<16x1xf32>
    %cst_3 = arith.constant 1.280000e+02 : f32
    %7 = vector.broadcast %cst_3 : f32 to vector<16x1xf32>
    %8 = arith.divf %6, %7 : vector<16x1xf32>
    %cst_4 = arith.constant 9.99999997E-7 : f32
    %9 = vector.broadcast %cst_4 : f32 to vector<16x1xf32>
    %10 = arith.addf %8, %9 : vector<16x1xf32>
    %11 = math.rsqrt %10 : vector<16x1xf32>
    %12 = vector.broadcast %11 : vector<16x1xf32> to vector<16x128xf32>
    %13 = arith.mulf %1, %12 : vector<16x128xf32>
    %14 = vector.broadcast %3 : vector<1x128xf32> to vector<16x128xf32>
    %15 = arith.mulf %13, %14 : vector<16x128xf32>
    %16 = arith.truncf %15 : vector<16x128xf32> to vector<16x128xbf16>
    %c0_5 = arith.constant 0 : index
    %c0_6 = arith.constant 0 : index
    %17 = vector.load %arg3[%c0_5, %c0_6] : memref<128x256xbf16, #tpu.memory_space<vmem>>, vector<128x256xbf16>
    %cst_7 = arith.constant dense<0.000000e+00> : vector<16x256xf32>
    %18 = tpu.matmul %16, %17, %cst_7 {dimension_numbers = #tpu.dot_dimension_numbers<[1], [0], [0], [1], [0, 0, 1, 1], [], []>} : vector<16x128xbf16>, vector<128x256xbf16>, vector<16x256xf32> -> vector<16x256xf32>
    %c0_8 = arith.constant 0 : index
    %c0_9 = arith.constant 0 : index
    %19 = vector.load %arg4[%c0_8, %c0_9] : memref<16x256xf32, #tpu.memory_space<vmem>>, vector<16x256xf32>
    tpu.vector_store %arg4[%c0_8, %c0_9], %18 {strides = array<i32>} : memref<16x256xf32, #tpu.memory_space<vmem>>, vector<16x256xf32>,
    return
  }
  func.func @transform_0(%arg0: i32) -> (i32, i32) {
    %c0_i32 = arith.constant 0 : i32
    %c0_i32_0 = arith.constant 0 : i32
    return %arg0, %c0_i32 : i32, i32
  }
  func.func @transform_1(%arg0: i32) -> (i32, i32) {
    %c0_i32 = arith.constant 0 : i32
    %c0_i32_0 = arith.constant 0 : i32
    %c0_i32_1 = arith.constant 0 : i32
    return %c0_i32, %c0_i32_0 : i32, i32
  }
  func.func @transform_2(%arg0: i32) -> (i32, i32) {
    %c0_i32 = arith.constant 0 : i32
    %c0_i32_0 = arith.constant 0 : i32
    %c0_i32_1 = arith.constant 0 : i32
    return %c0_i32, %c0_i32_0 : i32, i32
  }
  func.func @transform_3(%arg0: i32) -> (i32, i32) {
    %c0_i32 = arith.constant 0 : i32
    %c0_i32_0 = arith.constant 0 : i32
    return %arg0, %c0_i32 : i32, i32
  }
}

</mosaic_0001>

<bundles_post_ra>
// kernel: qwen_forward.7
= control target key start
LH: loop header
LB: loop body
LE: loop exit
PB: predicated region body
PF: predicated region fallthrough
CT: control target
= control target key end

     0   :  { %13 = vsyncpa [#allocation3], 0  ;;  %s554_s24 = smov [#allocation2]   ;;  %s795_s0 = inlined_call_operand.vmem [shape: bf16[16,128], index: 0, kind: input, shape index: {}]   ;;  %s796_s1 = inlined_call_operand.hbm [shape: bf16[1,128], index: 1, kind: input, shape index: {}]   ;;  %s797_s2 = inlined_call_operand.vmem [shape: bf16[128,256], index: 2, kind: input, shape index: {}]   ;;  %s798_s3 = inlined_call_operand.vmem [shape: bf16[1,256], index: 3, kind: input, shape index: {}]   ;;  %s799_s4 = inlined_call_operand.vmem [shape: f32[16,32], index: 4, kind: input, shape index: {}]   ;;  %s800_s5 = inlined_call_operand.vmem [shape: f32[16,32], index: 5, kind: input, shape index: {}]   ;;  %s801_s6 = inlined_call_operand.vmem [shape: bf16[16,128], index: 6, kind: output, shape index: {0}]   ;;  %s802_s7 = inlined_call_operand.vmem [shape: bf16[16,128], index: 7, kind: output, shape index: {1}]  }
   0x1   :  { %s22_s25 = sshll.u32 %s554_s24, 4  ;;  %s23_s25 = int_to_ptr.vmem [resolvable:$true] %s22_s25 }
   0x2   :  { %s540_s26 = scalar_lea.vmem %s23_s25, 16  ;;  %s544_s27 = scalar_lea.vmem %s23_s25, 32 }
   0x3   :  { %p541_p0 = scmp.ne.s32.totalorder %s23_s25, %s540_s26  ;;  %p545_p1 = scmp.lt.s32.totalorder %s23_s25, %s23_s25 }
   0x4   :  { %p546_p2 = scmp.lt.s32.totalorder %s544_s27, %s540_s26 }
   0x6   :  { %p547_p3 = por %p546_p2, %p545_p1 }
   0x8   :  { %p548_p4 = pnand %p547_p3, %p541_p0 }
   0xa   :  { %551 = shalt.err (!%p548_p4)
}
   0xb   :  { %25 = dma.hbm_to_vmem [thread:$0]  %s796_s1, 16, %s23_s25, [#allocation3]  }
   0xc   :  { %552 = dma.done.wait [#allocation3], 16  }
   0xd   :  { %553 = vsyncadd [#allocation3], 4294967280  ;;  %v482_v0 = vld [vmem:[%s795_s0] sm:$0xff]   ;;  %v504_v3 = vld [vmem:[%s797_s2 + $0x74] ss:$8 sps:$4 sm:$0xff]   ;;  %v555_v16 = vmov 0   ;;  %v59_v28 = vlaneseq }
   0xe   :  { %v483_v1 = vunpack.c.l.bf16 %v482_v0  ;;  %v484_v2 = vunpack.c.h.bf16 %v482_v0  ;;  %v506_v4 = vld [vmem:[%s797_s2 + $0x70] ss:$8 sps:$4 sm:$0xff]   ;;  %183 = vmatprep.subr.bf16.mxu0 %v504_v3  ;;  %v507_v7 = vld [vmem:[%s797_s2 + $0x64] ss:$8 sps:$4 sm:$0xff]   ;;  %v509_v8 = vld [vmem:[%s797_s2 + $0x60] ss:$8 sps:$4 sm:$0xff]   ;;  %215 = vmatprep.mubr.bf16.mxu0 %v555_v16 }
   0xf   :  { %184 = vmatpush1.bf16.msra.mxu0 %v506_v4  ;;  %v510_v9 = vld [vmem:[%s797_s2 + $0x54] ss:$8 sps:$4 sm:$0xff]   ;;  %v512_v10 = vld [vmem:[%s797_s2 + $0x50] ss:$8 sps:$4 sm:$0xff]   ;;  %v513_v11 = vld [vmem:[%s797_s2 + $0x44] ss:$8 sps:$4 sm:$0xff]  }
  0x10   :  { %v44_v5 = vmul.f32 %v483_v1, %v483_v1  ;;  %v45_v6 = vmul.f32 %v484_v2, %v484_v2  ;;  %185 = vmatprep.subr.bf16.mxu0 %v507_v7  ;;  %v515_v12 = vld [vmem:[%s797_s2 + $0x40] ss:$8 sps:$4 sm:$0xff]   ;;  %v516_v13 = vld [vmem:[%s797_s2 + $0x34] ss:$8 sps:$4 sm:$0xff]   ;;  %v518_v14 = vld [vmem:[%s797_s2 + $0x30] ss:$8 sps:$4 sm:$0xff]  }
  0x11   :  { %v519_v15 = vld [vmem:[%s797_s2 + $0x24] ss:$8 sps:$4 sm:$0xff]   ;;  %v521_v17 = vld [vmem:[%s797_s2 + $0x20] ss:$8 sps:$4 sm:$0xff]   ;;  %v522_v18 = vld [vmem:[%s797_s2 + $0x14] ss:$8 sps:$4 sm:$0xff]  }
  0x12   :  { %46 = vadd.xlane.f32.xlu0 %v44_v5  ;;  %v524_v19 = vld [vmem:[%s797_s2 + $0x10] ss:$8 sps:$4 sm:$0xff]   ;;  %v525_v20 = vld [vmem:[%s797_s2 + $0x4] ss:$8 sps:$4 sm:$0xff]   ;;  %v527_v21 = vld [vmem:[%s797_s2] ss:$8 sps:$4 sm:$0xff]  }
  0x13   :  { %186 = vmatpush1.bf16.msra.mxu0 %v509_v8  ;;  %v60_v29 = vshrl.u32 %v59_v28, 7  ;;  %v42_v30 = vld [vmem:[#allocation2] sm:$0x1]  ;;  %s556_s15 = smov 80   ;;  %s557_s16 = smov 112   ;;  %v696_v60 = vld [vmem:[%s799_s4 + $0x8] sm:$0xff] }
  0x14   :  { %187 = vmatprep.subr.bf16.mxu0 %v510_v9  ;;  %v43_v31 = vunpack.c.l.bf16 %v42_v30  ;;  %v82_v41 = vld [vmem:[%s798_s3] sm:$0x3]  ;;  %s558_s3 = smov 48   ;;  %s559_s17 = smov 16   ;;  %vm248_vm0 = vcmask 130048   ;;  %vm415_vm1 = vcmask 261120  }
  0x15   :  { %v61_v32 = vsub.s32 0, %v60_v29  ;;  %v83_v42 = vunpack.c.l.bf16 %v82_v41  ;;  %v91_v45 = vsub.s32 2, %v60_v29  ;;  %s560_s20 = smov 32   ;;  %s561_s21 = smov 64   ;;  %v715_v61 = vld [vmem:[%s799_s4] sm:$0xff]  ;;  %vm418_vm2 = vcmask 523264  }
  0x16   :  { %48 = vadd.xlane.f32.xlu0 %v45_v6  ;;  %s562_s22 = smov 96   ;;  %v729_v0 = vld [vmem:[%s800_s5] sm:$0xff]  ;;  %vm421_vm3 = vcmask 785408  }
  0x17   :  { %188 = vmatpush1.bf16.msra.mxu0 %v512_v10  ;;  %v62_v35 = vrot.slane %v43_v31, %v61_v32  ;;  %v88_v43 = vrot.slane %v83_v42, %v61_v32  ;;  %v92_v48 = vrot.slane %v83_v42, %v91_v45 }
  0x18   :  { %189 = vmatprep.subr.bf16.mxu0 %v513_v11 }
  0x19   :  { %v98_v44 = vrot.slane %v88_v43, %v61_v32  ;;  %v102_v51 = vrot.slane %v92_v48, %v61_v32 }
  0x1b   :  { %190 = vmatpush1.bf16.msra.mxu0 %v515_v12 }
  0x1c   :  { %191 = vmatprep.subr.bf16.mxu0 %v516_v13 }
  0x1f   :  { %192 = vmatpush1.bf16.msra.mxu0 %v518_v14 }
  0x20   :  { %193 = vmatprep.subr.bf16.mxu0 %v519_v15 }
  0x23   :  { %194 = vmatpush1.bf16.msra.mxu0 %v521_v17  ;;  %v229_v17 = vld [vmem:[%s800_s5 + $0x8] sm:$0xff] }
  0x24   :  { %195 = vmatprep.subr.bf16.mxu0 %v522_v18 }
  0x27   :  { %196 = vmatpush1.bf16.msra.mxu0 %v524_v19 }
  0x28   :  { %197 = vmatprep.subr.bf16.mxu0 %v525_v20 }
  0x2b   :  { %198 = vmatpush1.bf16.msra.mxu0 %v527_v21 }
  0x9b   :  { %v47_v22 = vpop.xlane.xlu0 %46 }
  0x9c   :  { %v51_v23 = vmul.f32 0.0078125, %v47_v22 }
  0x9e   :  { %v53_v24 = vadd.f32 1e-06, %v51_v23 }
  0x9f   :  { %v49_v25 = vpop.xlane.xlu0 %48 }
  0xa0   :  { %528 = vrsqrt.f32 %v53_v24  ;;  %v52_v26 = vmul.f32 0.0078125, %v49_v25 }
  0xa2   :  { %v54_v27 = vadd.f32 1e-06, %v52_v26 }
  0xa4   :  { %530 = vrsqrt.f32 %v54_v27 }
  0xad   :  { %v529_v33 = vpop.eup %528 }
  0xae   :  { %v57_v34 = vmul.f32 %v529_v33, %v483_v1 }
  0xb0   :  { %v63_v38 = vmul.f32 %v62_v35, %v57_v34 }
  0xb1   :  { %v531_v36 = vpop.eup %530 }
  0xb2   :  { %v58_v37 = vmul.f32 %v531_v36, %v484_v2 }
  0xb4   :  { %v64_v39 = vmul.f32 %v62_v35, %v58_v37 }
  0xb6   :  { %v65_v40 = vpack.c.bf16 %v64_v39, %v63_v38 }
  0xb8   :  { %216 = vmatmul.mubr.bf16.vlgmr.msra.gmra.mxu0 %v65_v40 }
 0x178   :  { %v217_v46 = vpop.f32.mrf.mxu0 }
 0x179   :  { %v660_v47 = vadd.f32 %v217_v46, %v98_v44 }
 0x17a   :  { %v219_v49 = vpop.f32.mrf.mxu0 }
 0x17b   :  { %299 = vrot.lane.b32.xlu1 %v660_v47, %s556_s15  ;;  %263 = vrot.lane.b32.xlu0 %v660_v47, %s557_s16  ;;  %v230_v52 = vsub.f32 0.0, %v660_v47  ;;  %v675_v57 = vadd.f32 %v219_v49, %v102_v51 }
 0x17c   :  { %v221_v50 = vpop.f32.mrf.mxu0 }
 0x17d   :  { %v667_v54 = vadd.f32 %v221_v50, %v98_v44  ;;  %v361_v59 = vsub.f32 0.0, %v675_v57 }
 0x17e   :  { %v223_v53 = vpop.f32.mrf.mxu0 }
 0x17f   :  { %v669_v55 = vadd.f32 %v223_v53, %v102_v51  ;;  %257 = vrot.lane.b32.xlu1 %v230_v52, %s556_s15  ;;  %v231_v56 = vsub.f32 0.0, %v667_v54  ;;  %v252_v19 = vmul.f32 %v696_v60, %v667_v54 }
 0x181   :  { %395 = vrot.lane.b32.xlu0 %v669_v55, %s557_s16  ;;  %v362_v58 = vsub.f32 0.0, %v669_v55  ;;  %v382_v45 = vmul.f32 %v696_v60, %v669_v55 }
 0x183   :  { %293 = vrot.lane.b32.xlu1 %v230_v52, %s558_s3 }
 0x185   :  { %329 = vrot.lane.b32.xlu0 %v231_v56, %s559_s17 }
 0x187   :  { %393 = vrot.lane.b32.xlu1 %v675_v57, %s557_s16 }
 0x189   :  { %389 = vrot.lane.b32.xlu0 %v362_v58, %s556_s15 }
 0x18b   :  { %327 = vrot.lane.b32.xlu1 %v230_v52, %s559_s17 }
 0x18d   :  { %335 = vrot.lane.b32.xlu0 %v667_v54, %s558_s3 }
 0x18f   :  { %265 = vrot.lane.b32.xlu1 %v667_v54, %s557_s16 }
 0x191   :  { %236 = vrot.lane.b32.xlu0 %v231_v56, %s557_s16 }
 0x193   :  { %301 = vrot.lane.b32.xlu1 %v667_v54, %s556_s15 }
 0x195   :  { %244 = vrot.lane.b32.xlu0 %v667_v54, %s559_s17 }
 0x197   :  { %387 = vrot.lane.b32.xlu1 %v361_v59, %s556_s15 }
 0x199   :  { %275 = vrot.lane.b32.xlu0 %v696_v60, %s560_s20 }
 0x19b   :  { %259 = vrot.lane.b32.xlu1 %v231_v56, %s556_s15 }
 0x19d   :  { %375 = vrot.lane.b32.xlu0 %v669_v55, %s559_s17 }
 0x19f   :  { %295 = vrot.lane.b32.xlu1 %v231_v56, %s558_s3 }
 0x1a1   :  { %309 = vrot.lane.b32.xlu0 %v696_v60, %s561_s21 }
 0x1a3   :  { %333 = vrot.lane.b32.xlu1 %v660_v47, %s558_s3 }
 0x1a5   :  { %343 = vrot.lane.b32.xlu0 %v696_v60, %s562_s22 }
 0x1a7   :  { %234 = vrot.lane.b32.xlu1 %v230_v52, %s557_s16 }
 0x1a9   :  { %367 = vrot.lane.b32.xlu0 %v362_v58, %s557_s16 }
 0x1ab   :  { %242 = vrot.lane.b32.xlu1 %v660_v47, %s559_s17 }
 0x1af   :  { %273 = vrot.lane.b32.xlu1 %v715_v61, %s560_s20 }
 0x1b3   :  { %365 = vrot.lane.b32.xlu1 %v361_v59, %s557_s16 }
 0x1b7   :  { %373 = vrot.lane.b32.xlu1 %v675_v57, %s559_s17 }
 0x1bb   :  { %307 = vrot.lane.b32.xlu1 %v715_v61, %s561_s21 }
 0x1bf   :  { %341 = vrot.lane.b32.xlu1 %v715_v61, %s562_s22 }
 0x1ed   :  { %v300_v62 = vpop.permute.xlu1 %299  ;;  %v264_v63 = vpop.permute.xlu0 %263 }
 0x1f1   :  { %v258_v1 = vpop.permute.xlu1 %257 }
 0x1f2   :  { %v269_v2 = vsel %vm248_vm0, %v258_v1, %v264_v63 }
 0x1f3   :  { %v281_v3 = vmul.f32 %v269_v2, %v729_v0  ;;  %v396_v4 = vpop.permute.xlu0 %395 }
 0x1f5   :  { %285 = vrot.lane.b32.xlu1 %v281_v3, %s560_s20  ;;  %v294_v5 = vpop.permute.xlu1 %293 }
 0x1f6   :  { %v305_v6 = vsel %vm248_vm0, %v294_v5, %v300_v62 }
 0x1f7   :  { %v315_v7 = vmul.f32 %v305_v6, %v729_v0  ;;  %v330_v8 = vpop.permute.xlu0 %329  ;;  %v381_v6 = vmul.f32 %v715_v61, %v675_v57 }
 0x1f9   :  { %319 = vrot.lane.b32.xlu1 %v315_v7, %s561_s21  ;;  %v394_v9 = vpop.permute.xlu1 %393 }
 0x1fb   :  { %v390_v10 = vpop.permute.xlu0 %389 }
 0x1fc   :  { %v400_v34 = vsel %vm248_vm0, %v390_v10, %v396_v4 }
 0x1fd   :  { %v328_v11 = vpop.permute.xlu1 %327  ;;  %v404_v37 = vmul.f32 %v400_v34, %v229_v17 }
 0x1ff   :  { %v336_v12 = vpop.permute.xlu0 %335 }
 0x200   :  { %v340_v40 = vsel %vm248_vm0, %v330_v8, %v336_v12  ;;  %v251_v8 = vmul.f32 %v715_v61, %v660_v47 }
 0x201   :  { %v266_v13 = vpop.permute.xlu1 %265  ;;  %v350_v42 = vmul.f32 %v340_v40, %v229_v17 }
 0x203   :  { %v237_v14 = vpop.permute.xlu0 %236 }
 0x205   :  { %v302_v15 = vpop.permute.xlu1 %301 }
 0x207   :  { %v245_v16 = vpop.permute.xlu0 %244 }
 0x208   :  { %v250_v18 = vsel %vm248_vm0, %v237_v14, %v245_v16 }
 0x209   :  { %v254_v20 = vmul.f32 %v250_v18, %v229_v17  ;;  %v388_v21 = vpop.permute.xlu1 %387 }
 0x20a   :  { %v399_v22 = vsel %vm248_vm0, %v388_v21, %v394_v9 }
 0x20b   :  { %v744_v23 = vadd.f32 %v254_v20, %v252_v19  ;;  %v403_v24 = vmul.f32 %v399_v22, %v729_v0  ;;  %v276_v25 = vpop.permute.xlu0 %275 }
 0x20c   :  { %v280_v9 = vmul.f32 %v276_v25, %v667_v54 }
 0x20d   :  { %407 = vrot.lane.b32.xlu1 %v403_v24, %s560_s20  ;;  %v260_v26 = vpop.permute.xlu1 %259 }
 0x20e   :  { %v270_v27 = vsel %vm248_vm0, %v260_v26, %v266_v13 }
 0x20f   :  { %v282_v28 = vmul.f32 %v270_v27, %v229_v17  ;;  %v376_v29 = vpop.permute.xlu0 %375 }
 0x211   :  { %287 = vrot.lane.b32.xlu0 %v282_v28, %s560_s20  ;;  %v296_v30 = vpop.permute.xlu1 %295 }
 0x212   :  { %v306_v31 = vsel %vm248_vm0, %v296_v30, %v302_v15 }
 0x213   :  { %v316_v32 = vmul.f32 %v306_v31, %v229_v17  ;;  %v310_v33 = vpop.permute.xlu0 %309 }
 0x214   :  { %v314_v12 = vmul.f32 %v310_v33, %v667_v54 }
 0x215   :  { %321 = vrot.lane.b32.xlu0 %v316_v32, %s561_s21  ;;  %v334_v35 = vpop.permute.xlu1 %333 }
 0x216   :  { %v339_v36 = vsel %vm248_vm0, %v328_v11, %v334_v35 }
 0x217   :  { %v349_v38 = vmul.f32 %v339_v36, %v729_v0  ;;  %v344_v39 = vpop.permute.xlu0 %343 }
 0x218   :  { %v348_v22 = vmul.f32 %v344_v39, %v667_v54 }
 0x219   :  { %409 = vrot.lane.b32.xlu0 %v404_v37, %s560_s20  ;;  %353 = vrot.lane.b32.xlu1 %v349_v38, %s562_s22  ;;  %v235_v41 = vpop.permute.xlu1 %234 }
 0x21b   :  { %v368_v43 = vpop.permute.xlu0 %367 }
 0x21c   :  { %v380_v44 = vsel %vm248_vm0, %v368_v43, %v376_v29 }
 0x21d   :  { %v384_v46 = vmul.f32 %v380_v44, %v229_v17  ;;  %355 = vrot.lane.b32.xlu0 %v350_v42, %s562_s22  ;;  %v243_v48 = vpop.permute.xlu1 %242 }
 0x21e   :  { %v249_v49 = vsel %vm248_vm0, %v235_v41, %v243_v48 }
 0x21f   :  { %v386_v50 = vadd.f32 %v384_v46, %v382_v45  ;;  %v253_v51 = vmul.f32 %v249_v49, %v729_v0 }
 0x221   :  { %v274_v52 = vpop.permute.xlu1 %273  ;;  %v255_v24 = vadd.f32 %v253_v51, %v251_v8 }
 0x222   :  { %v401_v4 = vmul.f32 %v274_v52, %v675_v57  ;;  %v279_v10 = vmul.f32 %v274_v52, %v660_v47 }
 0x225   :  { %v366_v53 = vpop.permute.xlu1 %365 }
 0x229   :  { %v374_v56 = vpop.permute.xlu1 %373 }
 0x22a   :  { %v379_v58 = vsel %vm248_vm0, %v366_v53, %v374_v56 }
 0x22b   :  { %v383_v59 = vmul.f32 %v379_v58, %v729_v0  ;;  %v402_v0 = vmul.f32 %v276_v25, %v669_v55 }
 0x22d   :  { %v308_v62 = vpop.permute.xlu1 %307  ;;  %v385_v11 = vadd.f32 %v383_v59, %v381_v6 }
 0x22e   :  { %v313_v13 = vmul.f32 %v308_v62, %v660_v47 }
 0x231   :  { %v342_v63 = vpop.permute.xlu1 %341 }
 0x232   :  { %v347_v14 = vmul.f32 %v342_v63, %v660_v47 }
 0x267   :  { %v286_v1 = vpop.permute.xlu1 %285 }
 0x268   :  { %v291_v17 = vadd.f32 %v286_v1, %v279_v10 }
 0x26a   :  { %v416_v29 = vsel %vm415_vm1, %v255_v24, %v291_v17 }
 0x26b   :  { %v320_v60 = vpop.permute.xlu1 %319 }
 0x26c   :  { %v325_v20 = vadd.f32 %v320_v60, %v313_v13 }
 0x26e   :  { %v419_v54 = vsel %vm418_vm2, %v416_v29, %v325_v20 }
 0x27f   :  { %v408_v3 = vpop.permute.xlu1 %407 }
 0x280   :  { %v413_v7 = vadd.f32 %v408_v3, %v401_v4 }
 0x282   :  { %v434_v18 = vsel %vm415_vm1, %v385_v11, %v413_v7 }
 0x283   :  { %v288_v2 = vpop.permute.xlu0 %287  ;;  %v436_v47 = vsel %vm418_vm2, %v434_v18, %v675_v57 }
 0x284   :  { %v292_v61 = vadd.f32 %v288_v2, %v280_v9 }
 0x286   :  { %v417_v30 = vsel %vm415_vm1, %v744_v23, %v292_v61 }
 0x287   :  { %v322_v5 = vpop.permute.xlu0 %321 }
 0x288   :  { %v326_v21 = vadd.f32 %v322_v5, %v314_v12 }
 0x28a   :  { %v420_v33 = vsel %vm418_vm2, %v417_v30, %v326_v21 }
 0x28b   :  { %v410_v15 = vpop.permute.xlu0 %409  ;;  %v354_v16 = vpop.permute.xlu1 %353 }
 0x28c   :  { %v414_v19 = vadd.f32 %v410_v15, %v402_v0  ;;  %v359_v26 = vadd.f32 %v354_v16, %v347_v14 }
 0x28e   :  { %v435_v25 = vsel %vm415_vm1, %v386_v50, %v414_v19  ;;  %v422_v57 = vsel %vm421_vm3, %v419_v54, %v359_v26 }
 0x28f   :  { %v437_v27 = vsel %vm418_vm2, %v435_v25, %v669_v55  ;;  %v356_v28 = vpop.permute.xlu0 %355 }
 0x290   :  { %v493_v31 = vpack.c.bf16 %v437_v27, %v436_v47  ;;  %v360_v32 = vadd.f32 %v356_v28, %v348_v22 }
 0x292   :  { %494 = vst [vmem:[%s802_s7] sm:$0xff] %v493_v31   ;;  %v423_v34 = vsel %vm421_vm3, %v420_v33, %v360_v32 }
 0x293   :  { %v488_v55 = vpack.c.bf16 %v423_v34, %v422_v57 }
 0x295   :  { %489 = vst [vmem:[%s801_s6] sm:$0xff] %v488_v55  }
 0x296   :  { %456 = vsyncpa [#allocation3], 1 }

// kernel: qwen_forward.10
= control target key start
LH: loop header
LB: loop body
LE: loop exit
PB: predicated region body
PF: predicated region fallthrough
CT: control target
= control target key end

     0   :  { %v518_v16 = vmov 0   ;;  %v47_v28 = vlaneseq  ;;  %s520_s13 = smov 112   ;;  %s522_s14 = smov 16   ;;  %vm236_vm0 = vcmask 130048   ;;  %vm403_vm1 = vcmask 261120   ;;  %s758_s0 = inlined_call_operand.vmem [shape: bf16[16,128], index: 0, kind: input, shape index: {}]   ;;  %s759_s2 = inlined_call_operand.vmem [shape: bf16[128,256], index: 2, kind: input, shape index: {}]   ;;  %s760_s1 = inlined_call_operand.vmem [shape: bf16[1,128], index: 1, kind: input, shape index: {}]   ;;  %s761_s3 = inlined_call_operand.vmem [shape: bf16[1,256], index: 3, kind: input, shape index: {}]   ;;  %s762_s4 = inlined_call_operand.vmem [shape: f32[16,32], index: 4, kind: input, shape index: {}]   ;;  %s763_s5 = inlined_call_operand.vmem [shape: f32[16,32], index: 5, kind: input, shape index: {}]   ;;  %s764_s7 = inlined_call_operand.vmem [shape: bf16[16,128], index: 7, kind: output, shape index: {1}]   ;;  %s765_s6 = inlined_call_operand.vmem [shape: bf16[16,128], index: 6, kind: output, shape index: {0}]  }
   0x1   :  { %v469_v0 = vld [vmem:[%s758_s0] sm:$0xff]   ;;  %v490_v3 = vld [vmem:[%s759_s2 + $0x74] ss:$8 sps:$4 sm:$0xff]   ;;  %v492_v4 = vld [vmem:[%s759_s2 + $0x70] ss:$8 sps:$4 sm:$0xff]   ;;  %203 = vmatprep.mubr.bf16.mxu0 %v518_v16  ;;  %s523_s17 = smov 32  }
   0x2   :  { %v470_v1 = vunpack.c.l.bf16 %v469_v0  ;;  %v471_v2 = vunpack.c.h.bf16 %v469_v0  ;;  %171 = vmatprep.subr.bf16.mxu0 %v490_v3  ;;  %v493_v7 = vld [vmem:[%s759_s2 + $0x64] ss:$8 sps:$4 sm:$0xff]   ;;  %v495_v8 = vld [vmem:[%s759_s2 + $0x60] ss:$8 sps:$4 sm:$0xff]   ;;  %v496_v9 = vld [vmem:[%s759_s2 + $0x54] ss:$8 sps:$4 sm:$0xff]  }
   0x3   :  { %172 = vmatpush1.bf16.msra.mxu0 %v492_v4  ;;  %v498_v10 = vld [vmem:[%s759_s2 + $0x50] ss:$8 sps:$4 sm:$0xff]   ;;  %v499_v11 = vld [vmem:[%s759_s2 + $0x44] ss:$8 sps:$4 sm:$0xff]   ;;  %v501_v12 = vld [vmem:[%s759_s2 + $0x40] ss:$8 sps:$4 sm:$0xff]  }
   0x4   :  { %v32_v5 = vmul.f32 %v470_v1, %v470_v1  ;;  %v33_v6 = vmul.f32 %v471_v2, %v471_v2  ;;  %173 = vmatprep.subr.bf16.mxu0 %v493_v7  ;;  %v502_v13 = vld [vmem:[%s759_s2 + $0x34] ss:$8 sps:$4 sm:$0xff]   ;;  %v504_v14 = vld [vmem:[%s759_s2 + $0x30] ss:$8 sps:$4 sm:$0xff]   ;;  %v505_v15 = vld [vmem:[%s759_s2 + $0x24] ss:$8 sps:$4 sm:$0xff]  }
   0x5   :  { %v507_v17 = vld [vmem:[%s759_s2 + $0x20] ss:$8 sps:$4 sm:$0xff]   ;;  %v508_v18 = vld [vmem:[%s759_s2 + $0x14] ss:$8 sps:$4 sm:$0xff]   ;;  %v510_v19 = vld [vmem:[%s759_s2 + $0x10] ss:$8 sps:$4 sm:$0xff]  }
   0x6   :  { %34 = vadd.xlane.f32.xlu0 %v32_v5  ;;  %v511_v20 = vld [vmem:[%s759_s2 + $0x4] ss:$8 sps:$4 sm:$0xff]   ;;  %v513_v21 = vld [vmem:[%s759_s2] ss:$8 sps:$4 sm:$0xff]   ;;  %v48_v29 = vshrl.u32 %v47_v28, 7  ;;  %s524_s18 = smov 64  }
   0x7   :  { %174 = vmatpush1.bf16.msra.mxu0 %v495_v8  ;;  %v30_v30 = vld [vmem:[%s760_s1] sm:$0x1]  ;;  %s519_s1 = smov 80   ;;  %v659_v60 = vld [vmem:[%s762_s4 + $0x8] sm:$0xff]  ;;  %s525_s19 = smov 96   ;;  %vm406_vm2 = vcmask 523264  }
   0x8   :  { %175 = vmatprep.subr.bf16.mxu0 %v496_v9  ;;  %v31_v31 = vunpack.c.l.bf16 %v30_v30  ;;  %v49_v32 = vsub.s32 0, %v48_v29  ;;  %v70_v41 = vld [vmem:[%s761_s3] sm:$0x3]  ;;  %v79_v45 = vsub.s32 2, %v48_v29  ;;  %s521_s3 = smov 48   ;;  %vm409_vm3 = vcmask 785408  }
   0x9   :  { %v71_v42 = vunpack.c.l.bf16 %v70_v41  ;;  %v678_v61 = vld [vmem:[%s762_s4] sm:$0xff] }
   0xa   :  { %36 = vadd.xlane.f32.xlu0 %v33_v6  ;;  %v50_v35 = vrot.slane %v31_v31, %v49_v32  ;;  %v692_v0 = vld [vmem:[%s763_s5] sm:$0xff] }
   0xb   :  { %176 = vmatpush1.bf16.msra.mxu0 %v498_v10  ;;  %v76_v43 = vrot.slane %v71_v42, %v49_v32  ;;  %v80_v48 = vrot.slane %v71_v42, %v79_v45 }
   0xc   :  { %177 = vmatprep.subr.bf16.mxu0 %v499_v11 }
   0xd   :  { %v86_v44 = vrot.slane %v76_v43, %v49_v32  ;;  %v90_v51 = vrot.slane %v80_v48, %v49_v32 }
   0xf   :  { %178 = vmatpush1.bf16.msra.mxu0 %v501_v12 }
  0x10   :  { %179 = vmatprep.subr.bf16.mxu0 %v502_v13 }
  0x13   :  { %180 = vmatpush1.bf16.msra.mxu0 %v504_v14 }
  0x14   :  { %181 = vmatprep.subr.bf16.mxu0 %v505_v15 }
  0x17   :  { %182 = vmatpush1.bf16.msra.mxu0 %v507_v17  ;;  %v217_v17 = vld [vmem:[%s763_s5 + $0x8] sm:$0xff] }
  0x18   :  { %183 = vmatprep.subr.bf16.mxu0 %v508_v18 }
  0x1b   :  { %184 = vmatpush1.bf16.msra.mxu0 %v510_v19 }
  0x1c   :  { %185 = vmatprep.subr.bf16.mxu0 %v511_v20 }
  0x1f   :  { %186 = vmatpush1.bf16.msra.mxu0 %v513_v21 }
  0x8f   :  { %v35_v22 = vpop.xlane.xlu0 %34 }
  0x90   :  { %v39_v23 = vmul.f32 0.0078125, %v35_v22 }
  0x92   :  { %v41_v24 = vadd.f32 1e-06, %v39_v23 }
  0x93   :  { %v37_v25 = vpop.xlane.xlu0 %36 }
  0x94   :  { %514 = vrsqrt.f32 %v41_v24  ;;  %v40_v26 = vmul.f32 0.0078125, %v37_v25 }
  0x96   :  { %v42_v27 = vadd.f32 1e-06, %v40_v26 }
  0x98   :  { %516 = vrsqrt.f32 %v42_v27 }
  0xa1   :  { %v515_v33 = vpop.eup %514 }
  0xa2   :  { %v45_v34 = vmul.f32 %v515_v33, %v470_v1 }
  0xa4   :  { %v51_v38 = vmul.f32 %v50_v35, %v45_v34 }
  0xa5   :  { %v517_v36 = vpop.eup %516 }
  0xa6   :  { %v46_v37 = vmul.f32 %v517_v36, %v471_v2 }
  0xa8   :  { %v52_v39 = vmul.f32 %v50_v35, %v46_v37 }
  0xaa   :  { %v53_v40 = vpack.c.bf16 %v52_v39, %v51_v38 }
  0xac   :  { %204 = vmatmul.mubr.bf16.vlgmr.msra.gmra.mxu0 %v53_v40 }
 0x16c   :  { %v205_v46 = vpop.f32.mrf.mxu0 }
 0x16d   :  { %v623_v47 = vadd.f32 %v205_v46, %v86_v44 }
 0x16e   :  { %v207_v49 = vpop.f32.mrf.mxu0 }
 0x16f   :  { %287 = vrot.lane.b32.xlu1 %v623_v47, %s519_s1  ;;  %251 = vrot.lane.b32.xlu0 %v623_v47, %s520_s13  ;;  %v218_v52 = vsub.f32 0.0, %v623_v47  ;;  %v638_v57 = vadd.f32 %v207_v49, %v90_v51 }
 0x170   :  { %v209_v50 = vpop.f32.mrf.mxu0 }
 0x171   :  { %v630_v54 = vadd.f32 %v209_v50, %v86_v44  ;;  %v349_v59 = vsub.f32 0.0, %v638_v57 }
 0x172   :  { %v211_v53 = vpop.f32.mrf.mxu0 }
 0x173   :  { %v632_v55 = vadd.f32 %v211_v53, %v90_v51  ;;  %245 = vrot.lane.b32.xlu1 %v218_v52, %s519_s1  ;;  %v219_v56 = vsub.f32 0.0, %v630_v54  ;;  %v240_v19 = vmul.f32 %v659_v60, %v630_v54 }
 0x175   :  { %383 = vrot.lane.b32.xlu0 %v632_v55, %s520_s13  ;;  %v350_v58 = vsub.f32 0.0, %v632_v55  ;;  %v370_v45 = vmul.f32 %v659_v60, %v632_v55 }
 0x177   :  { %281 = vrot.lane.b32.xlu1 %v218_v52, %s521_s3 }
 0x179   :  { %317 = vrot.lane.b32.xlu0 %v219_v56, %s522_s14 }
 0x17b   :  { %381 = vrot.lane.b32.xlu1 %v638_v57, %s520_s13 }
 0x17d   :  { %377 = vrot.lane.b32.xlu0 %v350_v58, %s519_s1 }
 0x17f   :  { %315 = vrot.lane.b32.xlu1 %v218_v52, %s522_s14 }
 0x181   :  { %323 = vrot.lane.b32.xlu0 %v630_v54, %s521_s3 }
 0x183   :  { %253 = vrot.lane.b32.xlu1 %v630_v54, %s520_s13 }
 0x185   :  { %224 = vrot.lane.b32.xlu0 %v219_v56, %s520_s13 }
 0x187   :  { %289 = vrot.lane.b32.xlu1 %v630_v54, %s519_s1 }
 0x189   :  { %232 = vrot.lane.b32.xlu0 %v630_v54, %s522_s14 }
 0x18b   :  { %375 = vrot.lane.b32.xlu1 %v349_v59, %s519_s1 }
 0x18d   :  { %263 = vrot.lane.b32.xlu0 %v659_v60, %s523_s17 }
 0x18f   :  { %247 = vrot.lane.b32.xlu1 %v219_v56, %s519_s1 }
 0x191   :  { %363 = vrot.lane.b32.xlu0 %v632_v55, %s522_s14 }
 0x193   :  { %283 = vrot.lane.b32.xlu1 %v219_v56, %s521_s3 }
 0x195   :  { %297 = vrot.lane.b32.xlu0 %v659_v60, %s524_s18 }
 0x197   :  { %321 = vrot.lane.b32.xlu1 %v623_v47, %s521_s3 }
 0x199   :  { %331 = vrot.lane.b32.xlu0 %v659_v60, %s525_s19 }
 0x19b   :  { %222 = vrot.lane.b32.xlu1 %v218_v52, %s520_s13 }
 0x19d   :  { %355 = vrot.lane.b32.xlu0 %v350_v58, %s520_s13 }
 0x19f   :  { %230 = vrot.lane.b32.xlu1 %v623_v47, %s522_s14 }
 0x1a3   :  { %261 = vrot.lane.b32.xlu1 %v678_v61, %s523_s17 }
 0x1a7   :  { %353 = vrot.lane.b32.xlu1 %v349_v59, %s520_s13 }
 0x1ab   :  { %361 = vrot.lane.b32.xlu1 %v638_v57, %s522_s14 }
 0x1af   :  { %295 = vrot.lane.b32.xlu1 %v678_v61, %s524_s18 }
 0x1b3   :  { %329 = vrot.lane.b32.xlu1 %v678_v61, %s525_s19 }
 0x1e1   :  { %v288_v62 = vpop.permute.xlu1 %287  ;;  %v252_v63 = vpop.permute.xlu0 %251 }
 0x1e5   :  { %v246_v1 = vpop.permute.xlu1 %245 }
 0x1e6   :  { %v257_v2 = vsel %vm236_vm0, %v246_v1, %v252_v63 }
 0x1e7   :  { %v269_v3 = vmul.f32 %v257_v2, %v692_v0  ;;  %v384_v4 = vpop.permute.xlu0 %383 }
 0x1e9   :  { %273 = vrot.lane.b32.xlu1 %v269_v3, %s523_s17  ;;  %v282_v5 = vpop.permute.xlu1 %281 }
 0x1ea   :  { %v293_v6 = vsel %vm236_vm0, %v282_v5, %v288_v62 }
 0x1eb   :  { %v303_v7 = vmul.f32 %v293_v6, %v692_v0  ;;  %v318_v8 = vpop.permute.xlu0 %317  ;;  %v369_v6 = vmul.f32 %v678_v61, %v638_v57 }
 0x1ed   :  { %307 = vrot.lane.b32.xlu1 %v303_v7, %s524_s18  ;;  %v382_v9 = vpop.permute.xlu1 %381 }
 0x1ef   :  { %v378_v10 = vpop.permute.xlu0 %377 }
 0x1f0   :  { %v388_v34 = vsel %vm236_vm0, %v378_v10, %v384_v4 }
 0x1f1   :  { %v316_v11 = vpop.permute.xlu1 %315  ;;  %v392_v37 = vmul.f32 %v388_v34, %v217_v17 }
 0x1f3   :  { %v324_v12 = vpop.permute.xlu0 %323 }
 0x1f4   :  { %v328_v40 = vsel %vm236_vm0, %v318_v8, %v324_v12  ;;  %v239_v8 = vmul.f32 %v678_v61, %v623_v47 }
 0x1f5   :  { %v254_v13 = vpop.permute.xlu1 %253  ;;  %v338_v42 = vmul.f32 %v328_v40, %v217_v17 }
 0x1f7   :  { %v225_v14 = vpop.permute.xlu0 %224 }
 0x1f9   :  { %v290_v15 = vpop.permute.xlu1 %289 }
 0x1fb   :  { %v233_v16 = vpop.permute.xlu0 %232 }
 0x1fc   :  { %v238_v18 = vsel %vm236_vm0, %v225_v14, %v233_v16 }
 0x1fd   :  { %v242_v20 = vmul.f32 %v238_v18, %v217_v17  ;;  %v376_v21 = vpop.permute.xlu1 %375 }
 0x1fe   :  { %v387_v22 = vsel %vm236_vm0, %v376_v21, %v382_v9 }
 0x1ff   :  { %v707_v23 = vadd.f32 %v242_v20, %v240_v19  ;;  %v391_v24 = vmul.f32 %v387_v22, %v692_v0  ;;  %v264_v25 = vpop.permute.xlu0 %263 }
 0x200   :  { %v268_v9 = vmul.f32 %v264_v25, %v630_v54 }
 0x201   :  { %395 = vrot.lane.b32.xlu1 %v391_v24, %s523_s17  ;;  %v248_v26 = vpop.permute.xlu1 %247 }
 0x202   :  { %v258_v27 = vsel %vm236_vm0, %v248_v26, %v254_v13 }
 0x203   :  { %v270_v28 = vmul.f32 %v258_v27, %v217_v17  ;;  %v364_v29 = vpop.permute.xlu0 %363 }
 0x205   :  { %275 = vrot.lane.b32.xlu0 %v270_v28, %s523_s17  ;;  %v284_v30 = vpop.permute.xlu1 %283 }
 0x206   :  { %v294_v31 = vsel %vm236_vm0, %v284_v30, %v290_v15 }
 0x207   :  { %v304_v32 = vmul.f32 %v294_v31, %v217_v17  ;;  %v298_v33 = vpop.permute.xlu0 %297 }
 0x208   :  { %v302_v12 = vmul.f32 %v298_v33, %v630_v54 }
 0x209   :  { %309 = vrot.lane.b32.xlu0 %v304_v32, %s524_s18  ;;  %v322_v35 = vpop.permute.xlu1 %321 }
 0x20a   :  { %v327_v36 = vsel %vm236_vm0, %v316_v11, %v322_v35 }
 0x20b   :  { %v337_v38 = vmul.f32 %v327_v36, %v692_v0  ;;  %v332_v39 = vpop.permute.xlu0 %331 }
 0x20c   :  { %v336_v22 = vmul.f32 %v332_v39, %v630_v54 }
 0x20d   :  { %397 = vrot.lane.b32.xlu0 %v392_v37, %s523_s17  ;;  %341 = vrot.lane.b32.xlu1 %v337_v38, %s525_s19  ;;  %v223_v41 = vpop.permute.xlu1 %222 }
 0x20f   :  { %v356_v43 = vpop.permute.xlu0 %355 }
 0x210   :  { %v368_v44 = vsel %vm236_vm0, %v356_v43, %v364_v29 }
 0x211   :  { %v372_v46 = vmul.f32 %v368_v44, %v217_v17  ;;  %343 = vrot.lane.b32.xlu0 %v338_v42, %s525_s19  ;;  %v231_v48 = vpop.permute.xlu1 %230 }
 0x212   :  { %v237_v49 = vsel %vm236_vm0, %v223_v41, %v231_v48 }
 0x213   :  { %v374_v50 = vadd.f32 %v372_v46, %v370_v45  ;;  %v241_v51 = vmul.f32 %v237_v49, %v692_v0 }
 0x215   :  { %v262_v52 = vpop.permute.xlu1 %261  ;;  %v243_v24 = vadd.f32 %v241_v51, %v239_v8 }
 0x216   :  { %v389_v4 = vmul.f32 %v262_v52, %v638_v57  ;;  %v267_v10 = vmul.f32 %v262_v52, %v623_v47 }
 0x219   :  { %v354_v53 = vpop.permute.xlu1 %353 }
 0x21d   :  { %v362_v56 = vpop.permute.xlu1 %361 }
 0x21e   :  { %v367_v58 = vsel %vm236_vm0, %v354_v53, %v362_v56 }
 0x21f   :  { %v371_v59 = vmul.f32 %v367_v58, %v692_v0  ;;  %v390_v0 = vmul.f32 %v264_v25, %v632_v55 }
 0x221   :  { %v296_v62 = vpop.permute.xlu1 %295  ;;  %v373_v11 = vadd.f32 %v371_v59, %v369_v6 }
 0x222   :  { %v301_v13 = vmul.f32 %v296_v62, %v623_v47 }
 0x225   :  { %v330_v63 = vpop.permute.xlu1 %329 }
 0x226   :  { %v335_v14 = vmul.f32 %v330_v63, %v623_v47 }
 0x25b   :  { %v274_v1 = vpop.permute.xlu1 %273 }
 0x25c   :  { %v279_v17 = vadd.f32 %v274_v1, %v267_v10 }
 0x25e   :  { %v404_v29 = vsel %vm403_vm1, %v243_v24, %v279_v17 }
 0x25f   :  { %v308_v60 = vpop.permute.xlu1 %307 }
 0x260   :  { %v313_v20 = vadd.f32 %v308_v60, %v301_v13 }
 0x262   :  { %v407_v54 = vsel %vm406_vm2, %v404_v29, %v313_v20 }
 0x273   :  { %v396_v3 = vpop.permute.xlu1 %395 }
 0x274   :  { %v401_v7 = vadd.f32 %v396_v3, %v389_v4 }
 0x276   :  { %v422_v18 = vsel %vm403_vm1, %v373_v11, %v401_v7 }
 0x277   :  { %v276_v2 = vpop.permute.xlu0 %275  ;;  %v424_v47 = vsel %vm406_vm2, %v422_v18, %v638_v57 }
 0x278   :  { %v280_v61 = vadd.f32 %v276_v2, %v268_v9 }
 0x27a   :  { %v405_v30 = vsel %vm403_vm1, %v707_v23, %v280_v61 }
 0x27b   :  { %v310_v5 = vpop.permute.xlu0 %309 }
 0x27c   :  { %v314_v21 = vadd.f32 %v310_v5, %v302_v12 }
 0x27e   :  { %v408_v33 = vsel %vm406_vm2, %v405_v30, %v314_v21 }
 0x27f   :  { %v398_v15 = vpop.permute.xlu0 %397  ;;  %v342_v16 = vpop.permute.xlu1 %341 }
 0x280   :  { %v402_v19 = vadd.f32 %v398_v15, %v390_v0  ;;  %v347_v26 = vadd.f32 %v342_v16, %v335_v14 }
 0x282   :  { %v423_v25 = vsel %vm403_vm1, %v374_v50, %v402_v19  ;;  %v410_v57 = vsel %vm409_vm3, %v407_v54, %v347_v26 }
 0x283   :  { %v425_v27 = vsel %vm406_vm2, %v423_v25, %v632_v55  ;;  %v344_v28 = vpop.permute.xlu0 %343 }
 0x284   :  { %v480_v31 = vpack.c.bf16 %v425_v27, %v424_v47  ;;  %v348_v32 = vadd.f32 %v344_v28, %v336_v22 }
 0x286   :  { %481 = vst [vmem:[%s764_s7] sm:$0xff] %v480_v31   ;;  %v411_v34 = vsel %vm409_vm3, %v408_v33, %v348_v32 }
 0x287   :  { %v475_v55 = vpack.c.bf16 %v411_v34, %v410_v57 }
 0x289   :  { %476 = vst [vmem:[%s765_s6] sm:$0xff] %v475_v55  }

// kernel: qwen_forward.9
= control target key start
LH: loop header
LB: loop body
LE: loop exit
PB: predicated region body
PF: predicated region fallthrough
CT: control target
= control target key end

     0   :  { %12 = vsyncpa [#allocation3], 0  ;;  %s928_s24 = smov [#allocation2]   ;;  %s1121_s0 = inlined_call_operand.vmem [shape: bf16[16,128], index: 0, kind: input, shape index: {}]   ;;  %s1122_s1 = inlined_call_operand.vmem [shape: bf16[128,128], index: 1, kind: input, shape index: {}]   ;;  %s1123_s2 = inlined_call_operand.vmem [shape: bf16[16,128], index: 2, kind: input, shape index: {}]   ;;  %s1124_s3 = inlined_call_operand.vmem [shape: bf16[1,128], index: 3, kind: input, shape index: {}]   ;;  %s1125_s4 = inlined_call_operand.vmem [shape: bf16[128,256], index: 4, kind: input, shape index: {}]   ;;  %s1126_s5 = inlined_call_operand.vmem [shape: bf16[128,256], index: 5, kind: input, shape index: {}]   ;;  %s1127_s6 = inlined_call_operand.hbm [shape: bf16[256,128], index: 6, kind: input, shape index: {}]   ;;  %s1128_s7 = inlined_call_operand.vmem [shape: bf16[16,128], index: 7, kind: output, shape index: {}]  }
   0x1   :  { %s30_s25 = sshll.u32 %s928_s24, 4  ;;  %s31_s25 = int_to_ptr.vmem [resolvable:$true] %s30_s25 }
   0x2   :  { %s914_s26 = scalar_lea.vmem %s31_s25, 2048  ;;  %p919_p1 = scmp.lt.s32.totalorder %s31_s25, %s31_s25 }
   0x3   :  { %p915_p0 = scmp.ne.s32.totalorder %s31_s25, %s914_s26  ;;  %p920_p2 = scmp.lt.s32.totalorder %s914_s26, %s914_s26 }
   0x5   :  { %p921_p3 = por %p920_p2, %p919_p1 }
   0x7   :  { %p922_p4 = pnand %p921_p3, %p915_p0 }
   0x9   :  { %925 = shalt.err (!%p922_p4)
}
   0xa   :  { %s929_s27 = smov 64   ;;  %s930_s28 = smov 4  }
   0xb   :  { %36 = dma.hbm_to_vmem [thread:$0]  %s1127_s6, 2048, %s31_s25, [#allocation3], %s929_s27, %s929_s27, %s930_s28  }
   0xc   :  { %926 = dma.done.wait [#allocation3], 2048  }
   0xd   :  { %927 = vsyncadd [#allocation3], 4294965248  ;;  %v931_v0 = vmov 0.0   ;;  %vm932_vm0 = vmmov 0   ;;  %v813_v1 = vld [vmem:[%s1122_s1 + $0x38] sm:$0xff]   ;;  %v814_v2 = vld [vmem:[%s1122_s1 + $0x30] sm:$0xff]   ;;  %v177_v60 = vlaneseq }
   0xe   :  { %787 = vmatprep.subr.bf16.mxu0 %v931_v0  ;;  %803 = vmatprep.mubr.msk.bf16.mxu0 %vm932_vm0, %v931_v0  ;;  %v815_v3 = vld [vmem:[%s1122_s1 + $0x28] sm:$0xff]   ;;  %v816_v4 = vld [vmem:[%s1122_s1 + $0x20] sm:$0xff]   ;;  %v817_v5 = vld [vmem:[%s1122_s1 + $0x18] sm:$0xff]   ;;  %v933_v47 = vmov 0  }
   0xf   :  { %788 = vmatpush3.bf16.msra.mxu0 %v813_v1  ;;  %v818_v6 = vld [vmem:[%s1122_s1 + $0x10] sm:$0xff]   ;;  %v819_v7 = vld [vmem:[%s1122_s1 + $0x8] sm:$0xff]   ;;  %v820_v8 = vld [vmem:[%s1122_s1] sm:$0xff]   ;;  %312 = vmatprep.mubr.bf16.mxu1 %v933_v47  ;;  %v178_v61 = vshrl.u32 %v177_v60, 7 }
  0x10   :  { %789 = vmatprep.subr.bf16.mxu0 %v931_v0  ;;  %v821_v9 = vld [vmem:[%s1121_s0] sm:$0xff]   ;;  %v822_v10 = vld [vmem:[%s1125_s4 + $0x74] ss:$8 sps:$4 sm:$0xff]   ;;  %v824_v11 = vld [vmem:[%s1126_s5 + $0x70] ss:$8 sps:$4 sm:$0xff]  }
  0x11   :  { %v826_v12 = vld [vmem:[%s1126_s5 + $0x74] ss:$8 sps:$4 sm:$0xff]   ;;  %v827_v13 = vld [vmem:[%s1125_s4 + $0x70] ss:$8 sps:$4 sm:$0xff]   ;;  %280 = vmatprep.subr.bf16.mxu1 %v822_v10  ;;  %v748_v14 = vld [vmem:[%s1123_s2] sm:$0xff]  }
  0x12   :  { %281 = vmatpush1.bf16.msra.mxu1 %v827_v13  ;;  %v749_v15 = vunpack.c.l.bf16 %v748_v14  ;;  %v750_v18 = vunpack.c.h.bf16 %v748_v14  ;;  %v828_v25 = vld [vmem:[%s1125_s4 + $0x64] ss:$8 sps:$4 sm:$0xff]   ;;  %v830_v27 = vld [vmem:[%s1126_s5 + $0x60] ss:$8 sps:$4 sm:$0xff]   ;;  %v834_v29 = vld [vmem:[%s1125_s4 + $0x54] ss:$8 sps:$4 sm:$0xff]  }
  0x13   :  { %790 = vmatpush3.bf16.msra.mxu0 %v814_v2  ;;  %v832_v26 = vld [vmem:[%s1126_s5 + $0x64] ss:$8 sps:$4 sm:$0xff]   ;;  %v833_v28 = vld [vmem:[%s1125_s4 + $0x60] ss:$8 sps:$4 sm:$0xff]   ;;  %282 = vmatprep.subr.bf16.mxu1 %v828_v25  ;;  %v838_v30 = vld [vmem:[%s1126_s5 + $0x54] ss:$8 sps:$4 sm:$0xff]  }
  0x14   :  { %791 = vmatprep.subr.bf16.mxu0 %v931_v0  ;;  %v836_v31 = vld [vmem:[%s1126_s5 + $0x50] ss:$8 sps:$4 sm:$0xff]   ;;  %v840_v33 = vld [vmem:[%s1125_s4 + $0x44] ss:$8 sps:$4 sm:$0xff]   ;;  %v842_v35 = vld [vmem:[%s1126_s5 + $0x40] ss:$8 sps:$4 sm:$0xff]  }
  0x15   :  { %v839_v32 = vld [vmem:[%s1125_s4 + $0x50] ss:$8 sps:$4 sm:$0xff]   ;;  %v844_v34 = vld [vmem:[%s1126_s5 + $0x44] ss:$8 sps:$4 sm:$0xff]   ;;  %v845_v36 = vld [vmem:[%s1125_s4 + $0x40] ss:$8 sps:$4 sm:$0xff]  }
  0x16   :  { %283 = vmatpush1.bf16.msra.mxu1 %v833_v28  ;;  %v846_v37 = vld [vmem:[%s1125_s4 + $0x34] ss:$8 sps:$4 sm:$0xff]   ;;  %v848_v39 = vld [vmem:[%s1126_s5 + $0x30] ss:$8 sps:$4 sm:$0xff]   ;;  %v852_v41 = vld [vmem:[%s1125_s4 + $0x24] ss:$8 sps:$4 sm:$0xff]  }
  0x17   :  { %792 = vmatpush3.bf16.msra.mxu0 %v815_v3  ;;  %284 = vmatprep.subr.bf16.mxu1 %v834_v29  ;;  %v850_v38 = vld [vmem:[%s1126_s5 + $0x34] ss:$8 sps:$4 sm:$0xff]   ;;  %v851_v40 = vld [vmem:[%s1125_s4 + $0x30] ss:$8 sps:$4 sm:$0xff]   ;;  %v856_v42 = vld [vmem:[%s1126_s5 + $0x24] ss:$8 sps:$4 sm:$0xff]  }
  0x18   :  { %793 = vmatprep.subr.bf16.mxu0 %v931_v0  ;;  %v854_v43 = vld [vmem:[%s1126_s5 + $0x20] ss:$8 sps:$4 sm:$0xff]   ;;  %v858_v45 = vld [vmem:[%s1125_s4 + $0x14] ss:$8 sps:$4 sm:$0xff]   ;;  %v860_v48 = vld [vmem:[%s1126_s5 + $0x10] ss:$8 sps:$4 sm:$0xff]  }
  0x19   :  { %v857_v44 = vld [vmem:[%s1125_s4 + $0x20] ss:$8 sps:$4 sm:$0xff]   ;;  %v862_v46 = vld [vmem:[%s1126_s5 + $0x14] ss:$8 sps:$4 sm:$0xff]   ;;  %v863_v49 = vld [vmem:[%s1125_s4 + $0x10] ss:$8 sps:$4 sm:$0xff]  }
  0x1a   :  { %285 = vmatpush1.bf16.msra.mxu1 %v839_v32  ;;  %v864_v50 = vld [vmem:[%s1125_s4 + $0x4] ss:$8 sps:$4 sm:$0xff]   ;;  %v866_v52 = vld [vmem:[%s1126_s5] ss:$8 sps:$4 sm:$0xff]   ;;  %v871_v10 = vld [vmem:[#allocation2 + $0x38] sm:$0xff]  }
  0x1b   :  { %794 = vmatpush3.bf16.msra.mxu0 %v816_v4  ;;  %286 = vmatprep.subr.bf16.mxu1 %v840_v33  ;;  %v868_v51 = vld [vmem:[%s1126_s5 + $0x4] ss:$8 sps:$4 sm:$0xff]   ;;  %v869_v53 = vld [vmem:[%s1125_s4] ss:$8 sps:$4 sm:$0xff]  }
  0x1c   :  { %795 = vmatprep.subr.bf16.mxu0 %v931_v0  ;;  %v160_v62 = vld [vmem:[%s1124_s3] sm:$0x1]  ;;  %v874_v13 = vld [vmem:[#allocation2 + $0x68] sm:$0xff]  }
  0x1d   :  { %v161_v63 = vunpack.c.l.bf16 %v160_v62  ;;  %v875_v14 = vld [vmem:[#allocation2 + $0x28] sm:$0xff]   ;;  %v884_v25 = vld [vmem:[#allocation2 + $0x40] sm:$0xff]  }
  0x1e   :  { %287 = vmatpush1.bf16.msra.mxu1 %v845_v36 }
  0x1f   :  { %796 = vmatpush3.bf16.msra.mxu0 %v817_v5  ;;  %288 = vmatprep.subr.bf16.mxu1 %v846_v37 }
  0x20   :  { %797 = vmatprep.subr.bf16.mxu0 %v931_v0 }
  0x22   :  { %289 = vmatpush1.bf16.msra.mxu1 %v851_v40 }
  0x23   :  { %798 = vmatpush3.bf16.msra.mxu0 %v818_v6  ;;  %290 = vmatprep.subr.bf16.mxu1 %v852_v41 }
  0x24   :  { %799 = vmatprep.subr.bf16.mxu0 %v931_v0 }
  0x26   :  { %291 = vmatpush1.bf16.msra.mxu1 %v857_v44 }
  0x27   :  { %800 = vmatpush3.bf16.msra.mxu0 %v819_v7  ;;  %292 = vmatprep.subr.bf16.mxu1 %v858_v45 }
  0x28   :  { %801 = vmatprep.subr.bf16.mxu0 %v931_v0  ;;  %v179_v0 = vsub.s32 0, %v178_v61 }
  0x2a   :  { %293 = vmatpush1.bf16.msra.mxu1 %v863_v49  ;;  %v180_v3 = vrot.slane %v161_v63, %v179_v0 }
  0x2b   :  { %802 = vmatpush3.bf16.msra.mxu0 %v820_v8  ;;  %294 = vmatprep.subr.bf16.mxu1 %v864_v50 }
  0x2c   :  { %419 = vmatprep.subr.bf16.mxu0 %v826_v12  ;;  %v873_v12 = vld [vmem:[#allocation2 + $0x30] sm:$0xff]  }
  0x2e   :  { %804 = vmatmul.mubr.bf16.vlgmr.msra.gmra.mxu0 %v821_v9  ;;  %295 = vmatpush1.bf16.msra.mxu1 %v869_v53  ;;  %v870_v9 = vld [vmem:[#allocation2 + $0x78] sm:$0xff]  }
  0x2f   :  { %420 = vmatpush1.bf16.msra.mxu0 %v824_v11  ;;  %451 = vmatprep.mubr.bf16.mxu0 %v933_v47  ;;  %v872_v11 = vld [vmem:[#allocation2 + $0x70] sm:$0xff]  }
  0x30   :  { %421 = vmatprep.subr.bf16.mxu0 %v832_v26  ;;  %765 = vmatprep.subr.bf16.mxu1 %v870_v9  ;;  %v885_v26 = vld [vmem:[#allocation2] sm:$0xff]  }
  0x33   :  { %422 = vmatpush1.bf16.msra.mxu0 %v830_v27 }
  0x34   :  { %423 = vmatprep.subr.bf16.mxu0 %v838_v30 }
  0x37   :  { %424 = vmatpush1.bf16.msra.mxu0 %v836_v31 }
  0x38   :  { %425 = vmatprep.subr.bf16.mxu0 %v844_v34 }
  0x3b   :  { %426 = vmatpush1.bf16.msra.mxu0 %v842_v35 }
  0x3c   :  { %427 = vmatprep.subr.bf16.mxu0 %v850_v38 }
  0x3f   :  { %428 = vmatpush1.bf16.msra.mxu0 %v848_v39 }
  0x40   :  { %429 = vmatprep.subr.bf16.mxu0 %v856_v42 }
  0x43   :  { %430 = vmatpush1.bf16.msra.mxu0 %v854_v43 }
  0x44   :  { %431 = vmatprep.subr.bf16.mxu0 %v862_v46 }
  0x47   :  { %432 = vmatpush1.bf16.msra.mxu0 %v860_v48 }
  0x48   :  { %433 = vmatprep.subr.bf16.mxu0 %v868_v51 }
  0x4b   :  { %434 = vmatpush1.bf16.msra.mxu0 %v866_v52 }
  0xee   :  { %v151_v16 = vpop.f32.mrf.mxu0 }
  0xef   :  { %v1019_v17 = vadd.f32 %v749_v15, %v151_v16  ;;  %v876_v15 = vld [vmem:[#allocation2 + $0x60] sm:$0xff]  }
  0xf0   :  { %v805_v19 = vpop.f32.mrf.mxu0  ;;  %v877_v16 = vld [vmem:[#allocation2 + $0x20] sm:$0xff]  }
  0xf1   :  { %v162_v20 = vmul.f32 %v1019_v17, %v1019_v17  ;;  %v879_v19 = vld [vmem:[#allocation2 + $0x18] sm:$0xff]  }
  0xf2   :  { %v154_v21 = vpop.f32.mrf.mxu0 }
  0xf3   :  { %v1023_v22 = vadd.f32 %v750_v18, %v154_v21  ;;  %164 = vadd.xlane.f32.xlu0 %v162_v20  ;;  %v878_v18 = vld [vmem:[#allocation2 + $0x58] sm:$0xff]   ;;  %v880_v20 = vld [vmem:[#allocation2 + $0x50] sm:$0xff]  }
  0xf4   :  { %v806_v23 = vpop.f32.mrf.mxu0  ;;  %v881_v21 = vld [vmem:[#allocation2 + $0x10] sm:$0xff]  }
  0xf5   :  { %v163_v24 = vmul.f32 %v1023_v22, %v1023_v22  ;;  %v882_v23 = vld [vmem:[#allocation2 + $0x48] sm:$0xff]  }
  0xf7   :  { %166 = vadd.xlane.f32.xlu0 %v163_v24  ;;  %v883_v24 = vld [vmem:[#allocation2 + $0x8] sm:$0xff]  }
 0x17c   :  { %v165_v54 = vpop.xlane.xlu0 %164 }
 0x17d   :  { %v169_v55 = vmul.f32 0.0078125, %v165_v54 }
 0x17f   :  { %v171_v56 = vadd.f32 1e-06, %v169_v55 }
 0x180   :  { %v167_v57 = vpop.xlane.xlu0 %166 }
 0x181   :  { %886 = vrsqrt.f32 %v171_v56  ;;  %v170_v58 = vmul.f32 0.0078125, %v167_v57 }
 0x183   :  { %v172_v59 = vadd.f32 1e-06, %v170_v58 }
 0x185   :  { %888 = vrsqrt.f32 %v172_v59 }
 0x18e   :  { %v887_v1 = vpop.eup %886 }
 0x18f   :  { %v175_v2 = vmul.f32 %v887_v1, %v1019_v17 }
 0x191   :  { %v181_v6 = vmul.f32 %v180_v3, %v175_v2 }
 0x192   :  { %v889_v4 = vpop.eup %888 }
 0x193   :  { %v176_v5 = vmul.f32 %v889_v4, %v1023_v22 }
 0x195   :  { %v182_v7 = vmul.f32 %v180_v3, %v176_v5 }
 0x197   :  { %v183_v8 = vpack.c.bf16 %v182_v7, %v181_v6 }
 0x199   :  { %313 = vmatmul.mubr.bf16.vlgmr.msra.gmra.mxu1 %v183_v8  ;;  %452 = vmatmul.mubr.bf16.vlgmr.msra.gmra.mxu0 %v183_v8 }
 0x19a   :  { %766 = vmatpush3.bf16.msra.mxu1 %v871_v10 }
 0x19b   :  { %767 = vmatprep.subr.bf16.mxu1 %v872_v11 }
 0x19e   :  { %768 = vmatpush3.bf16.msra.mxu1 %v873_v12 }
 0x19f   :  { %769 = vmatprep.subr.bf16.mxu1 %v874_v13 }
 0x1a2   :  { %770 = vmatpush3.bf16.msra.mxu1 %v875_v14 }
 0x1a3   :  { %771 = vmatprep.subr.bf16.mxu1 %v876_v15 }
 0x1a6   :  { %772 = vmatpush3.bf16.msra.mxu1 %v877_v16 }
 0x1a7   :  { %773 = vmatprep.subr.bf16.mxu1 %v878_v18 }
 0x1aa   :  { %774 = vmatpush3.bf16.msra.mxu1 %v879_v19 }
 0x1ab   :  { %775 = vmatprep.subr.bf16.mxu1 %v880_v20 }
 0x1ae   :  { %776 = vmatpush3.bf16.msra.mxu1 %v881_v21 }
 0x1af   :  { %777 = vmatprep.subr.bf16.mxu1 %v882_v23 }
 0x1b2   :  { %778 = vmatpush3.bf16.msra.mxu1 %v883_v24 }
 0x1b3   :  { %779 = vmatprep.subr.bf16.mxu1 %v884_v25 }
 0x1b6   :  { %780 = vmatpush3.bf16.msra.mxu1 %v885_v26 }
 0x259   :  { %v314_v27 = vpop.f32.mrf.mxu1  ;;  %v453_v43 = vpop.f32.mrf.mxu0 }
 0x25a   :  { %v723_v28 = vmul.f32 -1.442695, %v314_v27 }
 0x25b   :  { %v316_v29 = vpop.f32.mrf.mxu1  ;;  %v455_v44 = vpop.f32.mrf.mxu0 }
 0x25c   :  { %890 = vpow2.f32 %v723_v28  ;;  %v724_v30 = vmul.f32 -1.442695, %v316_v29 }
 0x25d   :  { %v318_v31 = vpop.f32.mrf.mxu1  ;;  %v457_v48 = vpop.f32.mrf.mxu0 }
 0x25e   :  { %892 = vpow2.f32 %v724_v30  ;;  %v725_v32 = vmul.f32 -1.442695, %v318_v31 }
 0x25f   :  { %v320_v33 = vpop.f32.mrf.mxu1  ;;  %v459_v55 = vpop.f32.mrf.mxu0 }
 0x260   :  { %894 = vpow2.f32 %v725_v32  ;;  %v726_v34 = vmul.f32 -1.442695, %v320_v33 }
 0x262   :  { %896 = vpow2.f32 %v726_v34 }
 0x269   :  { %v891_v35 = vpop.eup %890 }
 0x26a   :  { %v474_v37 = vadd.f32 1.0, %v891_v35 }
 0x26b   :  { %v893_v36 = vpop.eup %892 }
 0x26c   :  { %v475_v38 = vadd.f32 1.0, %v893_v36 }
 0x26d   :  { %v895_v39 = vpop.eup %894 }
 0x26e   :  { %898 = vrcp.f32 %v475_v38  ;;  %v476_v40 = vadd.f32 1.0, %v895_v39 }
 0x26f   :  { %v897_v41 = vpop.eup %896  ;;  %900 = vrcp.f32 %v474_v37 }
 0x270   :  { %902 = vrcp.f32 %v476_v40  ;;  %v477_v42 = vadd.f32 1.0, %v897_v41 }
 0x272   :  { %904 = vrcp.f32 %v477_v42 }
 0x27b   :  { %v899_v45 = vpop.eup %898 }
 0x27c   :  { %v901_v46 = vpop.eup %900  ;;  %v487_v49 = vmul.f32 %v899_v45, %v316_v29 }
 0x27d   :  { %v903_v47 = vpop.eup %902  ;;  %v486_v52 = vmul.f32 %v901_v46, %v314_v27 }
 0x27e   :  { %v488_v50 = vmul.f32 %v903_v47, %v318_v31  ;;  %v491_v56 = vmul.f32 %v487_v49, %v455_v44 }
 0x27f   :  { %v905_v51 = vpop.eup %904  ;;  %v490_v58 = vmul.f32 %v486_v52, %v453_v43 }
 0x280   :  { %v489_v53 = vmul.f32 %v905_v51, %v320_v33  ;;  %v492_v54 = vmul.f32 %v488_v50, %v457_v48 }
 0x282   :  { %v493_v57 = vmul.f32 %v489_v53, %v459_v55  ;;  %v494_v60 = vpack.c.bf16 %v492_v54, %v490_v58 }
 0x284   :  { %v495_v59 = vpack.c.bf16 %v493_v57, %v491_v56 }
 0x286   :  { %656 = vmatprep.mubr.bf16.mxu1 %v495_v59 }
 0x287   :  { %657 = vmatmul.mubr.bf16.vlgmr.msra.gmra.mxu1 %v494_v60 }
 0x347   :  { %v781_v61 = vpop.f32.mrf.mxu1 }
 0x349   :  { %v782_v62 = vpop.f32.mrf.mxu1 }
 0x34a   :  { %v783_v0 = vadd.f32 %v782_v62, %v781_v61 }
 0x34b   :  { %v784_v63 = vpop.f32.mrf.mxu1 }
 0x34c   :  { %v665_v3 = vadd.f32 %v783_v0, %v1019_v17 }
 0x34d   :  { %v785_v1 = vpop.f32.mrf.mxu1 }
 0x34e   :  { %v786_v2 = vadd.f32 %v785_v1, %v784_v63 }
 0x350   :  { %v666_v4 = vadd.f32 %v786_v2, %v1023_v22 }
 0x352   :  { %v754_v5 = vpack.c.bf16 %v666_v4, %v665_v3 }
 0x354   :  { %755 = vst [vmem:[%s1128_s7] sm:$0xff] %v754_v5  }
 0x355   :  { %681 = vsyncpa [#allocation3], 1 }

// kernel: qwen_forward.8
= control target key start
LH: loop header
LB: loop body
LE: loop exit
PB: predicated region body
PF: predicated region fallthrough
CT: control target
= control target key end

     0   :  { %s1110_s12 = smov 0   ;;  %s1207_s0 = inlined_call_operand.vmem [shape: bf16[2,8,128], index: 0, kind: input, shape index: {}]   ;;  %s1208_s1 = inlined_call_operand.vmem [shape: bf16[2,8,128], index: 1, kind: input, shape index: {}]   ;;  %s1209_s2 = inlined_call_operand.vmem [shape: f32[2,1,8], index: 2, kind: input, shape index: {}]   ;;  %s1210_s3 = inlined_call_operand.vmem [shape: bf16[2,8,128], index: 3, kind: output, shape index: {}]  }
   0x1 LB: > { %s962_s13 = sadd.s32 4294967295, %s1082_s12   ;;  %p966_p0 = scmp.ge.s32.totalorder %s1082_s12, 1  ;;  %s1082_s12 = sphi %s1110_s12, %s13_s12  }
   0x2   : > { %p153_p1 = scmp.lt.s32.totalorder %s1082_s12, 3 }
   0x4   : > { %p154_p2 = pnand %p966_p0, %p153_p1 }
   0x5   : > { %p182_p3 = scmp.lt.s32.totalorder (!%p154_p2), %s962_s13, 1  ;;  %s1087_s24 = smov (!%p154_p2), 64  }
   0x6   : > { %157 = sbr.rel (%p154_p2) target bundleno = 1362 (0x552), region = 32  ;;  %s1088_s25 = smov (!%p154_p2), 96  }
   0x7   : > { %s1089_s26 = smov (!%p154_p2), 32  }
   0xb   : > { %v1084_v0 = vmov 0.0   ;;  %vm1085_vm0 = vmmov 0   ;;  %s1212_s13 = smov (!%p182_p3, %s962_s13), 1  ;;  %vm215_vm1 = vcmask 261120   ;;  %v202_v5 = vlaneseq }
   0xc   : > { %1001 = vmatprep.subr.mxu0 %v1084_v0  ;;  %1003 = vmatprep.mubr.msk.f32.mxu0 %vm1085_vm0, %v1084_v0  ;;  %s1124_s14 = sshll.u32 %s1212_s13, 2  ;;  %s192_s23 = scalar_lea.vmem %s1209_s2, %s1212_s13  ;;  %v1086_v9 = vmov -1e+09   ;;  %vm294_vm3 = vcmask 64512   ;;  %vm882_vm4 = vcmask 523264   ;;  %vm884_vm5 = vcmask 785408  }
   0xd   : > { %1006 = vmatprep.subr.mxu1 %v1084_v0  ;;  %1008 = vmatprep.mubr.msk.f32.mxu1 %vm1085_vm0, %v1084_v0  ;;  %s189_s17 = scalar_lea.vmem %s1208_s1, %s1124_s14  ;;  %s185_s20 = scalar_lea.vmem %s1207_s0, %s1124_s14  ;;  %v203_v6 = vshrl.u32 %v202_v5, 7  ;;  %v205_v7 = vand.u32 127, %v202_v5  ;;  %v970_v8 = vld [vmem:[%s192_s23] ss:$0 sm:$0xff] }
   0xe   : > { %v199_v1 = vld [vmem:[%s189_s17] sm:$0xf]  ;;  %s196_s29 = scalar_lea.vmem %s1210_s3, %s1124_s14 }
   0xf   : > { %v197_v2 = vld [vmem:[%s185_s20] sm:$0xf]  ;;  %v1134_v3 = vunpack.c.l.bf16 %v199_v1  ;;  %vm206_vm2 = vcmp.ge.s32.totalorder %v203_v6, %v205_v7 }
  0x10   : > { %v198_v4 = vunpack.c.l.bf16 %v197_v2  ;;  %v207_v10 = vsel %vm206_vm2, 0.0, %v1086_v9 }
  0x11   : > { %1002 = vmatpush3.xpose.msk.msra.mxu0 %vm215_vm1, %v1134_v3  ;;  %v1145_v11 = vadd.f32 %v970_v8, %v207_v10  ;;  %306 = vrot.lane.b32.xlu1 %v1134_v3, %s1087_s24 }
  0x12   : > { %1016 = vmatprep.subr.mxu0 %v1084_v0  ;;  %v1055_v17 = vpack.i.bf16 %v1134_v3, %v198_v4 }
  0x14   : > { %1004 = vmatmul.mubr.msk.f32.vlgmr.msra.gmra.mxu0 %vm215_vm1, %v198_v4 }
  0x15   : > { %1018 = vmatprep.mubr.msk.f32.mxu0 %vm1085_vm0, %v1084_v0  ;;  %1056 = vrot.lane.b32.xlu1 %v1055_v17, %s1088_s25 }
  0x19   : > { %709 = vrot.lane.b32.xlu1 %v198_v4, %s1089_s26 }
  0x83   : > { %v307_v23 = vpop.permute.xlu1 %306 }
  0x84   : > { %1007 = vmatpush3.msra.mxu1 %v307_v23  ;;  %1017 = vmatpush3.msra.mxu0 %v307_v23 }
  0x85   : > { %1011 = vmatprep.subr.mxu1 %v1084_v0  ;;  %1026 = vmatprep.subr.mxu0 %v1084_v0 }
  0x87   : > { %v1057_v26 = vpop.permute.xlu1 %1056 }
  0x88   : > { %v1058_v28 = vunpack.i.l.bf16 %v1057_v26  ;;  %v1059_v29 = vunpack.i.h.bf16 %v1057_v26 }
  0x8b   : > { %v710_v31 = vpop.permute.xlu1 %709 }
  0xd4   : > { %v288_v12 = vpop.f32.mrf.mxu0 }
  0xd5   : > { %v292_v13 = vmul.f32 0.17677669, %v288_v12 }
  0xd6   : > { %v1005_v14 = vpop.f32.mrf.mxu0 }
  0xd7   : > { %v293_v15 = vadd.f32 %v292_v13, %v1145_v11 }
  0xd9   : > { %v295_v16 = vsel %vm294_vm3, %v293_v15, -inf }
  0xda   : > { %296 = vmax.xlane.f32.xlu0 %v295_v16 }
 0x163   : > { %v297_v18 = vpop.xlane.xlu0 %296 }
 0x164   : > { %v298_v19 = vsub.f32 %v293_v15, %v297_v18 }
 0x166   : > { %v299_v20 = vmul.f32 1.442695, %v298_v19 }
 0x168   : > { %1060 = vpow2.f32 %v299_v20 }
 0x175   : > { %v1061_v21 = vpop.eup %1060 }
 0x176   : > { %v301_v22 = vsel %vm294_vm3, %v1061_v21, 0.0 }
 0x177   : > { %302 = vadd.xlane.f32.xlu0 %v301_v22 }
 0x18d   : > { %542 = vrot.lane.b32.xlu0 %v198_v4, %s1087_s24 }
 0x200   : > { %v303_v24 = vpop.xlane.xlu0 %302 }
 0x201   : > { %1062 = vrcp.f32 %v303_v24 }
 0x204   : > { %v543_v30 = vpop.permute.xlu0 %542 }
 0x20e   : > { %v1063_v25 = vpop.eup %1062 }
 0x20f   : > { %v305_v27 = vmul.f32 %v1063_v25, %v1061_v21 }
 0x211   : > { %1009 = vmatmul.mubr.msk.f32.vlgmr.msra.gmra.mxu1 %vm294_vm3, %v305_v27 }
 0x212   : > { %1012 = vmatpush3.xpose.msk.msra.mxu1 %vm215_vm1, %v1134_v3  ;;  %1013 = vmatprep.mubr.msk.f32.mxu1 %vm1085_vm0, %v1084_v0 }
 0x213   : > { %1021 = vmatprep.subr.mxu1 %v1084_v0 }
 0x215   : > { %1014 = vmatmul.mubr.msk.f32.vlgmr.msra.gmra.mxu1 %vm215_vm1, %v1058_v28 }
 0x216   : > { %1022 = vmatpush3.xpose.msk.msra.mxu1 %vm215_vm1, %v1059_v29  ;;  %1023 = vmatprep.mubr.msk.f32.mxu1 %vm1085_vm0, %v1084_v0 }
 0x217   : > { %1031 = vmatprep.subr.mxu1 %v1084_v0 }
 0x219   : > { %1024 = vmatmul.mubr.msk.f32.vlgmr.msra.gmra.mxu1 %vm215_vm1, %v543_v30 }
 0x21a   : > { %1032 = vmatpush3.xpose.msk.msra.mxu1 %vm215_vm1, %v1059_v29  ;;  %1033 = vmatprep.mubr.msk.f32.mxu1 %vm1085_vm0, %v1084_v0 }
 0x21d   : > { %1034 = vmatmul.mubr.msk.f32.vlgmr.msra.gmra.mxu1 %vm215_vm1, %v710_v31 }
 0x2d1   : > { %v1174_v32 = vpop.f32.mrf.mxu1 }
 0x2d3   : > { %v1010_v33 = vpop.f32.mrf.mxu1 }
 0x2d5   : > { %v452_v34 = vpop.f32.mrf.mxu1 }
 0x2d6   : > { %v456_v35 = vmul.f32 0.17677669, %v452_v34 }
 0x2d7   : > { %v1015_v36 = vpop.f32.mrf.mxu1 }
 0x2d8   : > { %v457_v37 = vadd.f32 %v456_v35, %v1145_v11 }
 0x2d9   : > { %v616_v38 = vpop.f32.mrf.mxu1 }
 0x2da   : > { %v620_v39 = vmul.f32 0.17677669, %v616_v38  ;;  %v458_v40 = vsel %vm294_vm3, %v457_v37, -inf }
 0x2db   : > { %459 = vmax.xlane.f32.xlu1 %v458_v40  ;;  %v1025_v41 = vpop.f32.mrf.mxu1 }
 0x2dc   : > { %v621_v42 = vadd.f32 %v620_v39, %v1145_v11 }
 0x2dd   : > { %v779_v43 = vpop.f32.mrf.mxu1 }
 0x2de   : > { %v783_v44 = vmul.f32 0.17677669, %v779_v43  ;;  %v622_v45 = vsel %vm294_vm3, %v621_v42, -inf }
 0x2df   : > { %623 = vmax.xlane.f32.xlu0 %v622_v45  ;;  %v1035_v46 = vpop.f32.mrf.mxu1 }
 0x2e0   : > { %v784_v47 = vadd.f32 %v783_v44, %v1145_v11 }
 0x2e2   : > { %v785_v48 = vsel %vm294_vm3, %v784_v47, -inf }
 0x2e3   : > { %786 = vmax.xlane.f32.xlu1 %v785_v48 }
 0x2f5   : > { %633 = vrot.lane.b32.xlu0 %v1134_v3, %s1089_s26 }
 0x364   : > { %v460_v49 = vpop.xlane.xlu1 %459 }
 0x365   : > { %v461_v50 = vsub.f32 %v457_v37, %v460_v49 }
 0x367   : > { %v462_v51 = vmul.f32 1.442695, %v461_v50 }
 0x368   : > { %v624_v52 = vpop.xlane.xlu0 %623 }
 0x369   : > { %1064 = vpow2.f32 %v462_v51  ;;  %v625_v53 = vsub.f32 %v621_v42, %v624_v52 }
 0x36b   : > { %v626_v54 = vmul.f32 1.442695, %v625_v53 }
 0x36c   : > { %v787_v55 = vpop.xlane.xlu1 %786  ;;  %v634_v5 = vpop.permute.xlu0 %633 }
 0x36d   : > { %1066 = vpow2.f32 %v626_v54  ;;  %v788_v56 = vsub.f32 %v784_v47, %v787_v55 }
 0x36f   : > { %v789_v57 = vmul.f32 1.442695, %v788_v56 }
 0x371   : > { %1068 = vpow2.f32 %v789_v57 }
 0x376   : > { %v1065_v58 = vpop.eup %1064 }
 0x377   : > { %v464_v59 = vsel %vm294_vm3, %v1065_v58, 0.0 }
 0x378   : > { %465 = vadd.xlane.f32.xlu1 %v464_v59 }
 0x37a   : > { %v1067_v60 = vpop.eup %1066 }
 0x37b   : > { %v628_v61 = vsel %vm294_vm3, %v1067_v60, 0.0 }
 0x37c   : > { %629 = vadd.xlane.f32.xlu1 %v628_v61 }
 0x37e   : > { %v1069_v62 = vpop.eup %1068 }
 0x37f   : > { %v791_v63 = vsel %vm294_vm3, %v1069_v62, 0.0 }
 0x380   : > { %792 = vadd.xlane.f32.xlu1 %v791_v63 }
 0x401   : > { %v466_v1 = vpop.xlane.xlu1 %465 }
 0x402   : > { %1070 = vrcp.f32 %v466_v1 }
 0x405   : > { %v630_v2 = vpop.xlane.xlu1 %629 }
 0x406   : > { %1072 = vrcp.f32 %v630_v2 }
 0x409   : > { %v793_v3 = vpop.xlane.xlu1 %792 }
 0x40a   : > { %1074 = vrcp.f32 %v793_v3 }
 0x40f   : > { %v1071_v4 = vpop.eup %1070 }
 0x410   : > { %v468_v6 = vmul.f32 %v1071_v4, %v1065_v58 }
 0x412   : > { %1019 = vmatmul.mubr.msk.f32.vlgmr.msra.gmra.mxu0 %vm294_vm3, %v468_v6 }
 0x413   : > { %v1073_v7 = vpop.eup %1072  ;;  %1027 = vmatpush3.msra.mxu0 %v634_v5  ;;  %1028 = vmatprep.mubr.msk.f32.mxu0 %vm1085_vm0, %v1084_v0 }
 0x414   : > { %1036 = vmatprep.subr.mxu0 %v1084_v0  ;;  %v632_v8 = vmul.f32 %v1073_v7, %v1067_v60 }
 0x416   : > { %1029 = vmatmul.mubr.msk.f32.vlgmr.msra.gmra.mxu0 %vm294_vm3, %v632_v8 }
 0x417   : > { %v1075_v9 = vpop.eup %1074  ;;  %1037 = vmatpush3.msra.mxu0 %v634_v5  ;;  %1038 = vmatprep.mubr.msk.f32.mxu0 %vm1085_vm0, %v1084_v0 }
 0x418   : > { %v795_v10 = vmul.f32 %v1075_v9, %v1069_v62 }
 0x41a   : > { %1039 = vmatmul.mubr.msk.f32.vlgmr.msra.gmra.mxu0 %vm294_vm3, %v795_v10 }
 0x4d2   : > { %v538_v11 = vpop.f32.mrf.mxu0 }
 0x4d3   : > { %870 = vrot.lane.b32.xlu1 %v538_v11, %s1089_s26 }
 0x4d4   : > { %v1020_v12 = vpop.f32.mrf.mxu0 }
 0x4d6   : > { %v705_v13 = vpop.f32.mrf.mxu0 }
 0x4d7   : > { %874 = vrot.lane.b32.xlu1 %v705_v13, %s1087_s24 }
 0x4d8   : > { %v1030_v14 = vpop.f32.mrf.mxu0 }
 0x4da   : > { %v865_v15 = vpop.f32.mrf.mxu0 }
 0x4db   : > { %878 = vrot.lane.b32.xlu0 %v865_v15, %s1088_s25 }
 0x4dc   : > { %v1040_v16 = vpop.f32.mrf.mxu0 }
 0x545   : > { %v871_v17 = vpop.permute.xlu1 %870 }
 0x546   : > { %v881_v0 = vsel %vm215_vm1, %v1174_v32, %v871_v17 }
 0x549   : > { %v875_v18 = vpop.permute.xlu1 %874 }
 0x54a   : > { %v883_v19 = vsel %vm882_vm4, %v881_v0, %v875_v18 }
 0x54d   : > { %v879_v20 = vpop.permute.xlu0 %878 }
 0x54e   : > { %v885_v21 = vsel %vm884_vm5, %v883_v19, %v879_v20 }
 0x54f   : > { %v886_v22 = vpack.c.bf16 %v885_v21, %v885_v21 }
 0x551   : > { %887 = vst [vmem:[%s196_s29] sm:$0xf] %v886_v22 }
 0x552 PF: > { %s13_s12 = sadd.s32 1, %s1082_s12  }
 0x553   : > { %p10_p4 = scmp.ge.s32.totalorder %s13_s12, 4  }
 0x555   :  { %12 = sbr.rel (!%p10_p4) target bundleno = 1 (0x1), region = 68 }

// kernel: qwen_forward.13
= control target key start
LH: loop header
LB: loop body
LE: loop exit
PB: predicated region body
PF: predicated region fallthrough
CT: control target
= control target key end

     0   :  { %s358_s0 = inlined_call_operand.vmem [shape: bf16[16,128], index: 0, kind: input, shape index: {}]   ;;  %s359_s1 = inlined_call_operand.vmem [shape: bf16[1,128], index: 1, kind: input, shape index: {}]   ;;  %s360_s2 = inlined_call_operand.vmem [shape: bf16[128,256], index: 2, kind: input, shape index: {}]   ;;  %s361_s3 = inlined_call_operand.hbm [shape: f32[16,256], index: 3, kind: output, shape index: {}]  }
   0x1   :  { %v220_v0 = vld [vmem:[%s358_s0] sm:$0xff]   ;;  %v227_v3 = vld [vmem:[%s360_s2 + $0x74] ss:$8 sps:$4 sm:$0xff]   ;;  %v229_v4 = vld [vmem:[%s360_s2 + $0x70] ss:$8 sps:$4 sm:$0xff]  }
   0x2   :  { %v221_v1 = vunpack.c.l.bf16 %v220_v0  ;;  %v222_v2 = vunpack.c.h.bf16 %v220_v0  ;;  %140 = vmatprep.subr.bf16.mxu0 %v227_v3 }
   0x3   :  { %141 = vmatpush1.bf16.msra.mxu0 %v229_v4 }
   0x4   :  { %v22_v5 = vmul.f32 %v221_v1, %v221_v1  ;;  %v23_v6 = vmul.f32 %v222_v2, %v222_v2 }
   0x6   :  { %24 = vadd.xlane.f32.xlu0 %v22_v5 }
   0x7   :  { %8 = vsyncpa [#allocation3], 0  ;;  %v230_v7 = vld [vmem:[%s360_s2 + $0x64] ss:$8 sps:$4 sm:$0xff]   ;;  %v232_v8 = vld [vmem:[%s360_s2 + $0x60] ss:$8 sps:$4 sm:$0xff]   ;;  %v37_v28 = vlaneseq }
   0x8   :  { %142 = vmatprep.subr.bf16.mxu0 %v230_v7  ;;  %v233_v9 = vld [vmem:[%s360_s2 + $0x54] ss:$8 sps:$4 sm:$0xff]   ;;  %v235_v10 = vld [vmem:[%s360_s2 + $0x50] ss:$8 sps:$4 sm:$0xff]   ;;  %v236_v11 = vld [vmem:[%s360_s2 + $0x44] ss:$8 sps:$4 sm:$0xff]  }
   0x9   :  { %143 = vmatpush1.bf16.msra.mxu0 %v232_v8  ;;  %v238_v12 = vld [vmem:[%s360_s2 + $0x40] ss:$8 sps:$4 sm:$0xff]   ;;  %v239_v13 = vld [vmem:[%s360_s2 + $0x34] ss:$8 sps:$4 sm:$0xff]   ;;  %v241_v14 = vld [vmem:[%s360_s2 + $0x30] ss:$8 sps:$4 sm:$0xff]  }
   0xa   :  { %26 = vadd.xlane.f32.xlu0 %v23_v6  ;;  %144 = vmatprep.subr.bf16.mxu0 %v233_v9  ;;  %v242_v15 = vld [vmem:[%s360_s2 + $0x24] ss:$8 sps:$4 sm:$0xff]   ;;  %v277_v16 = vmov 0   ;;  %v244_v17 = vld [vmem:[%s360_s2 + $0x20] ss:$8 sps:$4 sm:$0xff]   ;;  %v38_v29 = vshrl.u32 %v37_v28, 7 }
   0xb   :  { %172 = vmatprep.mubr.bf16.mxu0 %v277_v16  ;;  %v245_v18 = vld [vmem:[%s360_s2 + $0x14] ss:$8 sps:$4 sm:$0xff]   ;;  %v247_v19 = vld [vmem:[%s360_s2 + $0x10] ss:$8 sps:$4 sm:$0xff]   ;;  %v248_v20 = vld [vmem:[%s360_s2 + $0x4] ss:$8 sps:$4 sm:$0xff]  }
   0xc   :  { %v250_v21 = vld [vmem:[%s360_s2] ss:$8 sps:$4 sm:$0xff]   ;;  %v39_v32 = vsub.s32 0, %v38_v29  ;;  %s278_s2 = smov [#allocation2]  }
   0xd   :  { %145 = vmatpush1.bf16.msra.mxu0 %v235_v10  ;;  %v20_v30 = vld [vmem:[%s359_s1] sm:$0x1]  ;;  %s192_s0 = sshll.u32 %s278_s2, 4  ;;  %s193_s0 = int_to_ptr.vmem [resolvable:$true] %s192_s0 }
   0xe   :  { %146 = vmatprep.subr.bf16.mxu0 %v236_v11  ;;  %v21_v31 = vunpack.c.l.bf16 %v20_v30  ;;  %s255_s1 = scalar_lea.vmem %s193_s0, 512  ;;  %p260_p1 = scmp.lt.s32.totalorder %s193_s0, %s193_s0 }
   0xf   :  { %p256_p0 = scmp.ne.s32.totalorder %s193_s0, %s255_s1  ;;  %p261_p2 = scmp.lt.s32.totalorder %s255_s1, %s255_s1 }
  0x10   :  { %v40_v35 = vrot.slane %v21_v31, %v39_v32 }
  0x11   :  { %147 = vmatpush1.bf16.msra.mxu0 %v238_v12  ;;  %p262_p3 = por %p261_p2, %p260_p1 }
  0x12   :  { %148 = vmatprep.subr.bf16.mxu0 %v239_v13 }
  0x13   :  { %p263_p4 = pnand %p262_p3, %p256_p0 }
  0x15   :  { %149 = vmatpush1.bf16.msra.mxu0 %v241_v14 }
  0x16   :  { %150 = vmatprep.subr.bf16.mxu0 %v242_v15 }
  0x19   :  { %151 = vmatpush1.bf16.msra.mxu0 %v244_v17 }
  0x1a   :  { %152 = vmatprep.subr.bf16.mxu0 %v245_v18 }
  0x1d   :  { %153 = vmatpush1.bf16.msra.mxu0 %v247_v19 }
  0x1e   :  { %154 = vmatprep.subr.bf16.mxu0 %v248_v20 }
  0x21   :  { %155 = vmatpush1.bf16.msra.mxu0 %v250_v21 }
  0x8f   :  { %v25_v22 = vpop.xlane.xlu0 %24 }
  0x90   :  { %v29_v23 = vmul.f32 0.0078125, %v25_v22 }
  0x92   :  { %v31_v24 = vadd.f32 1e-06, %v29_v23 }
  0x93   :  { %v27_v25 = vpop.xlane.xlu0 %26 }
  0x94   :  { %251 = vrsqrt.f32 %v31_v24  ;;  %v30_v26 = vmul.f32 0.0078125, %v27_v25 }
  0x96   :  { %v32_v27 = vadd.f32 1e-06, %v30_v26 }
  0x98   :  { %253 = vrsqrt.f32 %v32_v27 }
  0xa1   :  { %v252_v33 = vpop.eup %251 }
  0xa2   :  { %v35_v34 = vmul.f32 %v252_v33, %v221_v1 }
  0xa4   :  { %v41_v38 = vmul.f32 %v40_v35, %v35_v34 }
  0xa5   :  { %v254_v36 = vpop.eup %253 }
  0xa6   :  { %v36_v37 = vmul.f32 %v254_v36, %v222_v2 }
  0xa8   :  { %v42_v39 = vmul.f32 %v40_v35, %v36_v37 }
  0xaa   :  { %v43_v40 = vpack.c.bf16 %v42_v39, %v41_v38 }
  0xac   :  { %173 = vmatmul.mubr.bf16.vlgmr.msra.gmra.mxu0 %v43_v40 }
 0x16c   :  { %v174_v41 = vpop.f32.mrf.mxu0 }
 0x16d   :  { %183 = vst [vmem:[#allocation2] sm:$0xff] %v174_v41 }
 0x16e   :  { %v176_v42 = vpop.f32.mrf.mxu0 }
 0x16f   :  { %184 = vst [vmem:[#allocation2 + $0x8] sm:$0xff] %v176_v42 }
 0x170   :  { %v178_v43 = vpop.f32.mrf.mxu0 }
 0x171   :  { %185 = vst [vmem:[#allocation2 + $0x10] sm:$0xff] %v178_v43 }
 0x172   :  { %v180_v44 = vpop.f32.mrf.mxu0 }
 0x173   :  { %186 = vst [vmem:[#allocation2 + $0x18] sm:$0xff] %v180_v44 }
 0x174   :  { %266 = shalt.err (!%p263_p4)
}
 0x175   :  { %s279_s20 = smov 256   ;;  %s280_s21 = smov 16  }
 0x176   :  { %198 = dma.vmem_to_hbm [thread:$0]  %s193_s0, 512, %s361_s3, [#allocation3], %s279_s20, %s279_s20, %s280_s21  }
 0x177   :  { %275 = dma.done.wait [#allocation3], 512  }
 0x178   :  { %276 = vsyncadd [#allocation3], 4294966784 }
 0x179   :  { %202 = vsyncpa [#allocation3], 1 }

// kernel: qwen_forward.12
= control target key start
LH: loop header
LB: loop body
LE: loop exit
PB: predicated region body
PF: predicated region fallthrough
CT: control target
= control target key end

     0   :  { %v888_v0 = vmov 0.0   ;;  %vm889_vm0 = vmmov 0   ;;  %v890_v47 = vmov 0   ;;  %v163_v60 = vlaneseq  ;;  %s1123_s1 = inlined_call_operand.vmem [shape: bf16[128,128], index: 1, kind: input, shape index: {}]   ;;  %s1124_s0 = inlined_call_operand.vmem [shape: bf16[16,128], index: 0, kind: input, shape index: {}]   ;;  %s1125_s4 = inlined_call_operand.vmem [shape: bf16[128,256], index: 4, kind: input, shape index: {}]   ;;  %s1126_s5 = inlined_call_operand.vmem [shape: bf16[128,256], index: 5, kind: input, shape index: {}]   ;;  %s1127_s2 = inlined_call_operand.vmem [shape: bf16[16,128], index: 2, kind: input, shape index: {}]   ;;  %s1128_s3 = inlined_call_operand.vmem [shape: bf16[1,128], index: 3, kind: input, shape index: {}]   ;;  %s1129_s6 = inlined_call_operand.vmem [shape: bf16[256,128], index: 6, kind: input, shape index: {}]   ;;  %s1130_s7 = inlined_call_operand.vmem [shape: bf16[16,128], index: 7, kind: output, shape index: {}]  }
   0x1   :  { %772 = vmatprep.subr.bf16.mxu0 %v888_v0  ;;  %v795_v1 = vld [vmem:[%s1123_s1 + $0x38] sm:$0xff]   ;;  %788 = vmatprep.mubr.msk.bf16.mxu0 %vm889_vm0, %v888_v0  ;;  %v796_v2 = vld [vmem:[%s1123_s1 + $0x30] sm:$0xff]   ;;  %v797_v3 = vld [vmem:[%s1123_s1 + $0x28] sm:$0xff]  }
   0x2   :  { %773 = vmatpush3.bf16.msra.mxu0 %v795_v1  ;;  %v798_v4 = vld [vmem:[%s1123_s1 + $0x20] sm:$0xff]   ;;  %v799_v5 = vld [vmem:[%s1123_s1 + $0x18] sm:$0xff]   ;;  %v800_v6 = vld [vmem:[%s1123_s1 + $0x10] sm:$0xff]   ;;  %298 = vmatprep.mubr.bf16.mxu1 %v890_v47  ;;  %v164_v61 = vshrl.u32 %v163_v60, 7 }
   0x3   :  { %774 = vmatprep.subr.bf16.mxu0 %v888_v0  ;;  %v801_v7 = vld [vmem:[%s1123_s1 + $0x8] sm:$0xff]   ;;  %v802_v8 = vld [vmem:[%s1123_s1] sm:$0xff]   ;;  %v804_v10 = vld [vmem:[%s1125_s4 + $0x74] ss:$8 sps:$4 sm:$0xff]  }
   0x4   :  { %v803_v9 = vld [vmem:[%s1124_s0] sm:$0xff]   ;;  %v806_v11 = vld [vmem:[%s1126_s5 + $0x70] ss:$8 sps:$4 sm:$0xff]   ;;  %266 = vmatprep.subr.bf16.mxu1 %v804_v10  ;;  %v808_v12 = vld [vmem:[%s1126_s5 + $0x74] ss:$8 sps:$4 sm:$0xff]  }
   0x5   :  { %v809_v13 = vld [vmem:[%s1125_s4 + $0x70] ss:$8 sps:$4 sm:$0xff]   ;;  %v733_v14 = vld [vmem:[%s1127_s2] sm:$0xff]   ;;  %v816_v29 = vld [vmem:[%s1125_s4 + $0x54] ss:$8 sps:$4 sm:$0xff]  }
   0x6   :  { %775 = vmatpush3.bf16.msra.mxu0 %v796_v2  ;;  %267 = vmatpush1.bf16.msra.mxu1 %v809_v13  ;;  %v734_v15 = vunpack.c.l.bf16 %v733_v14  ;;  %v735_v18 = vunpack.c.h.bf16 %v733_v14  ;;  %v810_v25 = vld [vmem:[%s1125_s4 + $0x64] ss:$8 sps:$4 sm:$0xff]   ;;  %v812_v27 = vld [vmem:[%s1126_s5 + $0x60] ss:$8 sps:$4 sm:$0xff]   ;;  %v820_v30 = vld [vmem:[%s1126_s5 + $0x54] ss:$8 sps:$4 sm:$0xff]  }
   0x7   :  { %776 = vmatprep.subr.bf16.mxu0 %v888_v0  ;;  %v814_v26 = vld [vmem:[%s1126_s5 + $0x64] ss:$8 sps:$4 sm:$0xff]   ;;  %v815_v28 = vld [vmem:[%s1125_s4 + $0x60] ss:$8 sps:$4 sm:$0xff]   ;;  %268 = vmatprep.subr.bf16.mxu1 %v810_v25  ;;  %v818_v31 = vld [vmem:[%s1126_s5 + $0x50] ss:$8 sps:$4 sm:$0xff]  }
   0x8   :  { %v821_v32 = vld [vmem:[%s1125_s4 + $0x50] ss:$8 sps:$4 sm:$0xff]   ;;  %v822_v33 = vld [vmem:[%s1125_s4 + $0x44] ss:$8 sps:$4 sm:$0xff]   ;;  %v824_v35 = vld [vmem:[%s1126_s5 + $0x40] ss:$8 sps:$4 sm:$0xff]  }
   0x9   :  { %v826_v34 = vld [vmem:[%s1126_s5 + $0x44] ss:$8 sps:$4 sm:$0xff]   ;;  %v827_v36 = vld [vmem:[%s1125_s4 + $0x40] ss:$8 sps:$4 sm:$0xff]   ;;  %v828_v37 = vld [vmem:[%s1125_s4 + $0x34] ss:$8 sps:$4 sm:$0xff]  }
   0xa   :  { %777 = vmatpush3.bf16.msra.mxu0 %v797_v3  ;;  %269 = vmatpush1.bf16.msra.mxu1 %v815_v28  ;;  %v832_v38 = vld [vmem:[%s1126_s5 + $0x34] ss:$8 sps:$4 sm:$0xff]   ;;  %v830_v39 = vld [vmem:[%s1126_s5 + $0x30] ss:$8 sps:$4 sm:$0xff]   ;;  %v834_v41 = vld [vmem:[%s1125_s4 + $0x24] ss:$8 sps:$4 sm:$0xff]  }
   0xb   :  { %778 = vmatprep.subr.bf16.mxu0 %v888_v0  ;;  %270 = vmatprep.subr.bf16.mxu1 %v816_v29  ;;  %v833_v40 = vld [vmem:[%s1125_s4 + $0x30] ss:$8 sps:$4 sm:$0xff]   ;;  %v838_v42 = vld [vmem:[%s1126_s5 + $0x24] ss:$8 sps:$4 sm:$0xff]   ;;  %v836_v43 = vld [vmem:[%s1126_s5 + $0x20] ss:$8 sps:$4 sm:$0xff]  }
   0xc   :  { %v839_v44 = vld [vmem:[%s1125_s4 + $0x20] ss:$8 sps:$4 sm:$0xff]   ;;  %v840_v45 = vld [vmem:[%s1125_s4 + $0x14] ss:$8 sps:$4 sm:$0xff]   ;;  %v842_v48 = vld [vmem:[%s1126_s5 + $0x10] ss:$8 sps:$4 sm:$0xff]  }
   0xd   :  { %v844_v46 = vld [vmem:[%s1126_s5 + $0x14] ss:$8 sps:$4 sm:$0xff]   ;;  %v845_v49 = vld [vmem:[%s1125_s4 + $0x10] ss:$8 sps:$4 sm:$0xff]   ;;  %v846_v50 = vld [vmem:[%s1125_s4 + $0x4] ss:$8 sps:$4 sm:$0xff]  }
   0xe   :  { %779 = vmatpush3.bf16.msra.mxu0 %v798_v4  ;;  %271 = vmatpush1.bf16.msra.mxu1 %v821_v32  ;;  %v850_v51 = vld [vmem:[%s1126_s5 + $0x4] ss:$8 sps:$4 sm:$0xff]   ;;  %v848_v52 = vld [vmem:[%s1126_s5] ss:$8 sps:$4 sm:$0xff]   ;;  %v853_v10 = vld [vmem:[%s1129_s6 + $0x38] sm:$0xff]  }
   0xf   :  { %780 = vmatprep.subr.bf16.mxu0 %v888_v0  ;;  %272 = vmatprep.subr.bf16.mxu1 %v822_v33  ;;  %v851_v53 = vld [vmem:[%s1125_s4] ss:$8 sps:$4 sm:$0xff]  }
  0x10   :  { %v146_v62 = vld [vmem:[%s1128_s3] sm:$0x1]  ;;  %v856_v13 = vld [vmem:[%s1129_s6 + $0x68] sm:$0xff]  }
  0x11   :  { %v147_v63 = vunpack.c.l.bf16 %v146_v62  ;;  %v857_v14 = vld [vmem:[%s1129_s6 + $0x28] sm:$0xff]   ;;  %v866_v25 = vld [vmem:[%s1129_s6 + $0x40] sm:$0xff]  }
  0x12   :  { %781 = vmatpush3.bf16.msra.mxu0 %v799_v5  ;;  %273 = vmatpush1.bf16.msra.mxu1 %v827_v36 }
  0x13   :  { %782 = vmatprep.subr.bf16.mxu0 %v888_v0  ;;  %274 = vmatprep.subr.bf16.mxu1 %v828_v37 }
  0x16   :  { %783 = vmatpush3.bf16.msra.mxu0 %v800_v6  ;;  %275 = vmatpush1.bf16.msra.mxu1 %v833_v40 }
  0x17   :  { %784 = vmatprep.subr.bf16.mxu0 %v888_v0  ;;  %276 = vmatprep.subr.bf16.mxu1 %v834_v41 }
  0x1a   :  { %785 = vmatpush3.bf16.msra.mxu0 %v801_v7  ;;  %277 = vmatpush1.bf16.msra.mxu1 %v839_v44 }
  0x1b   :  { %786 = vmatprep.subr.bf16.mxu0 %v888_v0  ;;  %278 = vmatprep.subr.bf16.mxu1 %v840_v45  ;;  %v165_v0 = vsub.s32 0, %v164_v61 }
  0x1d   :  { %v166_v3 = vrot.slane %v147_v63, %v165_v0 }
  0x1e   :  { %787 = vmatpush3.bf16.msra.mxu0 %v802_v8  ;;  %279 = vmatpush1.bf16.msra.mxu1 %v845_v49 }
  0x1f   :  { %405 = vmatprep.subr.bf16.mxu0 %v808_v12  ;;  %280 = vmatprep.subr.bf16.mxu1 %v846_v50  ;;  %v855_v12 = vld [vmem:[%s1129_s6 + $0x30] sm:$0xff]  }
  0x21   :  { %789 = vmatmul.mubr.bf16.vlgmr.msra.gmra.mxu0 %v803_v9  ;;  %v852_v9 = vld [vmem:[%s1129_s6 + $0x78] sm:$0xff]  }
  0x22   :  { %406 = vmatpush1.bf16.msra.mxu0 %v806_v11  ;;  %437 = vmatprep.mubr.bf16.mxu0 %v890_v47  ;;  %v854_v11 = vld [vmem:[%s1129_s6 + $0x70] sm:$0xff]  }
  0x23   :  { %407 = vmatprep.subr.bf16.mxu0 %v814_v26  ;;  %281 = vmatpush1.bf16.msra.mxu1 %v851_v53  ;;  %v867_v26 = vld [vmem:[%s1129_s6] sm:$0xff]  }
  0x24   :  { %750 = vmatprep.subr.bf16.mxu1 %v852_v9 }
  0x26   :  { %408 = vmatpush1.bf16.msra.mxu0 %v812_v27 }
  0x27   :  { %409 = vmatprep.subr.bf16.mxu0 %v820_v30 }
  0x2a   :  { %410 = vmatpush1.bf16.msra.mxu0 %v818_v31 }
  0x2b   :  { %411 = vmatprep.subr.bf16.mxu0 %v826_v34 }
  0x2e   :  { %412 = vmatpush1.bf16.msra.mxu0 %v824_v35 }
  0x2f   :  { %413 = vmatprep.subr.bf16.mxu0 %v832_v38 }
  0x32   :  { %414 = vmatpush1.bf16.msra.mxu0 %v830_v39 }
  0x33   :  { %415 = vmatprep.subr.bf16.mxu0 %v838_v42 }
  0x36   :  { %416 = vmatpush1.bf16.msra.mxu0 %v836_v43 }
  0x37   :  { %417 = vmatprep.subr.bf16.mxu0 %v844_v46 }
  0x3a   :  { %418 = vmatpush1.bf16.msra.mxu0 %v842_v48 }
  0x3b   :  { %419 = vmatprep.subr.bf16.mxu0 %v850_v51 }
  0x3e   :  { %420 = vmatpush1.bf16.msra.mxu0 %v848_v52 }
  0xe1   :  { %v137_v16 = vpop.f32.mrf.mxu0 }
  0xe2   :  { %v973_v17 = vadd.f32 %v734_v15, %v137_v16  ;;  %v858_v15 = vld [vmem:[%s1129_s6 + $0x60] sm:$0xff]  }
  0xe3   :  { %v790_v19 = vpop.f32.mrf.mxu0  ;;  %v859_v16 = vld [vmem:[%s1129_s6 + $0x20] sm:$0xff]  }
  0xe4   :  { %v148_v20 = vmul.f32 %v973_v17, %v973_v17  ;;  %v861_v19 = vld [vmem:[%s1129_s6 + $0x18] sm:$0xff]  }
  0xe5   :  { %v140_v21 = vpop.f32.mrf.mxu0 }
  0xe6   :  { %v977_v22 = vadd.f32 %v735_v18, %v140_v21  ;;  %150 = vadd.xlane.f32.xlu0 %v148_v20  ;;  %v860_v18 = vld [vmem:[%s1129_s6 + $0x58] sm:$0xff]   ;;  %v862_v20 = vld [vmem:[%s1129_s6 + $0x50] sm:$0xff]  }
  0xe7   :  { %v791_v23 = vpop.f32.mrf.mxu0  ;;  %v863_v21 = vld [vmem:[%s1129_s6 + $0x10] sm:$0xff]  }
  0xe8   :  { %v149_v24 = vmul.f32 %v977_v22, %v977_v22  ;;  %v864_v23 = vld [vmem:[%s1129_s6 + $0x48] sm:$0xff]  }
  0xea   :  { %152 = vadd.xlane.f32.xlu0 %v149_v24  ;;  %v865_v24 = vld [vmem:[%s1129_s6 + $0x8] sm:$0xff]  }
 0x16f   :  { %v151_v54 = vpop.xlane.xlu0 %150 }
 0x170   :  { %v155_v55 = vmul.f32 0.0078125, %v151_v54 }
 0x172   :  { %v157_v56 = vadd.f32 1e-06, %v155_v55 }
 0x173   :  { %v153_v57 = vpop.xlane.xlu0 %152 }
 0x174   :  { %868 = vrsqrt.f32 %v157_v56  ;;  %v156_v58 = vmul.f32 0.0078125, %v153_v57 }
 0x176   :  { %v158_v59 = vadd.f32 1e-06, %v156_v58 }
 0x178   :  { %870 = vrsqrt.f32 %v158_v59 }
 0x181   :  { %v869_v1 = vpop.eup %868 }
 0x182   :  { %v161_v2 = vmul.f32 %v869_v1, %v973_v17 }
 0x184   :  { %v167_v6 = vmul.f32 %v166_v3, %v161_v2 }
 0x185   :  { %v871_v4 = vpop.eup %870 }
 0x186   :  { %v162_v5 = vmul.f32 %v871_v4, %v977_v22 }
 0x188   :  { %v168_v7 = vmul.f32 %v166_v3, %v162_v5 }
 0x18a   :  { %v169_v8 = vpack.c.bf16 %v168_v7, %v167_v6 }
 0x18c   :  { %299 = vmatmul.mubr.bf16.vlgmr.msra.gmra.mxu1 %v169_v8  ;;  %438 = vmatmul.mubr.bf16.vlgmr.msra.gmra.mxu0 %v169_v8 }
 0x18d   :  { %751 = vmatpush3.bf16.msra.mxu1 %v853_v10 }
 0x18e   :  { %752 = vmatprep.subr.bf16.mxu1 %v854_v11 }
 0x191   :  { %753 = vmatpush3.bf16.msra.mxu1 %v855_v12 }
 0x192   :  { %754 = vmatprep.subr.bf16.mxu1 %v856_v13 }
 0x195   :  { %755 = vmatpush3.bf16.msra.mxu1 %v857_v14 }
 0x196   :  { %756 = vmatprep.subr.bf16.mxu1 %v858_v15 }
 0x199   :  { %757 = vmatpush3.bf16.msra.mxu1 %v859_v16 }
 0x19a   :  { %758 = vmatprep.subr.bf16.mxu1 %v860_v18 }
 0x19d   :  { %759 = vmatpush3.bf16.msra.mxu1 %v861_v19 }
 0x19e   :  { %760 = vmatprep.subr.bf16.mxu1 %v862_v20 }
 0x1a1   :  { %761 = vmatpush3.bf16.msra.mxu1 %v863_v21 }
 0x1a2   :  { %762 = vmatprep.subr.bf16.mxu1 %v864_v23 }
 0x1a5   :  { %763 = vmatpush3.bf16.msra.mxu1 %v865_v24 }
 0x1a6   :  { %764 = vmatprep.subr.bf16.mxu1 %v866_v25 }
 0x1a9   :  { %765 = vmatpush3.bf16.msra.mxu1 %v867_v26 }
 0x24c   :  { %v300_v27 = vpop.f32.mrf.mxu1  ;;  %v439_v43 = vpop.f32.mrf.mxu0 }
 0x24d   :  { %v708_v28 = vmul.f32 -1.442695, %v300_v27 }
 0x24e   :  { %v302_v29 = vpop.f32.mrf.mxu1  ;;  %v441_v44 = vpop.f32.mrf.mxu0 }
 0x24f   :  { %872 = vpow2.f32 %v708_v28  ;;  %v709_v30 = vmul.f32 -1.442695, %v302_v29 }
 0x250   :  { %v304_v31 = vpop.f32.mrf.mxu1  ;;  %v443_v48 = vpop.f32.mrf.mxu0 }
 0x251   :  { %874 = vpow2.f32 %v709_v30  ;;  %v710_v32 = vmul.f32 -1.442695, %v304_v31 }
 0x252   :  { %v306_v33 = vpop.f32.mrf.mxu1  ;;  %v445_v55 = vpop.f32.mrf.mxu0 }
 0x253   :  { %876 = vpow2.f32 %v710_v32  ;;  %v711_v34 = vmul.f32 -1.442695, %v306_v33 }
 0x255   :  { %878 = vpow2.f32 %v711_v34 }
 0x25c   :  { %v873_v35 = vpop.eup %872 }
 0x25d   :  { %v460_v37 = vadd.f32 1.0, %v873_v35 }
 0x25e   :  { %v875_v36 = vpop.eup %874 }
 0x25f   :  { %v461_v38 = vadd.f32 1.0, %v875_v36 }
 0x260   :  { %v877_v39 = vpop.eup %876 }
 0x261   :  { %880 = vrcp.f32 %v461_v38  ;;  %v462_v40 = vadd.f32 1.0, %v877_v39 }
 0x262   :  { %v879_v41 = vpop.eup %878  ;;  %882 = vrcp.f32 %v460_v37 }
 0x263   :  { %884 = vrcp.f32 %v462_v40  ;;  %v463_v42 = vadd.f32 1.0, %v879_v41 }
 0x265   :  { %886 = vrcp.f32 %v463_v42 }
 0x26e   :  { %v881_v45 = vpop.eup %880 }
 0x26f   :  { %v883_v46 = vpop.eup %882  ;;  %v473_v49 = vmul.f32 %v881_v45, %v302_v29 }
 0x270   :  { %v885_v47 = vpop.eup %884  ;;  %v472_v52 = vmul.f32 %v883_v46, %v300_v27 }
 0x271   :  { %v474_v50 = vmul.f32 %v885_v47, %v304_v31  ;;  %v477_v56 = vmul.f32 %v473_v49, %v441_v44 }
 0x272   :  { %v887_v51 = vpop.eup %886  ;;  %v476_v58 = vmul.f32 %v472_v52, %v439_v43 }
 0x273   :  { %v475_v53 = vmul.f32 %v887_v51, %v306_v33  ;;  %v478_v54 = vmul.f32 %v474_v50, %v443_v48 }
 0x275   :  { %v479_v57 = vmul.f32 %v475_v53, %v445_v55  ;;  %v480_v60 = vpack.c.bf16 %v478_v54, %v476_v58 }
 0x277   :  { %v481_v59 = vpack.c.bf16 %v479_v57, %v477_v56 }
 0x279   :  { %642 = vmatprep.mubr.bf16.mxu1 %v481_v59 }
 0x27a   :  { %643 = vmatmul.mubr.bf16.vlgmr.msra.gmra.mxu1 %v480_v60 }
 0x33a   :  { %v766_v61 = vpop.f32.mrf.mxu1 }
 0x33c   :  { %v767_v62 = vpop.f32.mrf.mxu1 }
 0x33d   :  { %v768_v0 = vadd.f32 %v767_v62, %v766_v61 }
 0x33e   :  { %v769_v63 = vpop.f32.mrf.mxu1 }
 0x33f   :  { %v651_v3 = vadd.f32 %v768_v0, %v973_v17 }
 0x340   :  { %v770_v1 = vpop.f32.mrf.mxu1 }
 0x341   :  { %v771_v2 = vadd.f32 %v770_v1, %v769_v63 }
 0x343   :  { %v652_v4 = vadd.f32 %v771_v2, %v977_v22 }
 0x345   :  { %v739_v5 = vpack.c.bf16 %v652_v4, %v651_v3 }
 0x347   :  { %740 = vst [vmem:[%s1130_s7] sm:$0xff] %v739_v5  }

</bundles_post_ra>
